<compile_context>
chip_gen: v5e
topology: v5e:2x2
jax: 0.10.0
libtpu: 0.0.40
codegen_flags: <defaults>
</compile_context>

<pallas_src>
import functools

import numpy as np
import jax
import jax.numpy as jnp
from jax.experimental import pallas as pl
from jax.experimental.pallas import tpu as pltpu

EPS = 1e-5
LANE = 128


# ---------------------------------------------------------------------------
# Pallas kernel: the full CNNRes forward for one batch of inputs.
# ---------------------------------------------------------------------------
def _cnnres_kernel(x_ref, w1_ref, wc_ref, cb_ref, gm_ref, bt_ref,
                   wfc1_ref, bfc1_ref, g5_ref, b5_ref, wfc2_ref, bfc2_ref,
                   o_ref, wpad_ref, *, seq_len, num_filters, y_range):
    f32 = jnp.float32
    bl = x_ref.shape[0]            # B * L rows
    cp = w1_ref.shape[2]           # padded channel lanes (128)
    hp = wfc1_ref.shape[2]         # padded hidden lanes (256)
    nf = num_filters               # real channels (10)
    batch = bl // seq_len

    # ---- fc1 weight expansion: compact (L, F, H) -> zero-padded (L*CP, H). ----
    # Issued first so the VMEM stores (vst slot) overlap the conv chain
    # (MXU/VPU/XLU slots); the expanded weight is only consumed by the fc1 dot.
    zero_blk = jnp.zeros((cp, hp), f32)
    for l in range(seq_len):
        wpad_ref[l * cp:(l + 1) * cp, :] = zero_blk
        wpad_ref[l * cp:l * cp + nf, :] = wfc1_ref[l]

    # Batch-boundary validity masks for the +-1 sequence shifts (built
    # in-kernel; no structural constants are DMA'd from HBM).
    pos = jax.lax.broadcasted_iota(jnp.int32, (bl, cp), 0) % seq_len
    valid_left = pos != 0               # row i-1 lies inside the same sample
    valid_right = pos != seq_len - 1    # row i+1 lies inside the same sample

    def shift_rows(v, d):
        # out[i] = v[i + d], zero-filled at per-sample boundaries (padding=1).
        rolled = pltpu.roll(v, shift=(-d) % bl, axis=0)
        return jnp.where(valid_left if d < 0 else valid_right, rolled, 0.0)

    def bn_relu(h, gamma, beta):
        # Training-mode BatchNorm (biased variance), fused scale/shift + ReLU.
        inv_n = 1.0 / h.shape[0]
        mu = jnp.sum(h, axis=0, keepdims=True) * inv_n
        msq = jnp.sum(h * h, axis=0, keepdims=True) * inv_n
        var = jnp.maximum(msq - mu * mu, 0.0)
        scale = gamma * jax.lax.rsqrt(var + EPS)
        shift = beta - mu * scale
        return jnp.maximum(h * scale + shift, 0.0)

    def conv(h, taps, bias):
        # taps[k]: compact (F, CP) weight for kernel offset (k - 1).  The
        # activation's lanes >= F are exactly zero, so slicing to F lanes and
        # contracting with K = F is exact while avoiding padded-zero weights.
        hl = shift_rows(h, -1)[:, :nf]
        hc = h[:, :nf]
        hr = shift_rows(h, 1)[:, :nf]
        y = jnp.dot(hl, taps[0], preferred_element_type=f32)
        y = y + jnp.dot(hc, taps[1], preferred_element_type=f32)
        y = y + jnp.dot(hr, taps[2], preferred_element_type=f32)
        return y + bias

    # conv1 (Cin = 1): VPU broadcast multiply per tap, no MXU outer product.
    x = x_ref[...]                                            # (B*L, 1)
    taps1 = [x * w1_ref[k] for k in range(3)]                 # each (B*L, CP)
    h = shift_rows(taps1[0], -1) + taps1[1] + shift_rows(taps1[2], 1) + cb_ref[0]
    h = bn_relu(h, gm_ref[0], bt_ref[0])
    identity = h

    # conv2 -> bn2 -> relu
    h = conv(h, [wc_ref[0, k] for k in range(3)], cb_ref[1])
    h = bn_relu(h, gm_ref[1], bt_ref[1])
    # conv3 -> bn3 -> relu -> residual add
    h = conv(h, [wc_ref[1, k] for k in range(3)], cb_ref[2])
    h = bn_relu(h, gm_ref[2], bt_ref[2]) + identity
    # conv4 -> bn4 -> relu
    h = conv(h, [wc_ref[2, k] for k in range(3)], cb_ref[3])
    h = bn_relu(h, gm_ref[3], bt_ref[3])

    # fc1: flatten (row b*L+l, lane c) -> (b, l*CP + c) with a leading-dim
    # reshape + 128-aligned lane concatenation, then ONE (B, L*CP) x (L*CP, H)
    # matmul against the in-kernel expanded weight.  K layout l*CP + c matches
    # PyTorch's channel-major flatten via the wrapper-side weight repack.
    h3 = h.reshape(batch, seq_len, cp)                        # (B, L, CP)
    h2 = jnp.concatenate([h3[:, l, :] for l in range(seq_len)], axis=-1)
    fc = jnp.dot(h2, wpad_ref[...], preferred_element_type=f32) + bfc1_ref[...]
    fc = bn_relu(fc, g5_ref[...], b5_ref[...])                # bn5 + relu

    out = jnp.dot(fc, wfc2_ref[...], preferred_element_type=f32) + bfc2_ref[...]
    if y_range:
        lo, hi = y_range
        out = lo + (hi - lo) * jax.nn.sigmoid(out)
    o_ref[...] = out                                          # lane-dense (B, 128)


# ---------------------------------------------------------------------------
# Plain-JAX glue: parameter packing (compact layouts) and the call.
# ---------------------------------------------------------------------------
def _round_up(n, m):
    return (n + m - 1) // m * m


def _pad_last(a, target):
    pad = [(0, 0)] * (a.ndim - 1) + [(0, target - a.shape[-1])]
    return jnp.pad(a, pad)


def init_params(key, input_dim, output_dim, num_filters, hidden=256):
    F = num_filters
    ks = jax.random.split(key, 20)

    def rnd(k, shape, scale=0.2):
        return scale * jax.random.normal(k, shape, jnp.float32)

    p = {}
    p["w1"], p["b1"] = rnd(ks[0], (F, 1, 3)), rnd(ks[1], (F,))
    p["w2"], p["b2"] = rnd(ks[2], (F, F, 3)), rnd(ks[3], (F,))
    p["w3"], p["b3"] = rnd(ks[4], (F, F, 3)), rnd(ks[5], (F,))
    p["w4"], p["b4"] = rnd(ks[6], (F, F, 3)), rnd(ks[7], (F,))
    for i, k in zip(range(1, 5), ks[8:12]):
        k1, k2 = jax.random.split(k)
        p[f"g{i}"] = 1.0 + 0.1 * jax.random.normal(k1, (F,), jnp.float32)
        p[f"be{i}"] = 0.1 * jax.random.normal(k2, (F,), jnp.float32)
    p["fc1_w"] = rnd(ks[12], (hidden, input_dim * F), scale=0.05)
    p["fc1_b"] = rnd(ks[13], (hidden,))
    k1, k2 = jax.random.split(ks[14])
    p["g5"] = 1.0 + 0.1 * jax.random.normal(k1, (hidden,), jnp.float32)
    p["be5"] = 0.1 * jax.random.normal(k2, (hidden,), jnp.float32)
    p["fc2_w"] = rnd(ks[15], (output_dim, hidden), scale=0.05)
    p["fc2_b"] = rnd(ks[16], (output_dim,))
    return p


def cnn_res_forward(x, params, *, y_range=()):
    B, L = x.shape
    F = params["w1"].shape[0]
    H = params["fc1_w"].shape[0]
    OUT = params["fc2_w"].shape[0]
    CP = _round_up(max(F, 1), LANE)       # channel lanes   (10  -> 128)
    HP = _round_up(H, LANE)               # hidden lanes    (256 -> 256)
    OP = _round_up(max(OUT, 1), LANE)     # output lanes    (4   -> 128)

    x2d = x.reshape(B * L, 1).astype(jnp.float32)

    # Repack PyTorch-layout weights into compact, matmul-friendly layouts.
    w1 = _pad_last(jnp.transpose(params["w1"], (2, 1, 0)), CP)            # (3,1,CP)

    def conv_w(w):                                      # (F_out, F_in, 3)
        t = jnp.transpose(w, (2, 1, 0))                 # (3, F_in, F_out)
        return _pad_last(t, CP)                         # (3, F, CP) compact K

    wc = jnp.stack([conv_w(params[f"w{i}"]) for i in (2, 3, 4)])          # (3,3,F,CP)
    cb = _pad_last(jnp.stack([params[f"b{i}"] for i in (1, 2, 3, 4)])[:, None, :], CP)
    gm = _pad_last(jnp.stack([params[f"g{i}"] for i in (1, 2, 3, 4)])[:, None, :], CP)
    bt = _pad_last(jnp.stack([params[f"be{i}"] for i in (1, 2, 3, 4)])[:, None, :], CP)
    # fc1 weight columns are indexed c*L + l in PyTorch; store COMPACT as
    # (L, F, HP) = 160 KiB (the kernel expands to the (L*CP, HP) K layout).
    wfc1 = jnp.transpose(params["fc1_w"].reshape(H, F, L), (2, 1, 0))     # (L,F,H)
    wfc1 = jnp.pad(wfc1, ((0, 0), (0, 0), (0, HP - H)))
    bfc1 = _pad_last(params["fc1_b"][None, :], HP)
    g5 = _pad_last(params["g5"][None, :], HP)
    b5 = _pad_last(params["be5"][None, :], HP)
    wfc2 = jnp.pad(params["fc2_w"].T, ((0, HP - H), (0, OP - OUT)))       # (HP,OP)
    bfc2 = _pad_last(params["fc2_b"][None, :], OP)

    inputs = (x2d, w1, wc, cb, gm, bt, wfc1, bfc1, g5, b5, wfc2, bfc2)
    kernel = functools.partial(_cnnres_kernel, seq_len=L, num_filters=F,
                               y_range=tuple(y_range))
    vmem_spec = pl.BlockSpec(memory_space=pltpu.MemorySpace.VMEM)
    out = pl.pallas_call(
        kernel,
        out_shape=jax.ShapeDtypeStruct((B, OP), jnp.float32),
        in_specs=[vmem_spec] * len(inputs),
        out_specs=vmem_spec,
        scratch_shapes=[pltpu.VMEM((L * CP, HP), jnp.float32)],  # fc1 weight expand
    )(*inputs)
    return out[:, :OUT]


# ---------------------------------------------------------------------------
# Pure-JAX reference (mirrors the PyTorch forward) for correctness checking.
# ---------------------------------------------------------------------------
def cnn_res_reference(x, params, *, y_range=()):
    B, L = x.shape
    h = x.reshape(B, 1, L).astype(jnp.float32)

    def conv1d(h, w, b):
        y = jax.lax.conv_general_dilated(
            h, w, window_strides=(1,), padding=((1, 1),),
            dimension_numbers=("NCH", "OIH", "NCH"))
        return y + b[None, :, None]

    def bn_relu3(h, g, be):
        mu = h.mean(axis=(0, 2), keepdims=True)
        var = ((h - mu) ** 2).mean(axis=(0, 2), keepdims=True)
        hn = (h - mu) * jax.lax.rsqrt(var + EPS) * g[None, :, None] + be[None, :, None]
        return jnp.maximum(hn, 0.0)

    h = bn_relu3(conv1d(h, params["w1"], params["b1"]), params["g1"], params["be1"])
    identity = h
    h = bn_relu3(conv1d(h, params["w2"], params["b2"]), params["g2"], params["be2"])
    h = bn_relu3(conv1d(h, params["w3"], params["b3"]), params["g3"], params["be3"])
    h = h + identity
    h = bn_relu3(conv1d(h, params["w4"], params["b4"]), params["g4"], params["be4"])
    h = h.reshape(B, -1)                          # channel-major flatten (c*L + l)
    h = h @ params["fc1_w"].T + params["fc1_b"]
    mu = h.mean(axis=0, keepdims=True)
    var = ((h - mu) ** 2).mean(axis=0, keepdims=True)
    h = (h - mu) * jax.lax.rsqrt(var + EPS) * params["g5"] + params["be5"]
    h = jnp.maximum(h, 0.0)
    out = h @ params["fc2_w"].T + params["fc2_b"]
    if y_range:
        lo, hi = y_range
        out = lo + (hi - lo) * jax.nn.sigmoid(out)
    return out


if __name__ == "__main__":
    B, INPUT_DIM, OUTPUT_DIM, NUM_FILTERS = 2, 16, 4, 10

    key = jax.random.PRNGKey(0)
    kx, kp = jax.random.split(key)
    x = jax.random.normal(kx, (B, INPUT_DIM), jnp.float32)
    params = init_params(kp, INPUT_DIM, OUTPUT_DIM, NUM_FILTERS)

    out = cnn_res_forward(x, params)             # y_range=() -> no sigmoid scaling
    out = jax.block_until_ready(out)

    ref = jax.block_until_ready(cnn_res_reference(x, params))
    if not np.allclose(np.asarray(out), np.asarray(ref), rtol=1e-3, atol=1e-3):
        raise AssertionError(f"Pallas kernel mismatch:\n{out}\nvs\n{ref}")
    print("KERNEL_OK")
</pallas_src>

<mosaic_0001>
module attributes {stable_mosaic.version = 11 : i64} {
  func.func @_cnnres_kernel(%arg0: memref<32x1xf32, #tpu.memory_space<vmem>>, %arg1: memref<3x1x128xf32, #tpu.memory_space<vmem>>, %arg2: memref<3x3x10x128xf32, #tpu.memory_space<vmem>>, %arg3: memref<4x1x128xf32, #tpu.memory_space<vmem>>, %arg4: memref<4x1x128xf32, #tpu.memory_space<vmem>>, %arg5: memref<4x1x128xf32, #tpu.memory_space<vmem>>, %arg6: memref<16x10x256xf32, #tpu.memory_space<vmem>>, %arg7: memref<1x256xf32, #tpu.memory_space<vmem>>, %arg8: memref<1x256xf32, #tpu.memory_space<vmem>>, %arg9: memref<1x256xf32, #tpu.memory_space<vmem>>, %arg10: memref<256x128xf32, #tpu.memory_space<vmem>>, %arg11: memref<1x128xf32, #tpu.memory_space<vmem>>, %arg12: memref<2x128xf32, #tpu.memory_space<vmem>>, %arg13: memref<2048x256xf32, #tpu.memory_space<vmem>>) attributes {dimension_semantics = [], scalar_prefetch = 0 : i64, scratch_operands = 1 : i64, tpu.core_type = #tpu.core_type<tc>} {
    %cst = arith.constant 0.000000e+00 : f32
    %0 = vector.broadcast %cst : f32 to vector<128x256xf32>
    %c0 = arith.constant 0 : index
    %c0_0 = arith.constant 0 : index
    %1 = vector.load %arg13[%c0, %c0_0] : memref<2048x256xf32, #tpu.memory_space<vmem>>, vector<128x256xf32>
    tpu.vector_store %arg13[%c0, %c0_0], %0 {strides = array<i32>} : memref<2048x256xf32, #tpu.memory_space<vmem>>, vector<128x256xf32>,
    %c0_1 = arith.constant 0 : index
    %c0_2 = arith.constant 0 : index
    %c0_3 = arith.constant 0 : index
    %2 = vector.load %arg6[%c0_1, %c0_2, %c0_3] : memref<16x10x256xf32, #tpu.memory_space<vmem>>, vector<1x10x256xf32>
    %3 = vector.shape_cast %2 : vector<1x10x256xf32> to vector<10x256xf32>
    %c0_4 = arith.constant 0 : index
    %c0_5 = arith.constant 0 : index
    %4 = vector.load %arg13[%c0_4, %c0_5] : memref<2048x256xf32, #tpu.memory_space<vmem>>, vector<10x256xf32>
    tpu.vector_store %arg13[%c0_4, %c0_5], %3 {strides = array<i32>} : memref<2048x256xf32, #tpu.memory_space<vmem>>, vector<10x256xf32>,
    %c128 = arith.constant 128 : index
    %c0_6 = arith.constant 0 : index
    %5 = vector.load %arg13[%c128, %c0_6] : memref<2048x256xf32, #tpu.memory_space<vmem>>, vector<128x256xf32>
    tpu.vector_store %arg13[%c128, %c0_6], %0 {strides = array<i32>} : memref<2048x256xf32, #tpu.memory_space<vmem>>, vector<128x256xf32>,
    %c1 = arith.constant 1 : index
    %c0_7 = arith.constant 0 : index
    %c0_8 = arith.constant 0 : index
    %6 = vector.load %arg6[%c1, %c0_7, %c0_8] : memref<16x10x256xf32, #tpu.memory_space<vmem>>, vector<1x10x256xf32>
    %7 = vector.shape_cast %6 : vector<1x10x256xf32> to vector<10x256xf32>
    %c128_9 = arith.constant 128 : index
    %c0_10 = arith.constant 0 : index
    %8 = vector.load %arg13[%c128_9, %c0_10] : memref<2048x256xf32, #tpu.memory_space<vmem>>, vector<10x256xf32>
    tpu.vector_store %arg13[%c128_9, %c0_10], %7 {strides = array<i32>} : memref<2048x256xf32, #tpu.memory_space<vmem>>, vector<10x256xf32>,
    %c256 = arith.constant 256 : index
    %c0_11 = arith.constant 0 : index
    %9 = vector.load %arg13[%c256, %c0_11] : memref<2048x256xf32, #tpu.memory_space<vmem>>, vector<128x256xf32>
    tpu.vector_store %arg13[%c256, %c0_11], %0 {strides = array<i32>} : memref<2048x256xf32, #tpu.memory_space<vmem>>, vector<128x256xf32>,
    %c2 = arith.constant 2 : index
    %c0_12 = arith.constant 0 : index
    %c0_13 = arith.constant 0 : index
    %10 = vector.load %arg6[%c2, %c0_12, %c0_13] : memref<16x10x256xf32, #tpu.memory_space<vmem>>, vector<1x10x256xf32>
    %11 = vector.shape_cast %10 : vector<1x10x256xf32> to vector<10x256xf32>
    %c256_14 = arith.constant 256 : index
    %c0_15 = arith.constant 0 : index
    %12 = vector.load %arg13[%c256_14, %c0_15] : memref<2048x256xf32, #tpu.memory_space<vmem>>, vector<10x256xf32>
    tpu.vector_store %arg13[%c256_14, %c0_15], %11 {strides = array<i32>} : memref<2048x256xf32, #tpu.memory_space<vmem>>, vector<10x256xf32>,
    %c384 = arith.constant 384 : index
    %c0_16 = arith.constant 0 : index
    %13 = vector.load %arg13[%c384, %c0_16] : memref<2048x256xf32, #tpu.memory_space<vmem>>, vector<128x256xf32>
    tpu.vector_store %arg13[%c384, %c0_16], %0 {strides = array<i32>} : memref<2048x256xf32, #tpu.memory_space<vmem>>, vector<128x256xf32>,
    %c3 = arith.constant 3 : index
    %c0_17 = arith.constant 0 : index
    %c0_18 = arith.constant 0 : index
    %14 = vector.load %arg6[%c3, %c0_17, %c0_18] : memref<16x10x256xf32, #tpu.memory_space<vmem>>, vector<1x10x256xf32>
    %15 = vector.shape_cast %14 : vector<1x10x256xf32> to vector<10x256xf32>
    %c384_19 = arith.constant 384 : index
    %c0_20 = arith.constant 0 : index
    %16 = vector.load %arg13[%c384_19, %c0_20] : memref<2048x256xf32, #tpu.memory_space<vmem>>, vector<10x256xf32>
    tpu.vector_store %arg13[%c384_19, %c0_20], %15 {strides = array<i32>} : memref<2048x256xf32, #tpu.memory_space<vmem>>, vector<10x256xf32>,
    %c512 = arith.constant 512 : index
    %c0_21 = arith.constant 0 : index
    %17 = vector.load %arg13[%c512, %c0_21] : memref<2048x256xf32, #tpu.memory_space<vmem>>, vector<128x256xf32>
    tpu.vector_store %arg13[%c512, %c0_21], %0 {strides = array<i32>} : memref<2048x256xf32, #tpu.memory_space<vmem>>, vector<128x256xf32>,
    %c4 = arith.constant 4 : index
    %c0_22 = arith.constant 0 : index
    %c0_23 = arith.constant 0 : index
    %18 = vector.load %arg6[%c4, %c0_22, %c0_23] : memref<16x10x256xf32, #tpu.memory_space<vmem>>, vector<1x10x256xf32>
    %19 = vector.shape_cast %18 : vector<1x10x256xf32> to vector<10x256xf32>
    %c512_24 = arith.constant 512 : index
    %c0_25 = arith.constant 0 : index
    %20 = vector.load %arg13[%c512_24, %c0_25] : memref<2048x256xf32, #tpu.memory_space<vmem>>, vector<10x256xf32>
    tpu.vector_store %arg13[%c512_24, %c0_25], %19 {strides = array<i32>} : memref<2048x256xf32, #tpu.memory_space<vmem>>, vector<10x256xf32>,
    %c640 = arith.constant 640 : index
    %c0_26 = arith.constant 0 : index
    %21 = vector.load %arg13[%c640, %c0_26] : memref<2048x256xf32, #tpu.memory_space<vmem>>, vector<128x256xf32>
    tpu.vector_store %arg13[%c640, %c0_26], %0 {strides = array<i32>} : memref<2048x256xf32, #tpu.memory_space<vmem>>, vector<128x256xf32>,
    %c5 = arith.constant 5 : index
    %c0_27 = arith.constant 0 : index
    %c0_28 = arith.constant 0 : index
    %22 = vector.load %arg6[%c5, %c0_27, %c0_28] : memref<16x10x256xf32, #tpu.memory_space<vmem>>, vector<1x10x256xf32>
    %23 = vector.shape_cast %22 : vector<1x10x256xf32> to vector<10x256xf32>
    %c640_29 = arith.constant 640 : index
    %c0_30 = arith.constant 0 : index
    %24 = vector.load %arg13[%c640_29, %c0_30] : memref<2048x256xf32, #tpu.memory_space<vmem>>, vector<10x256xf32>
    tpu.vector_store %arg13[%c640_29, %c0_30], %23 {strides = array<i32>} : memref<2048x256xf32, #tpu.memory_space<vmem>>, vector<10x256xf32>,
    %c768 = arith.constant 768 : index
    %c0_31 = arith.constant 0 : index
    %25 = vector.load %arg13[%c768, %c0_31] : memref<2048x256xf32, #tpu.memory_space<vmem>>, vector<128x256xf32>
    tpu.vector_store %arg13[%c768, %c0_31], %0 {strides = array<i32>} : memref<2048x256xf32, #tpu.memory_space<vmem>>, vector<128x256xf32>,
    %c6 = arith.constant 6 : index
    %c0_32 = arith.constant 0 : index
    %c0_33 = arith.constant 0 : index
    %26 = vector.load %arg6[%c6, %c0_32, %c0_33] : memref<16x10x256xf32, #tpu.memory_space<vmem>>, vector<1x10x256xf32>
    %27 = vector.shape_cast %26 : vector<1x10x256xf32> to vector<10x256xf32>
    %c768_34 = arith.constant 768 : index
    %c0_35 = arith.constant 0 : index
    %28 = vector.load %arg13[%c768_34, %c0_35] : memref<2048x256xf32, #tpu.memory_space<vmem>>, vector<10x256xf32>
    tpu.vector_store %arg13[%c768_34, %c0_35], %27 {strides = array<i32>} : memref<2048x256xf32, #tpu.memory_space<vmem>>, vector<10x256xf32>,
    %c896 = arith.constant 896 : index
    %c0_36 = arith.constant 0 : index
    %29 = vector.load %arg13[%c896, %c0_36] : memref<2048x256xf32, #tpu.memory_space<vmem>>, vector<128x256xf32>
    tpu.vector_store %arg13[%c896, %c0_36], %0 {strides = array<i32>} : memref<2048x256xf32, #tpu.memory_space<vmem>>, vector<128x256xf32>,
    %c7 = arith.constant 7 : index
    %c0_37 = arith.constant 0 : index
    %c0_38 = arith.constant 0 : index
    %30 = vector.load %arg6[%c7, %c0_37, %c0_38] : memref<16x10x256xf32, #tpu.memory_space<vmem>>, vector<1x10x256xf32>
    %31 = vector.shape_cast %30 : vector<1x10x256xf32> to vector<10x256xf32>
    %c896_39 = arith.constant 896 : index
    %c0_40 = arith.constant 0 : index
    %32 = vector.load %arg13[%c896_39, %c0_40] : memref<2048x256xf32, #tpu.memory_space<vmem>>, vector<10x256xf32>
    tpu.vector_store %arg13[%c896_39, %c0_40], %31 {strides = array<i32>} : memref<2048x256xf32, #tpu.memory_space<vmem>>, vector<10x256xf32>,
    %c1024 = arith.constant 1024 : index
    %c0_41 = arith.constant 0 : index
    %33 = vector.load %arg13[%c1024, %c0_41] : memref<2048x256xf32, #tpu.memory_space<vmem>>, vector<128x256xf32>
    tpu.vector_store %arg13[%c1024, %c0_41], %0 {strides = array<i32>} : memref<2048x256xf32, #tpu.memory_space<vmem>>, vector<128x256xf32>,
    %c8 = arith.constant 8 : index
    %c0_42 = arith.constant 0 : index
    %c0_43 = arith.constant 0 : index
    %34 = vector.load %arg6[%c8, %c0_42, %c0_43] : memref<16x10x256xf32, #tpu.memory_space<vmem>>, vector<1x10x256xf32>
    %35 = vector.shape_cast %34 : vector<1x10x256xf32> to vector<10x256xf32>
    %c1024_44 = arith.constant 1024 : index
    %c0_45 = arith.constant 0 : index
    %36 = vector.load %arg13[%c1024_44, %c0_45] : memref<2048x256xf32, #tpu.memory_space<vmem>>, vector<10x256xf32>
    tpu.vector_store %arg13[%c1024_44, %c0_45], %35 {strides = array<i32>} : memref<2048x256xf32, #tpu.memory_space<vmem>>, vector<10x256xf32>,
    %c1152 = arith.constant 1152 : index
    %c0_46 = arith.constant 0 : index
    %37 = vector.load %arg13[%c1152, %c0_46] : memref<2048x256xf32, #tpu.memory_space<vmem>>, vector<128x256xf32>
    tpu.vector_store %arg13[%c1152, %c0_46], %0 {strides = array<i32>} : memref<2048x256xf32, #tpu.memory_space<vmem>>, vector<128x256xf32>,
    %c9 = arith.constant 9 : index
    %c0_47 = arith.constant 0 : index
    %c0_48 = arith.constant 0 : index
    %38 = vector.load %arg6[%c9, %c0_47, %c0_48] : memref<16x10x256xf32, #tpu.memory_space<vmem>>, vector<1x10x256xf32>
    %39 = vector.shape_cast %38 : vector<1x10x256xf32> to vector<10x256xf32>
    %c1152_49 = arith.constant 1152 : index
    %c0_50 = arith.constant 0 : index
    %40 = vector.load %arg13[%c1152_49, %c0_50] : memref<2048x256xf32, #tpu.memory_space<vmem>>, vector<10x256xf32>
    tpu.vector_store %arg13[%c1152_49, %c0_50], %39 {strides = array<i32>} : memref<2048x256xf32, #tpu.memory_space<vmem>>, vector<10x256xf32>,
    %c1280 = arith.constant 1280 : index
    %c0_51 = arith.constant 0 : index
    %41 = vector.load %arg13[%c1280, %c0_51] : memref<2048x256xf32, #tpu.memory_space<vmem>>, vector<128x256xf32>
    tpu.vector_store %arg13[%c1280, %c0_51], %0 {strides = array<i32>} : memref<2048x256xf32, #tpu.memory_space<vmem>>, vector<128x256xf32>,
    %c10 = arith.constant 10 : index
    %c0_52 = arith.constant 0 : index
    %c0_53 = arith.constant 0 : index
    %42 = vector.load %arg6[%c10, %c0_52, %c0_53] : memref<16x10x256xf32, #tpu.memory_space<vmem>>, vector<1x10x256xf32>
    %43 = vector.shape_cast %42 : vector<1x10x256xf32> to vector<10x256xf32>
    %c1280_54 = arith.constant 1280 : index
    %c0_55 = arith.constant 0 : index
    %44 = vector.load %arg13[%c1280_54, %c0_55] : memref<2048x256xf32, #tpu.memory_space<vmem>>, vector<10x256xf32>
    tpu.vector_store %arg13[%c1280_54, %c0_55], %43 {strides = array<i32>} : memref<2048x256xf32, #tpu.memory_space<vmem>>, vector<10x256xf32>,
    %c1408 = arith.constant 1408 : index
    %c0_56 = arith.constant 0 : index
    %45 = vector.load %arg13[%c1408, %c0_56] : memref<2048x256xf32, #tpu.memory_space<vmem>>, vector<128x256xf32>
    tpu.vector_store %arg13[%c1408, %c0_56], %0 {strides = array<i32>} : memref<2048x256xf32, #tpu.memory_space<vmem>>, vector<128x256xf32>,
    %c11 = arith.constant 11 : index
    %c0_57 = arith.constant 0 : index
    %c0_58 = arith.constant 0 : index
    %46 = vector.load %arg6[%c11, %c0_57, %c0_58] : memref<16x10x256xf32, #tpu.memory_space<vmem>>, vector<1x10x256xf32>
    %47 = vector.shape_cast %46 : vector<1x10x256xf32> to vector<10x256xf32>
    %c1408_59 = arith.constant 1408 : index
    %c0_60 = arith.constant 0 : index
    %48 = vector.load %arg13[%c1408_59, %c0_60] : memref<2048x256xf32, #tpu.memory_space<vmem>>, vector<10x256xf32>
    tpu.vector_store %arg13[%c1408_59, %c0_60], %47 {strides = array<i32>} : memref<2048x256xf32, #tpu.memory_space<vmem>>, vector<10x256xf32>,
    %c1536 = arith.constant 1536 : index
    %c0_61 = arith.constant 0 : index
    %49 = vector.load %arg13[%c1536, %c0_61] : memref<2048x256xf32, #tpu.memory_space<vmem>>, vector<128x256xf32>
    tpu.vector_store %arg13[%c1536, %c0_61], %0 {strides = array<i32>} : memref<2048x256xf32, #tpu.memory_space<vmem>>, vector<128x256xf32>,
    %c12 = arith.constant 12 : index
    %c0_62 = arith.constant 0 : index
    %c0_63 = arith.constant 0 : index
    %50 = vector.load %arg6[%c12, %c0_62, %c0_63] : memref<16x10x256xf32, #tpu.memory_space<vmem>>, vector<1x10x256xf32>
    %51 = vector.shape_cast %50 : vector<1x10x256xf32> to vector<10x256xf32>
    %c1536_64 = arith.constant 1536 : index
    %c0_65 = arith.constant 0 : index
    %52 = vector.load %arg13[%c1536_64, %c0_65] : memref<2048x256xf32, #tpu.memory_space<vmem>>, vector<10x256xf32>
    tpu.vector_store %arg13[%c1536_64, %c0_65], %51 {strides = array<i32>} : memref<2048x256xf32, #tpu.memory_space<vmem>>, vector<10x256xf32>,
    %c1664 = arith.constant 1664 : index
    %c0_66 = arith.constant 0 : index
    %53 = vector.load %arg13[%c1664, %c0_66] : memref<2048x256xf32, #tpu.memory_space<vmem>>, vector<128x256xf32>
    tpu.vector_store %arg13[%c1664, %c0_66], %0 {strides = array<i32>} : memref<2048x256xf32, #tpu.memory_space<vmem>>, vector<128x256xf32>,
    %c13 = arith.constant 13 : index
    %c0_67 = arith.constant 0 : index
    %c0_68 = arith.constant 0 : index
    %54 = vector.load %arg6[%c13, %c0_67, %c0_68] : memref<16x10x256xf32, #tpu.memory_space<vmem>>, vector<1x10x256xf32>
    %55 = vector.shape_cast %54 : vector<1x10x256xf32> to vector<10x256xf32>
    %c1664_69 = arith.constant 1664 : index
    %c0_70 = arith.constant 0 : index
    %56 = vector.load %arg13[%c1664_69, %c0_70] : memref<2048x256xf32, #tpu.memory_space<vmem>>, vector<10x256xf32>
    tpu.vector_store %arg13[%c1664_69, %c0_70], %55 {strides = array<i32>} : memref<2048x256xf32, #tpu.memory_space<vmem>>, vector<10x256xf32>,
    %c1792 = arith.constant 1792 : index
    %c0_71 = arith.constant 0 : index
    %57 = vector.load %arg13[%c1792, %c0_71] : memref<2048x256xf32, #tpu.memory_space<vmem>>, vector<128x256xf32>
    tpu.vector_store %arg13[%c1792, %c0_71], %0 {strides = array<i32>} : memref<2048x256xf32, #tpu.memory_space<vmem>>, vector<128x256xf32>,
    %c14 = arith.constant 14 : index
    %c0_72 = arith.constant 0 : index
    %c0_73 = arith.constant 0 : index
    %58 = vector.load %arg6[%c14, %c0_72, %c0_73] : memref<16x10x256xf32, #tpu.memory_space<vmem>>, vector<1x10x256xf32>
    %59 = vector.shape_cast %58 : vector<1x10x256xf32> to vector<10x256xf32>
    %c1792_74 = arith.constant 1792 : index
    %c0_75 = arith.constant 0 : index
    %60 = vector.load %arg13[%c1792_74, %c0_75] : memref<2048x256xf32, #tpu.memory_space<vmem>>, vector<10x256xf32>
    tpu.vector_store %arg13[%c1792_74, %c0_75], %59 {strides = array<i32>} : memref<2048x256xf32, #tpu.memory_space<vmem>>, vector<10x256xf32>,
    %c1920 = arith.constant 1920 : index
    %c0_76 = arith.constant 0 : index
    %61 = vector.load %arg13[%c1920, %c0_76] : memref<2048x256xf32, #tpu.memory_space<vmem>>, vector<128x256xf32>
    tpu.vector_store %arg13[%c1920, %c0_76], %0 {strides = array<i32>} : memref<2048x256xf32, #tpu.memory_space<vmem>>, vector<128x256xf32>,
    %c15 = arith.constant 15 : index
    %c0_77 = arith.constant 0 : index
    %c0_78 = arith.constant 0 : index
    %62 = vector.load %arg6[%c15, %c0_77, %c0_78] : memref<16x10x256xf32, #tpu.memory_space<vmem>>, vector<1x10x256xf32>
    %63 = vector.shape_cast %62 : vector<1x10x256xf32> to vector<10x256xf32>
    %c1920_79 = arith.constant 1920 : index
    %c0_80 = arith.constant 0 : index
    %64 = vector.load %arg13[%c1920_79, %c0_80] : memref<2048x256xf32, #tpu.memory_space<vmem>>, vector<10x256xf32>
    tpu.vector_store %arg13[%c1920_79, %c0_80], %63 {strides = array<i32>} : memref<2048x256xf32, #tpu.memory_space<vmem>>, vector<10x256xf32>,
    %65 = tpu.iota {dimensions = array<i32: 0>} : vector<32x128xi32>
    %c16_i32 = arith.constant 16 : i32
    %c0_i32 = arith.constant 0 : i32
    %66 = arith.cmpi eq, %c16_i32, %c0_i32 : i32
    %c1_i32 = arith.constant 1 : i32
    %67 = arith.select %66, %c1_i32, %c16_i32 : i32
    %68 = vector.broadcast %67 : i32 to vector<32x128xi32>
    %69 = arith.remsi %65, %68 : vector<32x128xi32>
    %c0_i32_81 = arith.constant 0 : i32
    %70 = vector.broadcast %c0_i32_81 : i32 to vector<32x128xi32>
    %71 = arith.cmpi ne, %69, %70 : vector<32x128xi32>
    %c0_i32_82 = arith.constant 0 : i32
    %72 = vector.broadcast %c0_i32_82 : i32 to vector<32x128xi32>
    %73 = arith.cmpi slt, %69, %72 : vector<32x128xi32>
    %c0_i32_83 = arith.constant 0 : i32
    %74 = arith.cmpi slt, %67, %c0_i32_83 : i32
    %75 = vector.broadcast %74 : i1 to vector<32x128xi1>
    %76 = vector.broadcast %75 : vector<32x128xi1> to vector<32x128xi1>
    %77 = arith.xori %73, %76 : vector<32x128xi1>
    %78 = arith.andi %77, %71 : vector<32x128xi1>
    %79 = vector.broadcast %67 : i32 to vector<32x128xi32>
    %80 = arith.addi %69, %79 : vector<32x128xi32>
    %81 = arith.select %78, %80, %69 : vector<32x128xi1>, vector<32x128xi32>
    %c0_i32_84 = arith.constant 0 : i32
    %82 = vector.broadcast %c0_i32_84 : i32 to vector<32x128xi32>
    %83 = arith.cmpi ne, %81, %82 : vector<32x128xi32>
    %c15_i32 = arith.constant 15 : i32
    %84 = vector.broadcast %c15_i32 : i32 to vector<32x128xi32>
    %85 = arith.cmpi ne, %81, %84 : vector<32x128xi32>
    %c0_85 = arith.constant 0 : index
    %c0_86 = arith.constant 0 : index
    %86 = vector.load %arg0[%c0_85, %c0_86] : memref<32x1xf32, #tpu.memory_space<vmem>>, vector<32x1xf32>
    %c0_87 = arith.constant 0 : index
    %c0_88 = arith.constant 0 : index
    %c0_89 = arith.constant 0 : index
    %87 = vector.load %arg1[%c0_87, %c0_88, %c0_89] : memref<3x1x128xf32, #tpu.memory_space<vmem>>, vector<1x1x128xf32>
    %88 = vector.shape_cast %87 : vector<1x1x128xf32> to vector<1x128xf32>
    %89 = vector.broadcast %86 : vector<32x1xf32> to vector<32x128xf32>
    %90 = vector.broadcast %88 : vector<1x128xf32> to vector<32x128xf32>
    %91 = arith.mulf %89, %90 : vector<32x128xf32>
    %c1_90 = arith.constant 1 : index
    %c0_91 = arith.constant 0 : index
    %c0_92 = arith.constant 0 : index
    %92 = vector.load %arg1[%c1_90, %c0_91, %c0_92] : memref<3x1x128xf32, #tpu.memory_space<vmem>>, vector<1x1x128xf32>
    %93 = vector.shape_cast %92 : vector<1x1x128xf32> to vector<1x128xf32>
    %94 = vector.broadcast %86 : vector<32x1xf32> to vector<32x128xf32>
    %95 = vector.broadcast %93 : vector<1x128xf32> to vector<32x128xf32>
    %96 = arith.mulf %94, %95 : vector<32x128xf32>
    %c2_93 = arith.constant 2 : index
    %c0_94 = arith.constant 0 : index
    %c0_95 = arith.constant 0 : index
    %97 = vector.load %arg1[%c2_93, %c0_94, %c0_95] : memref<3x1x128xf32, #tpu.memory_space<vmem>>, vector<1x1x128xf32>
    %98 = vector.shape_cast %97 : vector<1x1x128xf32> to vector<1x128xf32>
    %99 = vector.broadcast %86 : vector<32x1xf32> to vector<32x128xf32>
    %100 = vector.broadcast %98 : vector<1x128xf32> to vector<32x128xf32>
    %101 = arith.mulf %99, %100 : vector<32x128xf32>
    %c1_i32_96 = arith.constant 1 : i32
    %102 = tpu.dynamic_rotate %91 by %c1_i32_96 dim 0 : vector<32x128xf32>, i32 -> vector<32x128xf32>
    %cst_97 = arith.constant 0.000000e+00 : f32
    %103 = vector.broadcast %cst_97 : f32 to vector<32x128xf32>
    %104 = arith.select %83, %102, %103 : vector<32x128xi1>, vector<32x128xf32>
    %105 = arith.addf %104, %96 : vector<32x128xf32>
    %c31_i32 = arith.constant 31 : i32
    %106 = tpu.dynamic_rotate %101 by %c31_i32 dim 0 : vector<32x128xf32>, i32 -> vector<32x128xf32>
    %cst_98 = arith.constant 0.000000e+00 : f32
    %107 = vector.broadcast %cst_98 : f32 to vector<32x128xf32>
    %108 = arith.select %85, %106, %107 : vector<32x128xi1>, vector<32x128xf32>
    %109 = arith.addf %105, %108 : vector<32x128xf32>
    %c0_99 = arith.constant 0 : index
    %c0_100 = arith.constant 0 : index
    %c0_101 = arith.constant 0 : index
    %110 = vector.load %arg3[%c0_99, %c0_100, %c0_101] : memref<4x1x128xf32, #tpu.memory_space<vmem>>, vector<1x1x128xf32>
    %111 = vector.shape_cast %110 : vector<1x1x128xf32> to vector<1x128xf32>
    %112 = vector.broadcast %111 : vector<1x128xf32> to vector<32x128xf32>
    %113 = arith.addf %109, %112 : vector<32x128xf32>
    %c0_102 = arith.constant 0 : index
    %c0_103 = arith.constant 0 : index
    %c0_104 = arith.constant 0 : index
    %114 = vector.load %arg4[%c0_102, %c0_103, %c0_104] : memref<4x1x128xf32, #tpu.memory_space<vmem>>, vector<1x1x128xf32>
    %115 = vector.shape_cast %114 : vector<1x1x128xf32> to vector<1x128xf32>
    %c0_105 = arith.constant 0 : index
    %c0_106 = arith.constant 0 : index
    %c0_107 = arith.constant 0 : index
    %116 = vector.load %arg5[%c0_105, %c0_106, %c0_107] : memref<4x1x128xf32, #tpu.memory_space<vmem>>, vector<1x1x128xf32>
    %117 = vector.shape_cast %116 : vector<1x1x128xf32> to vector<1x128xf32>
    %cst_108 = arith.constant dense<0.000000e+00> : vector<128xf32>
    %118 = vector.multi_reduction <add>, %113, %cst_108 [0] : vector<32x128xf32> to vector<128xf32>
    %119 = vector.shape_cast %118 : vector<128xf32> to vector<1x128xf32>
    %cst_109 = arith.constant 3.125000e-02 : f32
    %120 = vector.broadcast %cst_109 : f32 to vector<1x128xf32>
    %121 = arith.mulf %119, %120 : vector<1x128xf32>
    %122 = arith.mulf %113, %113 : vector<32x128xf32>
    %cst_110 = arith.constant dense<0.000000e+00> : vector<128xf32>
    %123 = vector.multi_reduction <add>, %122, %cst_110 [0] : vector<32x128xf32> to vector<128xf32>
    %124 = vector.shape_cast %123 : vector<128xf32> to vector<1x128xf32>
    %cst_111 = arith.constant 3.125000e-02 : f32
    %125 = vector.broadcast %cst_111 : f32 to vector<1x128xf32>
    %126 = arith.mulf %124, %125 : vector<1x128xf32>
    %127 = arith.mulf %121, %121 : vector<1x128xf32>
    %128 = arith.subf %126, %127 : vector<1x128xf32>
    %cst_112 = arith.constant 0.000000e+00 : f32
    %129 = vector.broadcast %cst_112 : f32 to vector<1x128xf32>
    %130 = arith.maximumf %128, %129 : vector<1x128xf32>
    %cst_113 = arith.constant 9.99999974E-6 : f32
    %131 = vector.broadcast %cst_113 : f32 to vector<1x128xf32>
    %132 = arith.addf %130, %131 : vector<1x128xf32>
    %133 = math.rsqrt %132 : vector<1x128xf32>
    %134 = arith.mulf %115, %133 : vector<1x128xf32>
    %135 = arith.mulf %121, %134 : vector<1x128xf32>
    %136 = arith.subf %117, %135 : vector<1x128xf32>
    %137 = vector.broadcast %134 : vector<1x128xf32> to vector<32x128xf32>
    %138 = arith.mulf %113, %137 : vector<32x128xf32>
    %139 = vector.broadcast %136 : vector<1x128xf32> to vector<32x128xf32>
    %140 = arith.addf %138, %139 : vector<32x128xf32>
    %cst_114 = arith.constant 0.000000e+00 : f32
    %141 = vector.broadcast %cst_114 : f32 to vector<32x128xf32>
    %142 = arith.maximumf %140, %141 : vector<32x128xf32>
    %c0_115 = arith.constant 0 : index
    %c0_116 = arith.constant 0 : index
    %c0_117 = arith.constant 0 : index
    %c0_118 = arith.constant 0 : index
    %143 = vector.load %arg2[%c0_115, %c0_116, %c0_117, %c0_118] : memref<3x3x10x128xf32, #tpu.memory_space<vmem>>, vector<1x1x10x128xf32>
    %144 = vector.shape_cast %143 : vector<1x1x10x128xf32> to vector<10x128xf32>
    %c0_119 = arith.constant 0 : index
    %c1_120 = arith.constant 1 : index
    %c0_121 = arith.constant 0 : index
    %c0_122 = arith.constant 0 : index
    %145 = vector.load %arg2[%c0_119, %c1_120, %c0_121, %c0_122] : memref<3x3x10x128xf32, #tpu.memory_space<vmem>>, vector<1x1x10x128xf32>
    %146 = vector.shape_cast %145 : vector<1x1x10x128xf32> to vector<10x128xf32>
    %c0_123 = arith.constant 0 : index
    %c2_124 = arith.constant 2 : index
    %c0_125 = arith.constant 0 : index
    %c0_126 = arith.constant 0 : index
    %147 = vector.load %arg2[%c0_123, %c2_124, %c0_125, %c0_126] : memref<3x3x10x128xf32, #tpu.memory_space<vmem>>, vector<1x1x10x128xf32>
    %148 = vector.shape_cast %147 : vector<1x1x10x128xf32> to vector<10x128xf32>
    %c1_127 = arith.constant 1 : index
    %c0_128 = arith.constant 0 : index
    %c0_129 = arith.constant 0 : index
    %149 = vector.load %arg3[%c1_127, %c0_128, %c0_129] : memref<4x1x128xf32, #tpu.memory_space<vmem>>, vector<1x1x128xf32>
    %150 = vector.shape_cast %149 : vector<1x1x128xf32> to vector<1x128xf32>
    %c1_i32_130 = arith.constant 1 : i32
    %151 = tpu.dynamic_rotate %142 by %c1_i32_130 dim 0 : vector<32x128xf32>, i32 -> vector<32x128xf32>
    %cst_131 = arith.constant 0.000000e+00 : f32
    %152 = vector.broadcast %cst_131 : f32 to vector<32x128xf32>
    %153 = arith.select %83, %151, %152 : vector<32x128xi1>, vector<32x128xf32>
    %154 = vector.extract_strided_slice %153 {offsets = [0, 0], sizes = [32, 10], strides = [1, 1]} : vector<32x128xf32> to vector<32x10xf32>
    %155 = vector.extract_strided_slice %142 {offsets = [0, 0], sizes = [32, 10], strides = [1, 1]} : vector<32x128xf32> to vector<32x10xf32>
    %c31_i32_132 = arith.constant 31 : i32
    %156 = tpu.dynamic_rotate %142 by %c31_i32_132 dim 0 : vector<32x128xf32>, i32 -> vector<32x128xf32>
    %cst_133 = arith.constant 0.000000e+00 : f32
    %157 = vector.broadcast %cst_133 : f32 to vector<32x128xf32>
    %158 = arith.select %85, %156, %157 : vector<32x128xi1>, vector<32x128xf32>
    %159 = vector.extract_strided_slice %158 {offsets = [0, 0], sizes = [32, 10], strides = [1, 1]} : vector<32x128xf32> to vector<32x10xf32>
    %cst_134 = arith.constant dense<0.000000e+00> : vector<32x128xf32>
    %160 = tpu.matmul %154, %144, %cst_134 {dimension_numbers = #tpu.dot_dimension_numbers<[1], [0], [0], [1], [0, 0, 1, 1], [], []>} : vector<32x10xf32>, vector<10x128xf32>, vector<32x128xf32> -> vector<32x128xf32>
    %cst_135 = arith.constant dense<0.000000e+00> : vector<32x128xf32>
    %161 = tpu.matmul %155, %146, %cst_135 {dimension_numbers = #tpu.dot_dimension_numbers<[1], [0], [0], [1], [0, 0, 1, 1], [], []>} : vector<32x10xf32>, vector<10x128xf32>, vector<32x128xf32> -> vector<32x128xf32>
    %162 = arith.addf %160, %161 : vector<32x128xf32>
    %cst_136 = arith.constant dense<0.000000e+00> : vector<32x128xf32>
    %163 = tpu.matmul %159, %148, %cst_136 {dimension_numbers = #tpu.dot_dimension_numbers<[1], [0], [0], [1], [0, 0, 1, 1], [], []>} : vector<32x10xf32>, vector<10x128xf32>, vector<32x128xf32> -> vector<32x128xf32>
    %164 = arith.addf %162, %163 : vector<32x128xf32>
    %165 = vector.broadcast %150 : vector<1x128xf32> to vector<32x128xf32>
    %166 = arith.addf %164, %165 : vector<32x128xf32>
    %c1_137 = arith.constant 1 : index
    %c0_138 = arith.constant 0 : index
    %c0_139 = arith.constant 0 : index
    %167 = vector.load %arg4[%c1_137, %c0_138, %c0_139] : memref<4x1x128xf32, #tpu.memory_space<vmem>>, vector<1x1x128xf32>
    %168 = vector.shape_cast %167 : vector<1x1x128xf32> to vector<1x128xf32>
    %c1_140 = arith.constant 1 : index
    %c0_141 = arith.constant 0 : index
    %c0_142 = arith.constant 0 : index
    %169 = vector.load %arg5[%c1_140, %c0_141, %c0_142] : memref<4x1x128xf32, #tpu.memory_space<vmem>>, vector<1x1x128xf32>
    %170 = vector.shape_cast %169 : vector<1x1x128xf32> to vector<1x128xf32>
    %cst_143 = arith.constant dense<0.000000e+00> : vector<128xf32>
    %171 = vector.multi_reduction <add>, %166, %cst_143 [0] : vector<32x128xf32> to vector<128xf32>
    %172 = vector.shape_cast %171 : vector<128xf32> to vector<1x128xf32>
    %cst_144 = arith.constant 3.125000e-02 : f32
    %173 = vector.broadcast %cst_144 : f32 to vector<1x128xf32>
    %174 = arith.mulf %172, %173 : vector<1x128xf32>
    %175 = arith.mulf %166, %166 : vector<32x128xf32>
    %cst_145 = arith.constant dense<0.000000e+00> : vector<128xf32>
    %176 = vector.multi_reduction <add>, %175, %cst_145 [0] : vector<32x128xf32> to vector<128xf32>
    %177 = vector.shape_cast %176 : vector<128xf32> to vector<1x128xf32>
    %cst_146 = arith.constant 3.125000e-02 : f32
    %178 = vector.broadcast %cst_146 : f32 to vector<1x128xf32>
    %179 = arith.mulf %177, %178 : vector<1x128xf32>
    %180 = arith.mulf %174, %174 : vector<1x128xf32>
    %181 = arith.subf %179, %180 : vector<1x128xf32>
    %cst_147 = arith.constant 0.000000e+00 : f32
    %182 = vector.broadcast %cst_147 : f32 to vector<1x128xf32>
    %183 = arith.maximumf %181, %182 : vector<1x128xf32>
    %cst_148 = arith.constant 9.99999974E-6 : f32
    %184 = vector.broadcast %cst_148 : f32 to vector<1x128xf32>
    %185 = arith.addf %183, %184 : vector<1x128xf32>
    %186 = math.rsqrt %185 : vector<1x128xf32>
    %187 = arith.mulf %168, %186 : vector<1x128xf32>
    %188 = arith.mulf %174, %187 : vector<1x128xf32>
    %189 = arith.subf %170, %188 : vector<1x128xf32>
    %190 = vector.broadcast %187 : vector<1x128xf32> to vector<32x128xf32>
    %191 = arith.mulf %166, %190 : vector<32x128xf32>
    %192 = vector.broadcast %189 : vector<1x128xf32> to vector<32x128xf32>
    %193 = arith.addf %191, %192 : vector<32x128xf32>
    %cst_149 = arith.constant 0.000000e+00 : f32
    %194 = vector.broadcast %cst_149 : f32 to vector<32x128xf32>
    %195 = arith.maximumf %193, %194 : vector<32x128xf32>
    %c1_150 = arith.constant 1 : index
    %c0_151 = arith.constant 0 : index
    %c0_152 = arith.constant 0 : index
    %c0_153 = arith.constant 0 : index
    %196 = vector.load %arg2[%c1_150, %c0_151, %c0_152, %c0_153] : memref<3x3x10x128xf32, #tpu.memory_space<vmem>>, vector<1x1x10x128xf32>
    %197 = vector.shape_cast %196 : vector<1x1x10x128xf32> to vector<10x128xf32>
    %c1_154 = arith.constant 1 : index
    %c1_155 = arith.constant 1 : index
    %c0_156 = arith.constant 0 : index
    %c0_157 = arith.constant 0 : index
    %198 = vector.load %arg2[%c1_154, %c1_155, %c0_156, %c0_157] : memref<3x3x10x128xf32, #tpu.memory_space<vmem>>, vector<1x1x10x128xf32>
    %199 = vector.shape_cast %198 : vector<1x1x10x128xf32> to vector<10x128xf32>
    %c1_158 = arith.constant 1 : index
    %c2_159 = arith.constant 2 : index
    %c0_160 = arith.constant 0 : index
    %c0_161 = arith.constant 0 : index
    %200 = vector.load %arg2[%c1_158, %c2_159, %c0_160, %c0_161] : memref<3x3x10x128xf32, #tpu.memory_space<vmem>>, vector<1x1x10x128xf32>
    %201 = vector.shape_cast %200 : vector<1x1x10x128xf32> to vector<10x128xf32>
    %c2_162 = arith.constant 2 : index
    %c0_163 = arith.constant 0 : index
    %c0_164 = arith.constant 0 : index
    %202 = vector.load %arg3[%c2_162, %c0_163, %c0_164] : memref<4x1x128xf32, #tpu.memory_space<vmem>>, vector<1x1x128xf32>
    %203 = vector.shape_cast %202 : vector<1x1x128xf32> to vector<1x128xf32>
    %c1_i32_165 = arith.constant 1 : i32
    %204 = tpu.dynamic_rotate %195 by %c1_i32_165 dim 0 : vector<32x128xf32>, i32 -> vector<32x128xf32>
    %cst_166 = arith.constant 0.000000e+00 : f32
    %205 = vector.broadcast %cst_166 : f32 to vector<32x128xf32>
    %206 = arith.select %83, %204, %205 : vector<32x128xi1>, vector<32x128xf32>
    %207 = vector.extract_strided_slice %206 {offsets = [0, 0], sizes = [32, 10], strides = [1, 1]} : vector<32x128xf32> to vector<32x10xf32>
    %208 = vector.extract_strided_slice %195 {offsets = [0, 0], sizes = [32, 10], strides = [1, 1]} : vector<32x128xf32> to vector<32x10xf32>
    %c31_i32_167 = arith.constant 31 : i32
    %209 = tpu.dynamic_rotate %195 by %c31_i32_167 dim 0 : vector<32x128xf32>, i32 -> vector<32x128xf32>
    %cst_168 = arith.constant 0.000000e+00 : f32
    %210 = vector.broadcast %cst_168 : f32 to vector<32x128xf32>
    %211 = arith.select %85, %209, %210 : vector<32x128xi1>, vector<32x128xf32>
    %212 = vector.extract_strided_slice %211 {offsets = [0, 0], sizes = [32, 10], strides = [1, 1]} : vector<32x128xf32> to vector<32x10xf32>
    %cst_169 = arith.constant dense<0.000000e+00> : vector<32x128xf32>
    %213 = tpu.matmul %207, %197, %cst_169 {dimension_numbers = #tpu.dot_dimension_numbers<[1], [0], [0], [1], [0, 0, 1, 1], [], []>} : vector<32x10xf32>, vector<10x128xf32>, vector<32x128xf32> -> vector<32x128xf32>
    %cst_170 = arith.constant dense<0.000000e+00> : vector<32x128xf32>
    %214 = tpu.matmul %208, %199, %cst_170 {dimension_numbers = #tpu.dot_dimension_numbers<[1], [0], [0], [1], [0, 0, 1, 1], [], []>} : vector<32x10xf32>, vector<10x128xf32>, vector<32x128xf32> -> vector<32x128xf32>
    %215 = arith.addf %213, %214 : vector<32x128xf32>
    %cst_171 = arith.constant dense<0.000000e+00> : vector<32x128xf32>
    %216 = tpu.matmul %212, %201, %cst_171 {dimension_numbers = #tpu.dot_dimension_numbers<[1], [0], [0], [1], [0, 0, 1, 1], [], []>} : vector<32x10xf32>, vector<10x128xf32>, vector<32x128xf32> -> vector<32x128xf32>
    %217 = arith.addf %215, %216 : vector<32x128xf32>
    %218 = vector.broadcast %203 : vector<1x128xf32> to vector<32x128xf32>
    %219 = arith.addf %217, %218 : vector<32x128xf32>
    %c2_172 = arith.constant 2 : index
    %c0_173 = arith.constant 0 : index
    %c0_174 = arith.constant 0 : index
    %220 = vector.load %arg4[%c2_172, %c0_173, %c0_174] : memref<4x1x128xf32, #tpu.memory_space<vmem>>, vector<1x1x128xf32>
    %221 = vector.shape_cast %220 : vector<1x1x128xf32> to vector<1x128xf32>
    %c2_175 = arith.constant 2 : index
    %c0_176 = arith.constant 0 : index
    %c0_177 = arith.constant 0 : index
    %222 = vector.load %arg5[%c2_175, %c0_176, %c0_177] : memref<4x1x128xf32, #tpu.memory_space<vmem>>, vector<1x1x128xf32>
    %223 = vector.shape_cast %222 : vector<1x1x128xf32> to vector<1x128xf32>
    %cst_178 = arith.constant dense<0.000000e+00> : vector<128xf32>
    %224 = vector.multi_reduction <add>, %219, %cst_178 [0] : vector<32x128xf32> to vector<128xf32>
    %225 = vector.shape_cast %224 : vector<128xf32> to vector<1x128xf32>
    %cst_179 = arith.constant 3.125000e-02 : f32
    %226 = vector.broadcast %cst_179 : f32 to vector<1x128xf32>
    %227 = arith.mulf %225, %226 : vector<1x128xf32>
    %228 = arith.mulf %219, %219 : vector<32x128xf32>
    %cst_180 = arith.constant dense<0.000000e+00> : vector<128xf32>
    %229 = vector.multi_reduction <add>, %228, %cst_180 [0] : vector<32x128xf32> to vector<128xf32>
    %230 = vector.shape_cast %229 : vector<128xf32> to vector<1x128xf32>
    %cst_181 = arith.constant 3.125000e-02 : f32
    %231 = vector.broadcast %cst_181 : f32 to vector<1x128xf32>
    %232 = arith.mulf %230, %231 : vector<1x128xf32>
    %233 = arith.mulf %227, %227 : vector<1x128xf32>
    %234 = arith.subf %232, %233 : vector<1x128xf32>
    %cst_182 = arith.constant 0.000000e+00 : f32
    %235 = vector.broadcast %cst_182 : f32 to vector<1x128xf32>
    %236 = arith.maximumf %234, %235 : vector<1x128xf32>
    %cst_183 = arith.constant 9.99999974E-6 : f32
    %237 = vector.broadcast %cst_183 : f32 to vector<1x128xf32>
    %238 = arith.addf %236, %237 : vector<1x128xf32>
    %239 = math.rsqrt %238 : vector<1x128xf32>
    %240 = arith.mulf %221, %239 : vector<1x128xf32>
    %241 = arith.mulf %227, %240 : vector<1x128xf32>
    %242 = arith.subf %223, %241 : vector<1x128xf32>
    %243 = vector.broadcast %240 : vector<1x128xf32> to vector<32x128xf32>
    %244 = arith.mulf %219, %243 : vector<32x128xf32>
    %245 = vector.broadcast %242 : vector<1x128xf32> to vector<32x128xf32>
    %246 = arith.addf %244, %245 : vector<32x128xf32>
    %cst_184 = arith.constant 0.000000e+00 : f32
    %247 = vector.broadcast %cst_184 : f32 to vector<32x128xf32>
    %248 = arith.maximumf %246, %247 : vector<32x128xf32>
    %249 = arith.addf %248, %142 : vector<32x128xf32>
    %c2_185 = arith.constant 2 : index
    %c0_186 = arith.constant 0 : index
    %c0_187 = arith.constant 0 : index
    %c0_188 = arith.constant 0 : index
    %250 = vector.load %arg2[%c2_185, %c0_186, %c0_187, %c0_188] : memref<3x3x10x128xf32, #tpu.memory_space<vmem>>, vector<1x1x10x128xf32>
    %251 = vector.shape_cast %250 : vector<1x1x10x128xf32> to vector<10x128xf32>
    %c2_189 = arith.constant 2 : index
    %c1_190 = arith.constant 1 : index
    %c0_191 = arith.constant 0 : index
    %c0_192 = arith.constant 0 : index
    %252 = vector.load %arg2[%c2_189, %c1_190, %c0_191, %c0_192] : memref<3x3x10x128xf32, #tpu.memory_space<vmem>>, vector<1x1x10x128xf32>
    %253 = vector.shape_cast %252 : vector<1x1x10x128xf32> to vector<10x128xf32>
    %c2_193 = arith.constant 2 : index
    %c2_194 = arith.constant 2 : index
    %c0_195 = arith.constant 0 : index
    %c0_196 = arith.constant 0 : index
    %254 = vector.load %arg2[%c2_193, %c2_194, %c0_195, %c0_196] : memref<3x3x10x128xf32, #tpu.memory_space<vmem>>, vector<1x1x10x128xf32>
    %255 = vector.shape_cast %254 : vector<1x1x10x128xf32> to vector<10x128xf32>
    %c3_197 = arith.constant 3 : index
    %c0_198 = arith.constant 0 : index
    %c0_199 = arith.constant 0 : index
    %256 = vector.load %arg3[%c3_197, %c0_198, %c0_199] : memref<4x1x128xf32, #tpu.memory_space<vmem>>, vector<1x1x128xf32>
    %257 = vector.shape_cast %256 : vector<1x1x128xf32> to vector<1x128xf32>
    %c1_i32_200 = arith.constant 1 : i32
    %258 = tpu.dynamic_rotate %249 by %c1_i32_200 dim 0 : vector<32x128xf32>, i32 -> vector<32x128xf32>
    %cst_201 = arith.constant 0.000000e+00 : f32
    %259 = vector.broadcast %cst_201 : f32 to vector<32x128xf32>
    %260 = arith.select %83, %258, %259 : vector<32x128xi1>, vector<32x128xf32>
    %261 = vector.extract_strided_slice %260 {offsets = [0, 0], sizes = [32, 10], strides = [1, 1]} : vector<32x128xf32> to vector<32x10xf32>
    %262 = vector.extract_strided_slice %249 {offsets = [0, 0], sizes = [32, 10], strides = [1, 1]} : vector<32x128xf32> to vector<32x10xf32>
    %c31_i32_202 = arith.constant 31 : i32
    %263 = tpu.dynamic_rotate %249 by %c31_i32_202 dim 0 : vector<32x128xf32>, i32 -> vector<32x128xf32>
    %cst_203 = arith.constant 0.000000e+00 : f32
    %264 = vector.broadcast %cst_203 : f32 to vector<32x128xf32>
    %265 = arith.select %85, %263, %264 : vector<32x128xi1>, vector<32x128xf32>
    %266 = vector.extract_strided_slice %265 {offsets = [0, 0], sizes = [32, 10], strides = [1, 1]} : vector<32x128xf32> to vector<32x10xf32>
    %cst_204 = arith.constant dense<0.000000e+00> : vector<32x128xf32>
    %267 = tpu.matmul %261, %251, %cst_204 {dimension_numbers = #tpu.dot_dimension_numbers<[1], [0], [0], [1], [0, 0, 1, 1], [], []>} : vector<32x10xf32>, vector<10x128xf32>, vector<32x128xf32> -> vector<32x128xf32>
    %cst_205 = arith.constant dense<0.000000e+00> : vector<32x128xf32>
    %268 = tpu.matmul %262, %253, %cst_205 {dimension_numbers = #tpu.dot_dimension_numbers<[1], [0], [0], [1], [0, 0, 1, 1], [], []>} : vector<32x10xf32>, vector<10x128xf32>, vector<32x128xf32> -> vector<32x128xf32>
    %269 = arith.addf %267, %268 : vector<32x128xf32>
    %cst_206 = arith.constant dense<0.000000e+00> : vector<32x128xf32>
    %270 = tpu.matmul %266, %255, %cst_206 {dimension_numbers = #tpu.dot_dimension_numbers<[1], [0], [0], [1], [0, 0, 1, 1], [], []>} : vector<32x10xf32>, vector<10x128xf32>, vector<32x128xf32> -> vector<32x128xf32>
    %271 = arith.addf %269, %270 : vector<32x128xf32>
    %272 = vector.broadcast %257 : vector<1x128xf32> to vector<32x128xf32>
    %273 = arith.addf %271, %272 : vector<32x128xf32>
    %c3_207 = arith.constant 3 : index
    %c0_208 = arith.constant 0 : index
    %c0_209 = arith.constant 0 : index
    %274 = vector.load %arg4[%c3_207, %c0_208, %c0_209] : memref<4x1x128xf32, #tpu.memory_space<vmem>>, vector<1x1x128xf32>
    %275 = vector.shape_cast %274 : vector<1x1x128xf32> to vector<1x128xf32>
    %c3_210 = arith.constant 3 : index
    %c0_211 = arith.constant 0 : index
    %c0_212 = arith.constant 0 : index
    %276 = vector.load %arg5[%c3_210, %c0_211, %c0_212] : memref<4x1x128xf32, #tpu.memory_space<vmem>>, vector<1x1x128xf32>
    %277 = vector.shape_cast %276 : vector<1x1x128xf32> to vector<1x128xf32>
    %cst_213 = arith.constant dense<0.000000e+00> : vector<128xf32>
    %278 = vector.multi_reduction <add>, %273, %cst_213 [0] : vector<32x128xf32> to vector<128xf32>
    %279 = vector.shape_cast %278 : vector<128xf32> to vector<1x128xf32>
    %cst_214 = arith.constant 3.125000e-02 : f32
    %280 = vector.broadcast %cst_214 : f32 to vector<1x128xf32>
    %281 = arith.mulf %279, %280 : vector<1x128xf32>
    %282 = arith.mulf %273, %273 : vector<32x128xf32>
    %cst_215 = arith.constant dense<0.000000e+00> : vector<128xf32>
    %283 = vector.multi_reduction <add>, %282, %cst_215 [0] : vector<32x128xf32> to vector<128xf32>
    %284 = vector.shape_cast %283 : vector<128xf32> to vector<1x128xf32>
    %cst_216 = arith.constant 3.125000e-02 : f32
    %285 = vector.broadcast %cst_216 : f32 to vector<1x128xf32>
    %286 = arith.mulf %284, %285 : vector<1x128xf32>
    %287 = arith.mulf %281, %281 : vector<1x128xf32>
    %288 = arith.subf %286, %287 : vector<1x128xf32>
    %cst_217 = arith.constant 0.000000e+00 : f32
    %289 = vector.broadcast %cst_217 : f32 to vector<1x128xf32>
    %290 = arith.maximumf %288, %289 : vector<1x128xf32>
    %cst_218 = arith.constant 9.99999974E-6 : f32
    %291 = vector.broadcast %cst_218 : f32 to vector<1x128xf32>
    %292 = arith.addf %290, %291 : vector<1x128xf32>
    %293 = math.rsqrt %292 : vector<1x128xf32>
    %294 = arith.mulf %275, %293 : vector<1x128xf32>
    %295 = arith.mulf %281, %294 : vector<1x128xf32>
    %296 = arith.subf %277, %295 : vector<1x128xf32>
    %297 = vector.broadcast %294 : vector<1x128xf32> to vector<32x128xf32>
    %298 = arith.mulf %273, %297 : vector<32x128xf32>
    %299 = vector.broadcast %296 : vector<1x128xf32> to vector<32x128xf32>
    %300 = arith.addf %298, %299 : vector<32x128xf32>
    %cst_219 = arith.constant 0.000000e+00 : f32
    %301 = vector.broadcast %cst_219 : f32 to vector<32x128xf32>
    %302 = arith.maximumf %300, %301 : vector<32x128xf32>
    %303 = vector.shape_cast %302 : vector<32x128xf32> to vector<2x16x128xf32>
    %304 = vector.extract_strided_slice %303 {offsets = [0, 0, 0], sizes = [2, 1, 128], strides = [1, 1, 1]} : vector<2x16x128xf32> to vector<2x1x128xf32>
    %305 = vector.shape_cast %304 : vector<2x1x128xf32> to vector<2x128xf32>
    %306 = vector.extract_strided_slice %303 {offsets = [0, 1, 0], sizes = [2, 1, 128], strides = [1, 1, 1]} : vector<2x16x128xf32> to vector<2x1x128xf32>
    %307 = vector.shape_cast %306 : vector<2x1x128xf32> to vector<2x128xf32>
    %308 = vector.extract_strided_slice %303 {offsets = [0, 2, 0], sizes = [2, 1, 128], strides = [1, 1, 1]} : vector<2x16x128xf32> to vector<2x1x128xf32>
    %309 = vector.shape_cast %308 : vector<2x1x128xf32> to vector<2x128xf32>
    %310 = vector.extract_strided_slice %303 {offsets = [0, 3, 0], sizes = [2, 1, 128], strides = [1, 1, 1]} : vector<2x16x128xf32> to vector<2x1x128xf32>
    %311 = vector.shape_cast %310 : vector<2x1x128xf32> to vector<2x128xf32>
    %312 = vector.extract_strided_slice %303 {offsets = [0, 4, 0], sizes = [2, 1, 128], strides = [1, 1, 1]} : vector<2x16x128xf32> to vector<2x1x128xf32>
    %313 = vector.shape_cast %312 : vector<2x1x128xf32> to vector<2x128xf32>
    %314 = vector.extract_strided_slice %303 {offsets = [0, 5, 0], sizes = [2, 1, 128], strides = [1, 1, 1]} : vector<2x16x128xf32> to vector<2x1x128xf32>
    %315 = vector.shape_cast %314 : vector<2x1x128xf32> to vector<2x128xf32>
    %316 = vector.extract_strided_slice %303 {offsets = [0, 6, 0], sizes = [2, 1, 128], strides = [1, 1, 1]} : vector<2x16x128xf32> to vector<2x1x128xf32>
    %317 = vector.shape_cast %316 : vector<2x1x128xf32> to vector<2x128xf32>
    %318 = vector.extract_strided_slice %303 {offsets = [0, 7, 0], sizes = [2, 1, 128], strides = [1, 1, 1]} : vector<2x16x128xf32> to vector<2x1x128xf32>
    %319 = vector.shape_cast %318 : vector<2x1x128xf32> to vector<2x128xf32>
    %320 = vector.extract_strided_slice %303 {offsets = [0, 8, 0], sizes = [2, 1, 128], strides = [1, 1, 1]} : vector<2x16x128xf32> to vector<2x1x128xf32>
    %321 = vector.shape_cast %320 : vector<2x1x128xf32> to vector<2x128xf32>
    %322 = vector.extract_strided_slice %303 {offsets = [0, 9, 0], sizes = [2, 1, 128], strides = [1, 1, 1]} : vector<2x16x128xf32> to vector<2x1x128xf32>
    %323 = vector.shape_cast %322 : vector<2x1x128xf32> to vector<2x128xf32>
    %324 = vector.extract_strided_slice %303 {offsets = [0, 10, 0], sizes = [2, 1, 128], strides = [1, 1, 1]} : vector<2x16x128xf32> to vector<2x1x128xf32>
    %325 = vector.shape_cast %324 : vector<2x1x128xf32> to vector<2x128xf32>
    %326 = vector.extract_strided_slice %303 {offsets = [0, 11, 0], sizes = [2, 1, 128], strides = [1, 1, 1]} : vector<2x16x128xf32> to vector<2x1x128xf32>
    %327 = vector.shape_cast %326 : vector<2x1x128xf32> to vector<2x128xf32>
    %328 = vector.extract_strided_slice %303 {offsets = [0, 12, 0], sizes = [2, 1, 128], strides = [1, 1, 1]} : vector<2x16x128xf32> to vector<2x1x128xf32>
    %329 = vector.shape_cast %328 : vector<2x1x128xf32> to vector<2x128xf32>
    %330 = vector.extract_strided_slice %303 {offsets = [0, 13, 0], sizes = [2, 1, 128], strides = [1, 1, 1]} : vector<2x16x128xf32> to vector<2x1x128xf32>
    %331 = vector.shape_cast %330 : vector<2x1x128xf32> to vector<2x128xf32>
    %332 = vector.extract_strided_slice %303 {offsets = [0, 14, 0], sizes = [2, 1, 128], strides = [1, 1, 1]} : vector<2x16x128xf32> to vector<2x1x128xf32>
    %333 = vector.shape_cast %332 : vector<2x1x128xf32> to vector<2x128xf32>
    %334 = vector.extract_strided_slice %303 {offsets = [0, 15, 0], sizes = [2, 1, 128], strides = [1, 1, 1]} : vector<2x16x128xf32> to vector<2x1x128xf32>
    %335 = vector.shape_cast %334 : vector<2x1x128xf32> to vector<2x128xf32>
    %336 = tpu.concatenate %305, %307, %309, %311, %313, %315, %317, %319, %321, %323, %325, %327, %329, %331, %333, %335 in 1 : vector<2x128xf32>, vector<2x128xf32>, vector<2x128xf32>, vector<2x128xf32>, vector<2x128xf32>, vector<2x128xf32>, vector<2x128xf32>, vector<2x128xf32>, vector<2x128xf32>, vector<2x128xf32>, vector<2x128xf32>, vector<2x128xf32>, vector<2x128xf32>, vector<2x128xf32>, vector<2x128xf32>, vector<2x128xf32> -> vector<2x2048xf32>
    %c0_220 = arith.constant 0 : index
    %c0_221 = arith.constant 0 : index
    %337 = vector.load %arg13[%c0_220, %c0_221] : memref<2048x256xf32, #tpu.memory_space<vmem>>, vector<2048x256xf32>
    %cst_222 = arith.constant dense<0.000000e+00> : vector<2x256xf32>
    %338 = tpu.matmul %336, %337, %cst_222 {dimension_numbers = #tpu.dot_dimension_numbers<[1], [0], [0], [1], [0, 0, 1, 1], [], []>} : vector<2x2048xf32>, vector<2048x256xf32>, vector<2x256xf32> -> vector<2x256xf32>
    %c0_223 = arith.constant 0 : index
    %c0_224 = arith.constant 0 : index
    %339 = vector.load %arg7[%c0_223, %c0_224] : memref<1x256xf32, #tpu.memory_space<vmem>>, vector<1x256xf32>
    %340 = vector.broadcast %339 : vector<1x256xf32> to vector<2x256xf32>
    %341 = arith.addf %338, %340 : vector<2x256xf32>
    %c0_225 = arith.constant 0 : index
    %c0_226 = arith.constant 0 : index
    %342 = vector.load %arg8[%c0_225, %c0_226] : memref<1x256xf32, #tpu.memory_space<vmem>>, vector<1x256xf32>
    %c0_227 = arith.constant 0 : index
    %c0_228 = arith.constant 0 : index
    %343 = vector.load %arg9[%c0_227, %c0_228] : memref<1x256xf32, #tpu.memory_space<vmem>>, vector<1x256xf32>
    %cst_229 = arith.constant dense<0.000000e+00> : vector<256xf32>
    %344 = vector.multi_reduction <add>, %341, %cst_229 [0] : vector<2x256xf32> to vector<256xf32>
    %345 = vector.shape_cast %344 : vector<256xf32> to vector<1x256xf32>
    %cst_230 = arith.constant 5.000000e-01 : f32
    %346 = vector.broadcast %cst_230 : f32 to vector<1x256xf32>
    %347 = arith.mulf %345, %346 : vector<1x256xf32>
    %348 = arith.mulf %341, %341 : vector<2x256xf32>
    %cst_231 = arith.constant dense<0.000000e+00> : vector<256xf32>
    %349 = vector.multi_reduction <add>, %348, %cst_231 [0] : vector<2x256xf32> to vector<256xf32>
    %350 = vector.shape_cast %349 : vector<256xf32> to vector<1x256xf32>
    %cst_232 = arith.constant 5.000000e-01 : f32
    %351 = vector.broadcast %cst_232 : f32 to vector<1x256xf32>
    %352 = arith.mulf %350, %351 : vector<1x256xf32>
    %353 = arith.mulf %347, %347 : vector<1x256xf32>
    %354 = arith.subf %352, %353 : vector<1x256xf32>
    %cst_233 = arith.constant 0.000000e+00 : f32
    %355 = vector.broadcast %cst_233 : f32 to vector<1x256xf32>
    %356 = arith.maximumf %354, %355 : vector<1x256xf32>
    %cst_234 = arith.constant 9.99999974E-6 : f32
    %357 = vector.broadcast %cst_234 : f32 to vector<1x256xf32>
    %358 = arith.addf %356, %357 : vector<1x256xf32>
    %359 = math.rsqrt %358 : vector<1x256xf32>
    %360 = arith.mulf %342, %359 : vector<1x256xf32>
    %361 = arith.mulf %347, %360 : vector<1x256xf32>
    %362 = arith.subf %343, %361 : vector<1x256xf32>
    %363 = vector.broadcast %360 : vector<1x256xf32> to vector<2x256xf32>
    %364 = arith.mulf %341, %363 : vector<2x256xf32>
    %365 = vector.broadcast %362 : vector<1x256xf32> to vector<2x256xf32>
    %366 = arith.addf %364, %365 : vector<2x256xf32>
    %cst_235 = arith.constant 0.000000e+00 : f32
    %367 = vector.broadcast %cst_235 : f32 to vector<2x256xf32>
    %368 = arith.maximumf %366, %367 : vector<2x256xf32>
    %c0_236 = arith.constant 0 : index
    %c0_237 = arith.constant 0 : index
    %369 = vector.load %arg10[%c0_236, %c0_237] : memref<256x128xf32, #tpu.memory_space<vmem>>, vector<256x128xf32>
    %cst_238 = arith.constant dense<0.000000e+00> : vector<2x128xf32>
    %370 = tpu.matmul %368, %369, %cst_238 {dimension_numbers = #tpu.dot_dimension_numbers<[1], [0], [0], [1], [0, 0, 1, 1], [], []>} : vector<2x256xf32>, vector<256x128xf32>, vector<2x128xf32> -> vector<2x128xf32>
    %c0_239 = arith.constant 0 : index
    %c0_240 = arith.constant 0 : index
    %371 = vector.load %arg11[%c0_239, %c0_240] : memref<1x128xf32, #tpu.memory_space<vmem>>, vector<1x128xf32>
    %372 = vector.broadcast %371 : vector<1x128xf32> to vector<2x128xf32>
    %373 = arith.addf %370, %372 : vector<2x128xf32>
    %c0_241 = arith.constant 0 : index
    %c0_242 = arith.constant 0 : index
    %374 = vector.load %arg12[%c0_241, %c0_242] : memref<2x128xf32, #tpu.memory_space<vmem>>, vector<2x128xf32>
    tpu.vector_store %arg12[%c0_241, %c0_242], %373 {strides = array<i32>} : memref<2x128xf32, #tpu.memory_space<vmem>>, vector<2x128xf32>,
    return
  }
}

</mosaic_0001>

<bundles_post_ra>
// kernel: tpu_custom_call.1
= control target key start
LH: loop header
LB: loop body
LE: loop exit
PB: predicated region body
PF: predicated region fallthrough
CT: control target
= control target key end

     0   :  { %v3241_v2 = vmov 0   ;;  %s4711_s0 = inlined_call_operand.vmem [shape: f32[32,1], index: 0, kind: input, shape index: {}]   ;;  %s4712_s1 = inlined_call_operand.vmem [shape: f32[3,1,128], index: 1, kind: input, shape index: {}]   ;;  %s4713_s2 = inlined_call_operand.vmem [shape: f32[3,3,10,128], index: 2, kind: input, shape index: {}]   ;;  %s4714_s3 = inlined_call_operand.vmem [shape: f32[4,1,128], index: 3, kind: input, shape index: {}]   ;;  %s4715_s4 = inlined_call_operand.vmem [shape: f32[4,1,128], index: 4, kind: input, shape index: {}]   ;;  %s4716_s5 = inlined_call_operand.vmem [shape: f32[4,1,128], index: 5, kind: input, shape index: {}]   ;;  %s4717_s6 = inlined_call_operand.vmem [shape: f32[16,10,256], index: 6, kind: input, shape index: {}]   ;;  %s4718_s7 = inlined_call_operand.vmem [shape: f32[1,256], index: 7, kind: input, shape index: {}]   ;;  %s4719_s8 = inlined_call_operand.vmem [shape: f32[1,256], index: 8, kind: input, shape index: {}]   ;;  %s4720_s9 = inlined_call_operand.vmem [shape: f32[1,256], index: 9, kind: input, shape index: {}]   ;;  %s4721_s10 = inlined_call_operand.vmem [shape: f32[256,128], index: 10, kind: input, shape index: {}]   ;;  %s4722_s11 = inlined_call_operand.vmem [shape: f32[1,128], index: 11, kind: input, shape index: {}]   ;;  %s4723_s12 = inlined_call_operand.hbm [shape: f32[2,128], index: 12, kind: output, shape index: {}]  }
   0x1   :  { %v759_v0 = vld [vmem:[%s4711_s0 + $0x8] sm:$0xff]  ;;  %v758_v1 = vld [vmem:[%s4711_s0] sm:$0xff]  ;;  %3192 = vset.pattern.permute.xlu1 %v3241_v2  ;;  %3191 = vset.pattern.permute.xlu0 %v3241_v2 }
   0x2   :  { %770 = vperm.xlu1 %3192, %v759_v0   ;;  %765 = vperm.xlu0 %3191, %v758_v1  }
   0x3   :  { %17 = vsyncpa [#allocation4], 0  ;;  %v760_v3 = vld [vmem:[%s4711_s0 + $0x10] sm:$0xff]  ;;  %v761_v4 = vld [vmem:[%s4711_s0 + $0x18] sm:$0xff]  ;;  %v697_v5 = vlaneseq  ;;  %vm958_vm6 = vcmask 1041408   ;;  %vm945_vm10 = vcmask 80896  }
   0x4   :  { %v3193_v6 = vld [vmem:[%s4712_s1] ss:$0 sm:$0xff]  ;;  %v3195_v14 = vld [vmem:[%s4712_s1 + $0x2] ss:$0 sm:$0xff]  ;;  %v3194_v21 = vld [vmem:[%s4712_s1 + $0x1] ss:$0 sm:$0xff] }
   0x5   :  { %v3324_v7 = vshrl.u32 %v697_v5, 7  ;;  %v3196_v47 = vld [vmem:[%s4714_s3] ss:$0 sm:$0xff]  ;;  %s3041_s16 = sshll.u32 %s4723_s12, 4  ;;  %s3042_s16 = int_to_ptr.hbm [resolvable:$true] %s3041_s16 }
   0x7   :  { %v699_v10 = vadd.s32 8, %v3324_v7  ;;  %v700_v11 = vadd.s32 16, %v3324_v7  ;;  %v701_v15 = vadd.s32 24, %v3324_v7  ;;  %v706_v18 = vand.u32 15, %v3324_v7 }
   0x8   :  { %vm812_vm0 = vcmp.lt.s32.totalorder %v3324_v7, 1  ;;  %vm829_vm1 = vcmp.lt.s32.totalorder %v3324_v7, 7 }
   0x9   :  { %v713_v16 = vand.u32 15, %v699_v10  ;;  %v720_v17 = vand.u32 15, %v700_v11  ;;  %v727_v23 = vand.u32 15, %v701_v15  ;;  %vm3346_vm4 = vcmp.ne.s32.totalorder %v706_v18, 0 }
   0xa   :  { %775 = vperm.xlu1 %3192, %v760_v3   ;;  %780 = vperm.xlu0 %3191, %v761_v4  }
   0xb   :  { %vm3338_vm2 = vcmp.ne.s32.totalorder %v720_v17, 0  ;;  %vm3342_vm3 = vcmp.ne.s32.totalorder %v713_v16, 15  ;;  %vm3352_vm5 = vcmp.ne.s32.totalorder %v727_v23, 15 }
  0x74   :  { %v771_v8 = vpop.permute.xlu1 %770  ;;  %v766_v9 = vpop.permute.xlu0 %765 }
  0x75   :  { %v787_v12 = vmul.f32 %v3193_v6, %v771_v8  ;;  %v786_v13 = vmul.f32 %v3193_v6, %v766_v9  ;;  %v805_v22 = vmul.f32 %v3195_v14, %v771_v8  ;;  %v804_v24 = vmul.f32 %v3195_v14, %v766_v9 }
  0x76   :  { %v796_v25 = vmul.f32 %v3194_v21, %v771_v8  ;;  %v795_v36 = vmul.f32 %v3194_v21, %v766_v9 }
  0x77   :  { %v809_v19 = vrot.slane %v787_v12, 7  ;;  %v808_v20 = vrot.slane %v786_v13, 7  ;;  %v826_v35 = vrot.slane %v805_v22, 1  ;;  %v825_v39 = vrot.slane %v804_v24, 1 }
  0x79   :  { %v815_v31 = vsel %vm812_vm0, %v808_v20, %v809_v19  ;;  %v832_v59 = vsel %vm829_vm1, %v825_v39, %v826_v35 }
  0x7a   :  { %v822_v43 = vadd.f32 %v815_v31, %v796_v25 }
  0x7c   :  { %v776_v26 = vpop.permute.xlu1 %775  ;;  %v781_v29 = vpop.permute.xlu0 %780 }
  0x7d   :  { %v788_v32 = vmul.f32 %v3193_v6, %v776_v26  ;;  %v806_v33 = vmul.f32 %v3195_v14, %v776_v26  ;;  %v789_v34 = vmul.f32 %v3193_v6, %v781_v29  ;;  %v807_v38 = vmul.f32 %v3195_v14, %v781_v29 }
  0x7e   :  { %v797_v44 = vmul.f32 %v3194_v21, %v776_v26  ;;  %v798_v45 = vmul.f32 %v3194_v21, %v781_v29 }
  0x7f   :  { %v810_v40 = vrot.slane %v788_v32, 7  ;;  %v827_v41 = vrot.slane %v806_v33, 1  ;;  %v811_v42 = vrot.slane %v789_v34, 7  ;;  %v828_v46 = vrot.slane %v807_v38, 1  ;;  %v3113_v38 = vld [vmem:[%s4713_s2 + $0x18] sm:$0x3] }
  0x80   :  { %3117 = vmatpush.msk.msra.mxu0 %vm958_vm6, %v3113_v38  ;;  %3182 = vmatpush.msk.msra.mxu3 %vm958_vm6, %v3113_v38 }
  0x81   :  { %v814_v48 = vsel %vm812_vm0, %v809_v19, %v810_v40  ;;  %v831_v49 = vsel %vm829_vm1, %v826_v35, %v827_v41  ;;  %v813_v50 = vsel %vm812_vm0, %v810_v40, %v811_v42  ;;  %v816_v51 = vsel %vm812_vm0, %v811_v42, %v808_v20  ;;  %v3115_v42 = vld [vmem:[%s4713_s2 + $0x28] sm:$0x3] }
  0x82   :  { %v819_v52 = vsel %vm3338_vm2, %v814_v48, 0.0  ;;  %v835_v53 = vsel %vm3342_vm3, %v831_v49, 0.0  ;;  %v817_v54 = vsel %vm3346_vm4, %v816_v51, 0.0  ;;  %v824_v55 = vadd.f32 %v813_v50, %v798_v45  ;;  %3186 = vmatpush.msk.msra.mxu2 %vm958_vm6, %v3115_v42  ;;  %v850_v50 = vld [vmem:[%s4715_s4] sm:$0x1] }
  0x83   :  { %v823_v56 = vadd.f32 %v819_v52, %v797_v44  ;;  %v839_v57 = vadd.f32 %v835_v53, %v822_v43  ;;  %v821_v58 = vadd.f32 %v817_v54, %v795_v36  ;;  %v830_v60 = vsel %vm829_vm1, %v827_v41, %v828_v46  ;;  %v912_v41 = vld [vmem:[%s4713_s2 + $0x8] sm:$0x3]  ;;  %v911_v43 = vld [vmem:[%s4713_s2] sm:$0xff] }
  0x84   :  { %v833_v61 = vsel %vm829_vm1, %v828_v46, %v825_v39  ;;  %v3112_v39 = vld [vmem:[%s4713_s2 + $0x10] sm:$0xff]  ;;  %3184 = vmatpush.msk.msra.mxu1 %vm958_vm6, %v912_v41  ;;  %v3114_v44 = vld [vmem:[%s4713_s2 + $0x20] sm:$0xff] }
  0x85   :  { %v3379_v62 = vadd.f32 %v3196_v47, %v839_v57  ;;  %v837_v63 = vsel %vm3352_vm5, %v833_v61, 0.0  ;;  %v838_v0 = vadd.f32 %v832_v59, %v821_v58  ;;  %v840_v1 = vadd.f32 %v830_v60, %v823_v56  ;;  %977 = vmatpush.msra.mxu0 %v3112_v39  ;;  %3183 = vmatpush.msra.mxu3 %v3112_v39  ;;  %v851_v54 = vld [vmem:[%s4716_s5] sm:$0x1] }
  0x86   :  { %v841_v2 = vadd.f32 %v837_v63, %v824_v55  ;;  %3185 = vmatpush.msra.mxu1 %v911_v43  ;;  %3187 = vmatpush.msra.mxu2 %v3114_v44 }
  0x87   :  { %v3383_v3 = vadd.f32 %v3196_v47, %v838_v0  ;;  %v3385_v4 = vadd.f32 %v3196_v47, %v840_v1  ;;  %v863_v5 = vmul.f32 %v3379_v62, %v3379_v62  ;;  %3122 = vmatpush.msk.msrb.mxu0 %vm958_vm6, %v912_v41 }
  0x88   :  { %v3389_v6 = vadd.f32 %v3196_v47, %v841_v2 }
  0x89   :  { %v852_v8 = vadd.f32 %v3379_v62, %v3383_v3  ;;  %v862_v9 = vmul.f32 %v3383_v3, %v3383_v3  ;;  %v864_v11 = vmul.f32 %v3385_v4, %v3385_v4  ;;  %1021 = vmatpush.msrb.mxu0 %v911_v43  ;;  %v3197_v43 = vld [vmem:[%s4714_s3 + $0x1] ss:$0 sm:$0xff] }
  0x8a   :  { %v865_v14 = vmul.f32 %v3389_v6, %v3389_v6 }
  0x8b   :  { %v853_v10 = vadd.f32 %v852_v8, %v3385_v4  ;;  %v866_v12 = vadd.f32 %v863_v5, %v862_v9 }
  0x8d   :  { %v854_v13 = vadd.f32 %v853_v10, %v3389_v6  ;;  %v867_v15 = vadd.f32 %v866_v12, %v864_v11 }
  0x8f   :  { %v855_v16 = vrot.slane %v854_v13, 4  ;;  %v868_v17 = vadd.f32 %v867_v15, %v865_v14 }
  0x91   :  { %v856_v18 = vadd.f32 %v855_v16, %v854_v13  ;;  %v869_v19 = vrot.slane %v868_v17, 4 }
  0x93   :  { %v857_v20 = vrot.slane %v856_v18, 2  ;;  %v870_v21 = vadd.f32 %v869_v19, %v868_v17 }
  0x95   :  { %v858_v22 = vadd.f32 %v857_v20, %v856_v18  ;;  %v871_v23 = vrot.slane %v870_v21, 2 }
  0x97   :  { %v859_v24 = vrot.slane %v858_v22, 1  ;;  %v872_v25 = vadd.f32 %v871_v23, %v870_v21 }
  0x99   :  { %v860_v26 = vadd.f32 %v859_v24, %v858_v22  ;;  %v873_v29 = vrot.slane %v872_v25, 1 }
  0x9b   :  { %v861_v31 = vmul.f32 0.03125, %v860_v26  ;;  %v874_v32 = vadd.f32 %v873_v29, %v872_v25 }
  0x9d   :  { %v875_v33 = vmul.f32 0.03125, %v874_v32  ;;  %v876_v34 = vmul.f32 %v861_v31, %v861_v31 }
  0x9f   :  { %v877_v35 = vsub.f32 %v875_v33, %v876_v34 }
  0xa1   :  { %v878_v36 = vmax.f32 %v877_v35, 0.0 }
  0xa3   :  { %v879_v40 = vadd.f32 1e-05, %v878_v36 }
  0xa5   :  { %3201 = vrsqrt.f32 %v879_v40  ;;  %vm886_vm8 = vweird.f32 %v879_v40 }
  0xab   :  { %v3202_v45 = vpop.eup %3201 }
  0xac   :  { %v881_v46 = vmul.f32 %v3202_v45, %v879_v40  ;;  %vm887_vm7 = vweird.f32 %v3202_v45 }
  0xad   :  { %vm888_vm9 = vmor %vm886_vm8, %vm887_vm7 }
  0xae   :  { %v882_v47 = vmul.f32 %v3202_v45, %v881_v46 }
  0xb0   :  { %v883_v48 = vmul.f32 0.5, %v882_v47 }
  0xb2   :  { %v884_v49 = vsub.f32 1.5, %v883_v48 }
  0xb4   :  { %v885_v51 = vmul.f32 %v3202_v45, %v884_v49 }
  0xb6   :  { %v889_v52 = vsel %vm888_vm9, %v3202_v45, %v885_v51 }
  0xb7   :  { %v890_v53 = vmul.f32 %v889_v52, %v850_v50 }
  0xb9   :  { %v891_v55 = vmul.f32 %v890_v53, %v861_v31  ;;  %v894_v56 = vperm.slane %v890_v53, 0 }
  0xbb   :  { %v892_v57 = vsub.f32 %v851_v54, %v891_v55  ;;  %v898_v58 = vmul.f32 %v894_v56, %v3385_v4  ;;  %v899_v59 = vmul.f32 %v894_v56, %v3389_v6  ;;  %v896_v61 = vmul.f32 %v894_v56, %v3383_v3 }
  0xbc   :  { %v897_v63 = vmul.f32 %v894_v56, %v3379_v62 }
  0xbd   :  { %v901_v60 = vperm.slane %v892_v57, 0 }
  0xbf   :  { %v906_v0 = vadd.f32 %v901_v60, %v899_v59  ;;  %v903_v1 = vadd.f32 %v901_v60, %v896_v61  ;;  %v904_v2 = vadd.f32 %v901_v60, %v897_v63  ;;  %v905_v5 = vadd.f32 %v901_v60, %v898_v58 }
  0xc1   :  { %v3434_v8 = vmax.f32 %v906_v0, 0.0  ;;  %v3436_v9 = vmax.f32 %v903_v1, 0.0  ;;  %v3438_v10 = vmax.f32 %v904_v2, 0.0  ;;  %v3440_v11 = vmax.f32 %v905_v5, 0.0 }
  0xc3   :  { %3118 = vmatmul.msk.f32.vlgmr.msra.gmra.mxu0 %vm945_vm10, %v3436_v9  ;;  %3119 = vmatmul.msk.f32.vlgmr.msra.gmra.mxu3 %vm945_vm10, %v3438_v10  ;;  %v921_v62 = vrot.slane %v3436_v9, 7  ;;  %v922_v3 = vrot.slane %v3438_v10, 7  ;;  %v934_v4 = vrot.slane %v3438_v10, 1  ;;  %v935_v6 = vrot.slane %v3440_v11, 1 }
  0xc4   :  { %v924_v12 = vrot.slane %v3434_v8, 7  ;;  %3127 = vmatpush.msk.msra.mxu0 %vm958_vm6, %v3115_v42  ;;  %v923_v16 = vrot.slane %v3440_v11, 7  ;;  %v936_v20 = vrot.slane %v3434_v8, 1  ;;  %v933_v23 = vrot.slane %v3436_v9, 1 }
  0xc5   :  { %v927_v13 = vsel %vm812_vm0, %v921_v62, %v922_v3  ;;  %v938_v14 = vsel %vm829_vm1, %v934_v4, %v935_v6 }
  0xc6   :  { %3124 = vmatmul.msk.f32.vlgmr.msra.gmra.mxu1 %vm945_vm10, %v927_v13  ;;  %v942_v15 = vsel %vm3342_vm3, %v938_v14, 0.0  ;;  %1065 = vmatpush.msra.mxu0 %v3114_v44  ;;  %v928_v17 = vsel %vm812_vm0, %v924_v12, %v921_v62  ;;  %v926_v19 = vsel %vm812_vm0, %v922_v3, %v923_v16  ;;  %v937_v22 = vsel %vm829_vm1, %v935_v6, %v936_v20 }
  0xc7   :  { %3129 = vmatmul.msk.f32.vlgmr.msra.gmra.mxu2 %vm945_vm10, %v942_v15  ;;  %v929_v18 = vsel %vm3346_vm4, %v928_v17, 0.0  ;;  %v931_v21 = vsel %vm3338_vm2, %v926_v19, 0.0  ;;  %v939_v24 = vsel %vm829_vm1, %v933_v23, %v934_v4  ;;  %v940_v25 = vsel %vm829_vm1, %v936_v20, %v933_v23 }
  0xc8   :  { %v925_v26 = vsel %vm812_vm0, %v923_v16, %v924_v12  ;;  %v944_v29 = vsel %vm3352_vm5, %v940_v25, 0.0  ;;  %v3137_v25 = vld [vmem:[%s4713_s2 + $0x48] sm:$0x3] }
  0xc9   :  { %3141 = vmatpush.msk.msrb.mxu3 %vm958_vm6, %v3137_v25 }
  0xcb   :  { %3120 = vmatmul.msk.f32.gmra.mxu3 %vm945_vm10, %v3440_v11  ;;  %3123 = vmatmul.msk.f32.vlgmr.msrb.gmra.mxu0 %vm945_vm10, %v929_v18 }
  0xce   :  { %3125 = vmatmul.msk.f32.gmra.mxu1 %vm945_vm10, %v931_v21 }
  0xcf   :  { %3130 = vmatmul.msk.f32.gmra.mxu2 %vm945_vm10, %v937_v22 }
  0xd3   :  { %3121 = vmatmul.msk.f32.gmra.mxu3 %vm945_vm10, %v3434_v8  ;;  %3128 = vmatmul.msk.f32.vlgmr.msra.gmra.mxu0 %vm945_vm10, %v939_v24 }
  0xd6   :  { %3126 = vmatmul.msk.f32.gmra.mxu1 %vm945_vm10, %v925_v26  ;;  %v3136_v26 = vld [vmem:[%s4713_s2 + $0x40] sm:$0xff] }
  0xd7   :  { %3131 = vmatmul.msk.f32.gmra.mxu2 %vm945_vm10, %v944_v29  ;;  %1218 = vmatpush.msrb.mxu3 %v3136_v26 }
 0x140   :  { %v979_v31 = vpop.f32.mrf.mxu0 }
 0x143   :  { %v1026_v32 = vpop.f32.mrf.mxu1 }
 0x146   :  { %v982_v33 = vpop.f32.mrf.mxu3 }
 0x147   :  { %v1027_v39 = vadd.f32 %v1026_v32, %v982_v33  ;;  %v3135_v32 = vld [vmem:[%s4713_s2 + $0x38] sm:$0x3]  ;;  %v3138_v33 = vld [vmem:[%s4713_s2 + $0x50] sm:$0xff] }
 0x148   :  { %v1023_v34 = vpop.f32.mrf.mxu0  ;;  %3146 = vmatpush.msk.msrb.mxu0 %vm958_vm6, %v3135_v32 }
 0x149   :  { %v1024_v40 = vadd.f32 %v1023_v34, %v979_v31  ;;  %v3139_v31 = vld [vmem:[%s4713_s2 + $0x58] sm:$0x3]  ;;  %v3134_v34 = vld [vmem:[%s4713_s2 + $0x30] sm:$0xff] }
 0x14a   :  { %v1070_v35 = vpop.f32.mrf.mxu2  ;;  %3151 = vmatpush.msk.msrb.mxu1 %vm958_vm6, %v3139_v31  ;;  %1262 = vmatpush.msrb.mxu0 %v3134_v34 }
 0x14b   :  { %v1029_v36 = vpop.f32.mrf.mxu1  ;;  %v1080_v42 = vadd.f32 %v1070_v35, %v1027_v39 }
 0x14c   :  { %1306 = vmatpush.msrb.mxu1 %v3138_v33 }
 0x14d   :  { %v3496_v49 = vadd.f32 %v3197_v43, %v1080_v42 }
 0x14e   :  { %v985_v38 = vpop.f32.mrf.mxu3 }
 0x14f   :  { %v1030_v44 = vadd.f32 %v1029_v36, %v985_v38  ;;  %v1105_v54 = vmul.f32 %v3496_v49, %v3496_v49 }
 0x150   :  { %v1067_v41 = vpop.f32.mrf.mxu0 }
 0x151   :  { %v1079_v45 = vadd.f32 %v1067_v41, %v1024_v40  ;;  %v3132_v41 = vld [vmem:[%s4715_s4 + $0x1] sm:$0x1] }
 0x152   :  { %v1073_v46 = vpop.f32.mrf.mxu2 }
 0x153   :  { %v3494_v47 = vadd.f32 %v3197_v43, %v1079_v45  ;;  %v1081_v48 = vadd.f32 %v1073_v46, %v1030_v44  ;;  %v1032_v53 = vpop.f32.mrf.mxu1  ;;  %v3133_v45 = vld [vmem:[%s4716_s5 + $0x1] sm:$0x1] }
 0x155   :  { %v1104_v51 = vmul.f32 %v3494_v47, %v3494_v47  ;;  %v3500_v52 = vadd.f32 %v3197_v43, %v1081_v48  ;;  %v1094_v55 = vadd.f32 %v3496_v49, %v3494_v47 }
 0x156   :  { %v988_v50 = vpop.f32.mrf.mxu3 }
 0x157   :  { %v1033_v56 = vadd.f32 %v1032_v53, %v988_v50  ;;  %v1108_v58 = vadd.f32 %v1105_v54, %v1104_v51  ;;  %v1106_v59 = vmul.f32 %v3500_v52, %v3500_v52  ;;  %v1095_v61 = vadd.f32 %v1094_v55, %v3500_v52 }
 0x159   :  { %v1109_v0 = vadd.f32 %v1108_v58, %v1106_v59 }
 0x15a   :  { %v1076_v57 = vpop.f32.mrf.mxu2 }
 0x15b   :  { %v1082_v60 = vadd.f32 %v1076_v57, %v1033_v56 }
 0x15d   :  { %v1089_v63 = vadd.f32 %v3197_v43, %v1082_v60 }
 0x15f   :  { %v1096_v1 = vadd.f32 %v1095_v61, %v1089_v63  ;;  %v1107_v2 = vmul.f32 %v1089_v63, %v1089_v63 }
 0x161   :  { %v1097_v5 = vrot.slane %v1096_v1, 4  ;;  %v1110_v62 = vadd.f32 %v1109_v0, %v1107_v2 }
 0x163   :  { %v1098_v3 = vadd.f32 %v1097_v5, %v1096_v1  ;;  %v1111_v4 = vrot.slane %v1110_v62, 4 }
 0x165   :  { %v1099_v6 = vrot.slane %v1098_v3, 2  ;;  %v1112_v12 = vadd.f32 %v1111_v4, %v1110_v62 }
 0x167   :  { %v1100_v13 = vadd.f32 %v1099_v6, %v1098_v3  ;;  %v1113_v14 = vrot.slane %v1112_v12, 2 }
 0x169   :  { %v1101_v15 = vrot.slane %v1100_v13, 1  ;;  %v1114_v16 = vadd.f32 %v1113_v14, %v1112_v12 }
 0x16b   :  { %v1102_v17 = vadd.f32 %v1101_v15, %v1100_v13  ;;  %v1115_v18 = vrot.slane %v1114_v16, 1 }
 0x16d   :  { %v1103_v19 = vmul.f32 0.03125, %v1102_v17  ;;  %v1116_v20 = vadd.f32 %v1115_v18, %v1114_v16 }
 0x16f   :  { %v1117_v21 = vmul.f32 0.03125, %v1116_v20  ;;  %v1118_v22 = vmul.f32 %v1103_v19, %v1103_v19 }
 0x171   :  { %v1119_v23 = vsub.f32 %v1117_v21, %v1118_v22 }
 0x173   :  { %v1120_v24 = vmax.f32 %v1119_v23, 0.0 }
 0x175   :  { %v1121_v29 = vadd.f32 1e-05, %v1120_v24 }
 0x177   :  { %3203 = vrsqrt.f32 %v1121_v29  ;;  %vm1128_vm12 = vweird.f32 %v1121_v29 }
 0x17d   :  { %v3204_v35 = vpop.eup %3203 }
 0x17e   :  { %v1123_v36 = vmul.f32 %v3204_v35, %v1121_v29  ;;  %vm1129_vm11 = vweird.f32 %v3204_v35 }
 0x17f   :  { %vm1130_vm13 = vmor %vm1128_vm12, %vm1129_vm11 }
 0x180   :  { %v1124_v38 = vmul.f32 %v3204_v35, %v1123_v36 }
 0x182   :  { %v1125_v39 = vmul.f32 0.5, %v1124_v38 }
 0x184   :  { %v1126_v40 = vsub.f32 1.5, %v1125_v39 }
 0x186   :  { %v1127_v42 = vmul.f32 %v3204_v35, %v1126_v40 }
 0x188   :  { %v1131_v43 = vsel %vm1130_vm13, %v3204_v35, %v1127_v42 }
 0x189   :  { %v1132_v44 = vmul.f32 %v3132_v41, %v1131_v43  ;;  %v3198_v41 = vld [vmem:[%s4714_s3 + $0x2] ss:$0 sm:$0xff] }
 0x18b   :  { %v1133_v46 = vmul.f32 %v1132_v44, %v1103_v19  ;;  %v1136_v48 = vperm.slane %v1132_v44, 0 }
 0x18d   :  { %v1134_v50 = vsub.f32 %v3133_v45, %v1133_v46  ;;  %v1141_v51 = vmul.f32 %v1136_v48, %v1089_v63  ;;  %v1138_v54 = vmul.f32 %v1136_v48, %v3494_v47  ;;  %v1139_v55 = vmul.f32 %v1136_v48, %v3496_v49 }
 0x18e   :  { %v1140_v56 = vmul.f32 %v1136_v48, %v3500_v52 }
 0x18f   :  { %v1143_v53 = vperm.slane %v1134_v50, 0 }
 0x191   :  { %v1148_v57 = vadd.f32 %v1143_v53, %v1141_v51  ;;  %v1145_v58 = vadd.f32 %v1143_v53, %v1138_v54  ;;  %v1146_v59 = vadd.f32 %v1143_v53, %v1139_v55  ;;  %v1147_v60 = vadd.f32 %v1143_v53, %v1140_v56 }
 0x193   :  { %v1152_v61 = vmax.f32 %v1148_v57, 0.0  ;;  %v1149_v0 = vmax.f32 %v1145_v58, 0.0  ;;  %v1150_v1 = vmax.f32 %v1146_v59, 0.0  ;;  %v1151_v2 = vmax.f32 %v1147_v60, 0.0 }
 0x195   :  { %3142 = vmatmul.msk.f32.vlgmr.msrb.gmra.mxu3 %vm945_vm10, %v1149_v0  ;;  %v1176_v5 = vrot.slane %v1149_v0, 1  ;;  %v1177_v62 = vrot.slane %v1150_v1, 1  ;;  %v1164_v63 = vrot.slane %v1149_v0, 7  ;;  %v1167_v3 = vrot.slane %v1152_v61, 7 }
 0x196   :  { %v1178_v4 = vrot.slane %v1151_v2, 1  ;;  %v1165_v12 = vrot.slane %v1150_v1, 7  ;;  %v1166_v15 = vrot.slane %v1151_v2, 7  ;;  %v1179_v16 = vrot.slane %v1152_v61, 1 }
 0x197   :  { %v1182_v47 = vsel %vm829_vm1, %v1176_v5, %v1177_v62  ;;  %v1171_v49 = vsel %vm812_vm0, %v1167_v3, %v1164_v63 }
 0x198   :  { %3152 = vmatmul.msk.f32.vlgmr.msrb.gmra.mxu1 %vm945_vm10, %v1182_v47  ;;  %v1172_v52 = vsel %vm3346_vm4, %v1171_v49, 0.0  ;;  %v1181_v6 = vsel %vm829_vm1, %v1177_v62, %v1178_v4  ;;  %v1170_v14 = vsel %vm812_vm0, %v1164_v63, %v1165_v12  ;;  %v1169_v17 = vsel %vm812_vm0, %v1165_v12, %v1166_v15 }
 0x199   :  { %3147 = vmatmul.msk.f32.vlgmr.msrb.gmra.mxu0 %vm945_vm10, %v1172_v52  ;;  %v1185_v13 = vsel %vm3342_vm3, %v1181_v6, 0.0  ;;  %v1180_v18 = vsel %vm829_vm1, %v1178_v4, %v1179_v16  ;;  %v1174_v19 = vsel %vm3338_vm2, %v1169_v17, 0.0  ;;  %v1183_v20 = vsel %vm829_vm1, %v1179_v16, %v1176_v5 }
 0x19a   :  { %v1187_v21 = vsel %vm3352_vm5, %v1183_v20, 0.0  ;;  %v1168_v22 = vsel %vm812_vm0, %v1166_v15, %v1167_v3 }
 0x19d   :  { %3143 = vmatmul.msk.f32.gmra.mxu3 %vm945_vm10, %v1150_v1 }
 0x1a0   :  { %3153 = vmatmul.msk.f32.gmra.mxu1 %vm945_vm10, %v1185_v13 }
 0x1a1   :  { %3148 = vmatmul.msk.f32.gmra.mxu0 %vm945_vm10, %v1170_v14 }
 0x1a5   :  { %3144 = vmatmul.msk.f32.gmra.mxu3 %vm945_vm10, %v1151_v2 }
 0x1a8   :  { %3154 = vmatmul.msk.f32.gmra.mxu1 %vm945_vm10, %v1180_v18 }
 0x1a9   :  { %3149 = vmatmul.msk.f32.gmra.mxu0 %vm945_vm10, %v1174_v19 }
 0x1ad   :  { %3145 = vmatmul.msk.f32.gmra.mxu3 %vm945_vm10, %v1152_v61 }
 0x1b0   :  { %3155 = vmatmul.msk.f32.gmra.mxu1 %vm945_vm10, %v1187_v21  ;;  %v3161_v21 = vld [vmem:[%s4713_s2 + $0x78] sm:$0x3] }
 0x1b1   :  { %3150 = vmatmul.msk.f32.gmra.mxu0 %vm945_vm10, %v1168_v22  ;;  %v3160_v22 = vld [vmem:[%s4713_s2 + $0x70] sm:$0xff]  ;;  %3165 = vmatpush.msk.msrb.mxu2 %vm958_vm6, %v3161_v21 }
 0x1b3   :  { %1463 = vmatpush.msrb.mxu2 %v3160_v22 }
 0x215   :  { %v1308_v23 = vpop.f32.mrf.mxu1 }
 0x216   :  { %v1264_v24 = vpop.f32.mrf.mxu0 }
 0x218   :  { %v1220_v25 = vpop.f32.mrf.mxu3 }
 0x219   :  { %v1265_v34 = vadd.f32 %v1264_v24, %v1220_v25  ;;  %v3159_v24 = vld [vmem:[%s4713_s2 + $0x68] sm:$0x3]  ;;  %v3162_v25 = vld [vmem:[%s4713_s2 + $0x80] sm:$0xff] }
 0x21a   :  { %3170 = vmatpush.msk.msra.mxu3 %vm958_vm6, %v3159_v24 }
 0x21b   :  { %v1320_v40 = vadd.f32 %v1308_v23, %v1265_v34  ;;  %v3163_v23 = vld [vmem:[%s4713_s2 + $0x88] sm:$0x3] }
 0x21c   :  { %3175 = vmatpush.msk.msra.mxu0 %vm958_vm6, %v3163_v23 }
 0x21d   :  { %v1311_v26 = vpop.f32.mrf.mxu1  ;;  %v3580_v44 = vadd.f32 %v3198_v41, %v1320_v40  ;;  %v3157_v40 = vld [vmem:[%s4716_s5 + $0x2] sm:$0x1] }
 0x21e   :  { %v1267_v29 = vpop.f32.mrf.mxu0  ;;  %1551 = vmatpush.msra.mxu0 %v3162_v25 }
 0x21f   :  { %v1345_v54 = vmul.f32 %v3580_v44, %v3580_v44 }
 0x220   :  { %v1223_v31 = vpop.f32.mrf.mxu3 }
 0x221   :  { %v1268_v32 = vadd.f32 %v1267_v29, %v1223_v31 }
 0x223   :  { %v1321_v38 = vadd.f32 %v1311_v26, %v1268_v32  ;;  %v3158_v26 = vld [vmem:[%s4713_s2 + $0x60] sm:$0xff] }
 0x224   :  { %1507 = vmatpush.msra.mxu3 %v3158_v26 }
 0x225   :  { %v1314_v35 = vpop.f32.mrf.mxu1  ;;  %v3578_v43 = vadd.f32 %v3198_v41, %v1321_v38 }
 0x226   :  { %v1270_v33 = vpop.f32.mrf.mxu0 }
 0x227   :  { %v1346_v50 = vmul.f32 %v3578_v43, %v3578_v43  ;;  %v1335_v55 = vadd.f32 %v3578_v43, %v3580_v44 }
 0x228   :  { %v1226_v36 = vpop.f32.mrf.mxu3 }
 0x229   :  { %v1271_v39 = vadd.f32 %v1270_v33, %v1226_v36  ;;  %v1349_v58 = vadd.f32 %v1346_v50, %v1345_v54 }
 0x22b   :  { %v1322_v42 = vadd.f32 %v1314_v35, %v1271_v39  ;;  %v3156_v35 = vld [vmem:[%s4715_s4 + $0x2] sm:$0x1] }
 0x22d   :  { %v3582_v45 = vadd.f32 %v3198_v41, %v1322_v42  ;;  %v1317_v53 = vpop.f32.mrf.mxu1 }
 0x22e   :  { %v1273_v46 = vpop.f32.mrf.mxu0 }
 0x22f   :  { %v1347_v56 = vmul.f32 %v3582_v45, %v3582_v45  ;;  %v1336_v59 = vadd.f32 %v1335_v55, %v3582_v45 }
 0x230   :  { %v1229_v48 = vpop.f32.mrf.mxu3 }
 0x231   :  { %v1274_v51 = vadd.f32 %v1273_v46, %v1229_v48  ;;  %v1350_v61 = vadd.f32 %v1349_v58, %v1347_v56 }
 0x233   :  { %v1323_v57 = vadd.f32 %v1317_v53, %v1274_v51 }
 0x235   :  { %v1330_v60 = vadd.f32 %v3198_v41, %v1323_v57 }
 0x237   :  { %v1337_v0 = vadd.f32 %v1336_v59, %v1330_v60  ;;  %v1348_v1 = vmul.f32 %v1330_v60, %v1330_v60 }
 0x239   :  { %v1338_v2 = vrot.slane %v1337_v0, 4  ;;  %v1351_v5 = vadd.f32 %v1350_v61, %v1348_v1 }
 0x23b   :  { %v1339_v62 = vadd.f32 %v1338_v2, %v1337_v0  ;;  %v1352_v63 = vrot.slane %v1351_v5, 4 }
 0x23d   :  { %v1340_v3 = vrot.slane %v1339_v62, 2  ;;  %v1353_v47 = vadd.f32 %v1352_v63, %v1351_v5 }
 0x23f   :  { %v1341_v49 = vadd.f32 %v1340_v3, %v1339_v62  ;;  %v1354_v52 = vrot.slane %v1353_v47, 2 }
 0x241   :  { %v1342_v4 = vrot.slane %v1341_v49, 1  ;;  %v1355_v6 = vadd.f32 %v1354_v52, %v1353_v47 }
 0x243   :  { %v1343_v12 = vadd.f32 %v1342_v4, %v1341_v49  ;;  %v1356_v13 = vrot.slane %v1355_v6, 1 }
 0x245   :  { %v1344_v14 = vmul.f32 0.03125, %v1343_v12  ;;  %v1357_v15 = vadd.f32 %v1356_v13, %v1355_v6 }
 0x247   :  { %v1358_v16 = vmul.f32 0.03125, %v1357_v15  ;;  %v1359_v17 = vmul.f32 %v1344_v14, %v1344_v14 }
 0x249   :  { %v1360_v18 = vsub.f32 %v1358_v16, %v1359_v17  ;;  %v3242_v16 = vmov 0.0  }
 0x24a   :  { %72 = vst [vmem:[#allocation2 + $0x948] sm:$0xff] %v3242_v16  ;;  %2222 = vmatpush.msra.mxu1 %v3242_v16  ;;  %2242 = vmatpush.msra.mxu2 %v3242_v16 }
 0x24b   :  { %v1361_v19 = vmax.f32 %v1360_v18, 0.0  ;;  %44 = vst [vmem:[#allocation2 + $0x4d8] sm:$0xff] %v3242_v16  ;;  %2262 = vmatpush.msrb.mxu3 %v3242_v16  ;;  %2282 = vmatpush.msrb.mxu0 %v3242_v16 }
 0x24c   :  { %45 = vst [vmem:[#allocation2 + $0x818] sm:$0xff] %v3242_v16  ;;  %2223 = vmatpush.msra.mxu1 %v3242_v16  ;;  %2243 = vmatpush.msra.mxu2 %v3242_v16 }
 0x24d   :  { %v1362_v20 = vadd.f32 1e-05, %v1361_v19  ;;  %2263 = vmatpush.msrb.mxu3 %v3242_v16  ;;  %2283 = vmatpush.msrb.mxu0 %v3242_v16  ;;  %84 = vst [vmem:[#allocation2 + $0x910] sm:$0xff] %v3242_v16 }
 0x24e   :  { %2224 = vmatpush.msra.mxu1 %v3242_v16  ;;  %2244 = vmatpush.msra.mxu2 %v3242_v16  ;;  %85 = vst [vmem:[#allocation2 + $0xbd0] sm:$0xff] %v3242_v16 }
 0x24f   :  { %3205 = vrsqrt.f32 %v1362_v20  ;;  %vm1369_vm15 = vweird.f32 %v1362_v20  ;;  %2264 = vmatpush.msrb.mxu3 %v3242_v16  ;;  %2284 = vmatpush.msrb.mxu0 %v3242_v16  ;;  %125 = vst [vmem:[#allocation2 + $0xbe8] sm:$0xff] %v3242_v16 }
 0x250   :  { %2225 = vmatpush.msra.mxu1 %v3242_v16  ;;  %2245 = vmatpush.msra.mxu2 %v3242_v16  ;;  %126 = vst [vmem:[#allocation2 + $0xd30] sm:$0xff] %v3242_v16 }
 0x251   :  { %2265 = vmatpush.msrb.mxu3 %v3242_v16  ;;  %2285 = vmatpush.msrb.mxu0 %v3242_v16  ;;  %166 = vst [vmem:[#allocation2 + $0xe48] sm:$0xff] %v3242_v16 }
 0x252   :  { %2226 = vmatpush.msra.mxu1 %v3242_v16  ;;  %2246 = vmatpush.msra.mxu2 %v3242_v16  ;;  %167 = vst [vmem:[#allocation2 + $0xe80] sm:$0xff] %v3242_v16 }
 0x253   :  { %2266 = vmatpush.msrb.mxu3 %v3242_v16  ;;  %2286 = vmatpush.msrb.mxu0 %v3242_v16  ;;  %207 = vst [vmem:[#allocation2 + $0x820] sm:$0xff] %v3242_v16 }
 0x254   :  { %2227 = vmatpush.msra.mxu1 %v3242_v16  ;;  %2247 = vmatpush.msra.mxu2 %v3242_v16  ;;  %208 = vst [vmem:[#allocation2 + $0x8c8] sm:$0xff] %v3242_v16 }
 0x255   :  { %v3206_v29 = vpop.eup %3205  ;;  %2267 = vmatpush.msrb.mxu3 %v3242_v16  ;;  %2287 = vmatpush.msrb.mxu0 %v3242_v16  ;;  %248 = vst [vmem:[#allocation2 + $0x4b8] sm:$0xff] %v3242_v16 }
 0x256   :  { %v1364_v31 = vmul.f32 %v3206_v29, %v1362_v20  ;;  %vm1370_vm14 = vweird.f32 %v3206_v29  ;;  %2228 = vmatpush.msra.mxu1 %v3242_v16  ;;  %2248 = vmatpush.msra.mxu2 %v3242_v16  ;;  %249 = vst [vmem:[#allocation2 + $0x4c8] sm:$0xff] %v3242_v16 }
 0x257   :  { %vm1371_vm7 = vmor %vm1369_vm15, %vm1370_vm14  ;;  %2268 = vmatpush.msrb.mxu3 %v3242_v16  ;;  %2288 = vmatpush.msrb.mxu0 %v3242_v16  ;;  %289 = vst [vmem:[#allocation2 + $0x1e0] sm:$0xff] %v3242_v16 }
 0x258   :  { %v1365_v32 = vmul.f32 %v3206_v29, %v1364_v31  ;;  %2229 = vmatpush.msra.mxu1 %v3242_v16  ;;  %2249 = vmatpush.msra.mxu2 %v3242_v16  ;;  %290 = vst [vmem:[#allocation2 + $0xf90] sm:$0xff] %v3242_v16 }
 0x259   :  { %2269 = vmatpush.msrb.mxu3 %v3242_v16  ;;  %2289 = vmatpush.msrb.mxu0 %v3242_v16  ;;  %330 = vst [vmem:[#allocation2 + $0x2a8] sm:$0xff] %v3242_v16 }
 0x25a   :  { %v1366_v33 = vmul.f32 0.5, %v1365_v32  ;;  %2230 = vmatpush.msra.mxu1 %v3242_v16  ;;  %2250 = vmatpush.msra.mxu2 %v3242_v16  ;;  %331 = vst [vmem:[#allocation2 + $0xf78] sm:$0xff] %v3242_v16 }
 0x25b   :  { %2270 = vmatpush.msrb.mxu3 %v3242_v16  ;;  %2290 = vmatpush.msrb.mxu0 %v3242_v16  ;;  %371 = vst [vmem:[#allocation2 + $0x5a0] sm:$0xff] %v3242_v16 }
 0x25c   :  { %v1367_v34 = vsub.f32 1.5, %v1366_v33  ;;  %2231 = vmatpush.msra.mxu1 %v3242_v16  ;;  %2251 = vmatpush.msra.mxu2 %v3242_v16  ;;  %372 = vst [vmem:[#allocation2 + $0xc60] sm:$0xff] %v3242_v16 }
 0x25d   :  { %2271 = vmatpush.msrb.mxu3 %v3242_v16  ;;  %2291 = vmatpush.msrb.mxu0 %v3242_v16  ;;  %412 = vst [vmem:[#allocation2 + $0xfd0] sm:$0xff] %v3242_v16 }
 0x25e   :  { %v1368_v36 = vmul.f32 %v3206_v29, %v1367_v34  ;;  %2232 = vmatpush.msra.mxu1 %v3242_v16  ;;  %2252 = vmatpush.msra.mxu2 %v3242_v16  ;;  %413 = vst [vmem:[#allocation2 + $0x8a8] sm:$0xff] %v3242_v16  ;;  %v3199_v34 = vld [vmem:[%s4714_s3 + $0x3] ss:$0 sm:$0xff] }
 0x25f   :  { %2272 = vmatpush.msrb.mxu3 %v3242_v16  ;;  %2292 = vmatpush.msrb.mxu0 %v3242_v16  ;;  %453 = vst [vmem:[#allocation2 + $0xf80] sm:$0xff] %v3242_v16 }
 0x260   :  { %v1372_v38 = vsel %vm1371_vm7, %v3206_v29, %v1368_v36  ;;  %2233 = vmatpush.msra.mxu1 %v3242_v16  ;;  %2253 = vmatpush.msra.mxu2 %v3242_v16  ;;  %454 = vst [vmem:[#allocation2 + $0xf50] sm:$0xff] %v3242_v16 }
 0x261   :  { %v1373_v39 = vmul.f32 %v3156_v35, %v1372_v38  ;;  %2273 = vmatpush.msrb.mxu3 %v3242_v16  ;;  %2293 = vmatpush.msrb.mxu0 %v3242_v16  ;;  %494 = vst [vmem:[#allocation2 + $0x638] sm:$0xff] %v3242_v16 }
 0x262   :  { %2234 = vmatpush.msra.mxu1 %v3242_v16  ;;  %2254 = vmatpush.msra.mxu2 %v3242_v16  ;;  %495 = vst [vmem:[#allocation2 + $0x870] sm:$0xff] %v3242_v16 }
 0x263   :  { %v1374_v41 = vmul.f32 %v1373_v39, %v1344_v14  ;;  %v1377_v42 = vperm.slane %v1373_v39, 0  ;;  %2274 = vmatpush.msrb.mxu3 %v3242_v16  ;;  %2294 = vmatpush.msrb.mxu0 %v3242_v16  ;;  %535 = vst [vmem:[#allocation2 + $0x548] sm:$0xff] %v3242_v16 }
 0x264   :  { %2235 = vmatpush.msra.mxu1 %v3242_v16  ;;  %2255 = vmatpush.msra.mxu2 %v3242_v16  ;;  %536 = vst [vmem:[#allocation2 + $0x1e8] sm:$0xff] %v3242_v16 }
 0x265   :  { %v1375_v46 = vsub.f32 %v3157_v40, %v1374_v41  ;;  %v1382_v48 = vmul.f32 %v1377_v42, %v1330_v60  ;;  %v1379_v51 = vmul.f32 %v1377_v42, %v3580_v44  ;;  %v1380_v53 = vmul.f32 %v1377_v42, %v3578_v43  ;;  %2275 = vmatpush.msrb.mxu3 %v3242_v16 }
 0x266   :  { %v1381_v54 = vmul.f32 %v1377_v42, %v3582_v45  ;;  %2295 = vmatpush.msrb.mxu0 %v3242_v16  ;;  %576 = vst [vmem:[#allocation2 + $0x5f0] sm:$0xff] %v3242_v16 }
 0x267   :  { %v1384_v50 = vperm.slane %v1375_v46, 0  ;;  %577 = vst [vmem:[#allocation2 + $0x7a0] sm:$0xff] %v3242_v16 }
 0x269   :  { %v1389_v55 = vadd.f32 %v1384_v50, %v1382_v48  ;;  %v1386_v56 = vadd.f32 %v1384_v50, %v1379_v51  ;;  %v1387_v57 = vadd.f32 %v1384_v50, %v1380_v53  ;;  %v1388_v58 = vadd.f32 %v1384_v50, %v1381_v54 }
 0x26b   :  { %v1393_v59 = vmax.f32 %v1389_v55, 0.0  ;;  %v1390_v61 = vmax.f32 %v1386_v56, 0.0  ;;  %v1391_v0 = vmax.f32 %v1387_v57, 0.0  ;;  %v1392_v1 = vmax.f32 %v1388_v58, 0.0 }
 0x26d   :  { %v1397_v2 = vadd.f32 %v1393_v59, %v3434_v8  ;;  %v1394_v5 = vadd.f32 %v1390_v61, %v3436_v9  ;;  %v1395_v60 = vadd.f32 %v1391_v0, %v3438_v10  ;;  %v1396_v44 = vadd.f32 %v1392_v1, %v3440_v11 }
 0x26f   :  { %3166 = vmatmul.msk.f32.vlgmr.msrb.gmra.mxu2 %vm945_vm10, %v1394_v5  ;;  %v1421_v43 = vrot.slane %v1394_v5, 1  ;;  %v1422_v45 = vrot.slane %v1395_v60, 1  ;;  %v1409_v62 = vrot.slane %v1394_v5, 7  ;;  %v1412_v63 = vrot.slane %v1397_v2, 7 }
 0x270   :  { %v1423_v9 = vrot.slane %v1396_v44, 1  ;;  %v1410_v11 = vrot.slane %v1395_v60, 7  ;;  %v1411_v30 = vrot.slane %v1396_v44, 7  ;;  %v1424_v4 = vrot.slane %v1397_v2, 1 }
 0x271   :  { %v1427_v3 = vsel %vm829_vm1, %v1421_v43, %v1422_v45  ;;  %v1416_v47 = vsel %vm812_vm0, %v1412_v63, %v1409_v62 }
 0x272   :  { %3176 = vmatmul.msk.f32.vlgmr.msra.gmra.mxu0 %vm945_vm10, %v1427_v3  ;;  %v1417_v8 = vsel %vm3346_vm4, %v1416_v47, 0.0  ;;  %v1426_v10 = vsel %vm829_vm1, %v1422_v45, %v1423_v9  ;;  %v1415_v52 = vsel %vm812_vm0, %v1409_v62, %v1410_v11  ;;  %v1414_v6 = vsel %vm812_vm0, %v1410_v11, %v1411_v30  ;;  %v3771_v45 = vld [vmem:[#allocation2 + $0x948] sm:$0xff] }
 0x273   :  { %3171 = vmatmul.msk.f32.vlgmr.msra.gmra.mxu3 %vm945_vm10, %v1417_v8  ;;  %v1430_v49 = vsel %vm3342_vm3, %v1426_v10, 0.0  ;;  %v1425_v12 = vsel %vm829_vm1, %v1423_v9, %v1424_v4  ;;  %v1419_v28 = vsel %vm3338_vm2, %v1414_v6, 0.0  ;;  %v1428_v13 = vsel %vm829_vm1, %v1424_v4, %v1421_v43  ;;  %617 = vst [vmem:[#allocation2 + $0x260] sm:$0xff] %v3771_v45 }
 0x274   :  { %v1432_v14 = vsel %vm3352_vm5, %v1428_v13, 0.0  ;;  %v1413_v15 = vsel %vm812_vm0, %v1411_v30, %v1412_v63  ;;  %618 = vst [vmem:[#allocation2 + $0x3a8] sm:$0xff] %v3771_v45  ;;  %v3180_v13 = vld [vmem:[%s4715_s4 + $0x3] sm:$0x1]  ;;  %vm1642_vm3 = vcmask 1041409  }
 0x275   :  { %658 = vst [vmem:[#allocation2 + $0xe38] sm:$0xff] %v3771_v45 }
 0x276   :  { %659 = vst [vmem:[#allocation2 + $0x390] sm:$0xff] %v3771_v45 }
 0x277   :  { %3167 = vmatmul.msk.f32.gmra.mxu2 %vm945_vm10, %v1395_v60 }
 0x27a   :  { %3177 = vmatmul.msk.f32.gmra.mxu0 %vm945_vm10, %v1430_v49 }
 0x27b   :  { %3172 = vmatmul.msk.f32.gmra.mxu3 %vm945_vm10, %v1415_v52 }
 0x27f   :  { %3168 = vmatmul.msk.f32.gmra.mxu2 %vm945_vm10, %v1396_v44 }
 0x282   :  { %3178 = vmatmul.msk.f32.gmra.mxu0 %vm945_vm10, %v1425_v12 }
 0x283   :  { %3173 = vmatmul.msk.f32.gmra.mxu3 %vm945_vm10, %v1419_v28 }
 0x287   :  { %3169 = vmatmul.msk.f32.gmra.mxu2 %vm945_vm10, %v1397_v2 }
 0x28a   :  { %3179 = vmatmul.msk.f32.gmra.mxu0 %vm945_vm10, %v1432_v14 }
 0x28b   :  { %3174 = vmatmul.msk.f32.gmra.mxu3 %vm945_vm10, %v1413_v15  ;;  %vm2929_vm10 = vcmask 1040384  }
 0x2ef   :  { %v1553_v37 = vpop.f32.mrf.mxu0 }
 0x2f2   :  { %v1465_v27 = vpop.f32.mrf.mxu2 }
 0x2f6   :  { %v1509_v7 = vpop.f32.mrf.mxu3 }
 0x2f7   :  { %v1556_v19 = vpop.f32.mrf.mxu0  ;;  %v1510_v25 = vadd.f32 %v1509_v7, %v1465_v27  ;;  %v3181_v7 = vld [vmem:[%s4716_s5 + $0x3] sm:$0x1]  ;;  %v76_v27 = vld [vmem:[%s4717_s6 + $0x10] sm:$0x3] }
 0x2f8   :  { %80 = vst [vmem:[#allocation2 + $0x4d8] sm:$0x3] %v76_v27  ;;  %v3088_v27 = vld [vmem:[%s4717_s6 + $0x150] sm:$0x3] }
 0x2f9   :  { %v1565_v33 = vadd.f32 %v1553_v37, %v1510_v25  ;;  %v3052_v37 = vld [vmem:[%s4717_s6 + $0x30] sm:$0x3]  ;;  %490 = vst [vmem:[#allocation2 + $0xf80] sm:$0x3] %v3088_v27  ;;  %v4270_v27 = vld [vmem:[#allocation2 + $0x948] sm:$0xff] }
 0x2fa   :  { %v1468_v18 = vpop.f32.mrf.mxu2  ;;  %121 = vst [vmem:[#allocation2 + $0x910] sm:$0x3] %v3052_v37  ;;  %v3064_v25 = vld [vmem:[%s4717_s6 + $0x90] sm:$0x3] }
 0x2fb   :  { %v3751_v40 = vadd.f32 %v3199_v34, %v1565_v33  ;;  %244 = vst [vmem:[#allocation2 + $0x820] sm:$0x3] %v3064_v25 }
 0x2fd   :  { %v1590_v50 = vmul.f32 %v3751_v40, %v3751_v40 }
 0x2fe   :  { %v1512_v17 = vpop.f32.mrf.mxu3 }
 0x2ff   :  { %v1559_v22 = vpop.f32.mrf.mxu0  ;;  %v1513_v23 = vadd.f32 %v1512_v17, %v1468_v18  ;;  %v3056_v17 = vld [vmem:[%s4717_s6 + $0x50] sm:$0x3]  ;;  %v1706_v33 = vld [vmem:[#allocation2 + $0x4d8] sm:$0xff] }
 0x300   :  { %162 = vst [vmem:[#allocation2 + $0xbe8] sm:$0x3] %v3056_v17  ;;  %2236 = vmatpush.msra.mxu1 %v1706_v33  ;;  %v4003_v33 = vld [vmem:[%s4717_s6 + $0x160] sm:$0xff] }
 0x301   :  { %v1566_v31 = vadd.f32 %v1556_v19, %v1513_v23  ;;  %v3060_v19 = vld [vmem:[%s4717_s6 + $0x70] sm:$0x3]  ;;  %v3050_v23 = vld [vmem:[%s4717_s6 + $0x20] sm:$0xff] }
 0x302   :  { %v1471_v21 = vpop.f32.mrf.mxu2  ;;  %203 = vst [vmem:[#allocation2 + $0xe48] sm:$0x3] %v3060_v19  ;;  %v1834_v37 = vld [vmem:[#allocation2 + $0x820] sm:$0xff] }
 0x303   :  { %v3749_v38 = vadd.f32 %v3199_v34, %v1566_v31  ;;  %v3058_v31 = vld [vmem:[%s4717_s6 + $0x60] sm:$0xff] }
 0x305   :  { %v1580_v42 = vadd.f32 %v3749_v38, %v3751_v40  ;;  %v1591_v46 = vmul.f32 %v3749_v38, %v3749_v38 }
 0x306   :  { %v1515_v20 = vpop.f32.mrf.mxu3 }
 0x307   :  { %v1516_v26 = vadd.f32 %v1515_v20, %v1471_v21  ;;  %v1562_v36 = vpop.f32.mrf.mxu0  ;;  %v1594_v54 = vadd.f32 %v1591_v46, %v1590_v50  ;;  %v74_v21 = vld [vmem:[%s4717_s6] sm:$0xff] }
 0x308   :  { %2237 = vmatpush.msra.mxu1 %v74_v21 }
 0x309   :  { %v1567_v35 = vadd.f32 %v1559_v22, %v1516_v26  ;;  %v1802_v46 = vld [vmem:[#allocation2 + $0xe48] sm:$0xff] }
 0x30a   :  { %v1474_v29 = vpop.f32.mrf.mxu2  ;;  %2296 = vmatpush.msrb.mxu0 %v1802_v46  ;;  %2302 = vmatpush.msrb.mxu1 %v3771_v45 }
 0x30b   :  { %v3753_v41 = vadd.f32 %v3199_v34, %v1567_v35 }
 0x30c   :  { %2297 = vmatpush.msrb.mxu0 %v3058_v31  ;;  %2303 = vmatpush.msrb.mxu1 %v3771_v45  ;;  %v3989_v31 = vld [vmem:[%s4717_s6 + $0x120] sm:$0xff] }
 0x30d   :  { %v1581_v51 = vadd.f32 %v1580_v42, %v3753_v41  ;;  %v1592_v53 = vmul.f32 %v3753_v41, %v3753_v41  ;;  %v1770_v42 = vld [vmem:[#allocation2 + $0xbe8] sm:$0xff] }
 0x30e   :  { %v1518_v24 = vpop.f32.mrf.mxu3  ;;  %2276 = vmatpush.msrb.mxu3 %v1770_v42  ;;  %2362 = vmatpush.msra.mxu0 %v3771_v45 }
 0x30f   :  { %v1519_v32 = vadd.f32 %v1518_v24, %v1474_v29  ;;  %v1595_v57 = vadd.f32 %v1594_v54, %v1592_v53  ;;  %v3054_v24 = vld [vmem:[%s4717_s6 + $0x40] sm:$0xff]  ;;  %2304 = vmatpush.msrb.mxu1 %v3771_v45 }
 0x310   :  { %2277 = vmatpush.msrb.mxu3 %v3054_v24  ;;  %v3838_v53 = vld [vmem:[%s4717_s6 + $0xa0] sm:$0xff]  ;;  %2363 = vmatpush.msra.mxu0 %v3771_v45 }
 0x311   :  { %v1568_v39 = vadd.f32 %v1562_v36, %v1519_v32  ;;  %v3068_v32 = vld [vmem:[%s4717_s6 + $0xb0] sm:$0x3]  ;;  %v3844_v54 = vld [vmem:[%s4717_s6 + $0xc0] sm:$0xff]  ;;  %2305 = vmatpush.msrb.mxu1 %v3771_v45 }
 0x312   :  { %285 = vst [vmem:[#allocation2 + $0x4b8] sm:$0x3] %v3068_v32  ;;  %2342 = vmatpush.msra.mxu3 %v3771_v45  ;;  %2364 = vmatpush.msra.mxu0 %v3771_v45  ;;  %v3996_v32 = vld [vmem:[%s4717_s6 + $0x140] sm:$0xff] }
 0x313   :  { %v3759_v48 = vadd.f32 %v3199_v34, %v1568_v39  ;;  %v3072_v34 = vld [vmem:[%s4717_s6 + $0xd0] sm:$0x3]  ;;  %2306 = vmatpush.msrb.mxu1 %v3771_v45 }
 0x314   :  { %v3076_v39 = vld [vmem:[%s4717_s6 + $0xf0] sm:$0x3]  ;;  %326 = vst [vmem:[#allocation2 + $0x1e0] sm:$0x3] %v3072_v34  ;;  %2343 = vmatpush.msra.mxu3 %v3771_v45  ;;  %2365 = vmatpush.msra.mxu0 %v3771_v45 }
 0x315   :  { %v1582_v55 = vadd.f32 %v1581_v51, %v3759_v48  ;;  %v1593_v56 = vmul.f32 %v3759_v48, %v3759_v48  ;;  %367 = vst [vmem:[#allocation2 + $0x2a8] sm:$0x3] %v3076_v39  ;;  %2307 = vmatpush.msrb.mxu1 %v3771_v45 }
 0x316   :  { %2344 = vmatpush.msra.mxu3 %v3771_v45  ;;  %2366 = vmatpush.msra.mxu0 %v3771_v45 }
 0x317   :  { %v1583_v58 = vrot.slane %v1582_v55, 4  ;;  %v1596_v59 = vadd.f32 %v1595_v57, %v1593_v56  ;;  %2308 = vmatpush.msrb.mxu1 %v3771_v45 }
 0x318   :  { %2345 = vmatpush.msra.mxu3 %v3771_v45  ;;  %2367 = vmatpush.msra.mxu0 %v3771_v45 }
 0x319   :  { %v1584_v61 = vadd.f32 %v1583_v58, %v1582_v55  ;;  %v1597_v0 = vrot.slane %v1596_v59, 4  ;;  %v3851_v55 = vld [vmem:[%s4717_s6 + $0xe0] sm:$0xff]  ;;  %2309 = vmatpush.msrb.mxu1 %v3771_v45  ;;  %v1866_v17 = vld [vmem:[#allocation2 + $0x4b8] sm:$0xff] }
 0x31a   :  { %2346 = vmatpush.msra.mxu3 %v3771_v45  ;;  %2368 = vmatpush.msra.mxu0 %v3771_v45 }
 0x31b   :  { %v1585_v1 = vrot.slane %v1584_v61, 2  ;;  %v1598_v2 = vadd.f32 %v1597_v0, %v1596_v59  ;;  %2310 = vmatpush.msrb.mxu1 %v3771_v45  ;;  %v1898_v19 = vld [vmem:[#allocation2 + $0x1e0] sm:$0xff] }
 0x31c   :  { %2347 = vmatpush.msra.mxu3 %v3771_v45  ;;  %2369 = vmatpush.msra.mxu0 %v3771_v45 }
 0x31d   :  { %v1586_v5 = vadd.f32 %v1585_v1, %v1584_v61  ;;  %v1599_v60 = vrot.slane %v1598_v2, 2  ;;  %2311 = vmatpush.msrb.mxu1 %v3771_v45 }
 0x31e   :  { %2348 = vmatpush.msra.mxu3 %v3771_v45  ;;  %2370 = vmatpush.msra.mxu0 %v3771_v45 }
 0x31f   :  { %v1587_v44 = vrot.slane %v1586_v5, 1  ;;  %v1600_v43 = vadd.f32 %v1599_v60, %v1598_v2  ;;  %2312 = vmatpush.msrb.mxu1 %v3771_v45 }
 0x320   :  { %2349 = vmatpush.msra.mxu3 %v3771_v45  ;;  %2371 = vmatpush.msra.mxu0 %v3771_v45 }
 0x321   :  { %v1588_v62 = vadd.f32 %v1587_v44, %v1586_v5  ;;  %v1601_v63 = vrot.slane %v1600_v43, 1  ;;  %2313 = vmatpush.msrb.mxu1 %v3771_v45 }
 0x322   :  { %2350 = vmatpush.msra.mxu3 %v3771_v45  ;;  %2372 = vmatpush.msra.mxu0 %v3771_v45 }
 0x323   :  { %v1589_v3 = vmul.f32 0.03125, %v1588_v62  ;;  %v1602_v47 = vadd.f32 %v1601_v63, %v1600_v43  ;;  %2314 = vmatpush.msrb.mxu1 %v3771_v45 }
 0x324   :  { %2351 = vmatpush.msra.mxu3 %v3771_v45  ;;  %2373 = vmatpush.msra.mxu0 %v3771_v45 }
 0x325   :  { %v1603_v8 = vmul.f32 0.03125, %v1602_v47  ;;  %v1604_v9 = vmul.f32 %v1589_v3, %v1589_v3  ;;  %2315 = vmatpush.msrb.mxu1 %v3771_v45 }
 0x326   :  { %2352 = vmatpush.msra.mxu3 %v3771_v45  ;;  %2374 = vmatpush.msra.mxu0 %v3771_v45 }
 0x327   :  { %v1605_v10 = vsub.f32 %v1603_v8, %v1604_v9  ;;  %2316 = vmatpush.msrb.mxu1 %v1834_v37 }
 0x328   :  { %2353 = vmatpush.msra.mxu3 %v3771_v45  ;;  %2375 = vmatpush.msra.mxu0 %v3771_v45 }
 0x329   :  { %v1606_v11 = vmax.f32 %v1605_v10, 0.0 }
 0x32a   :  { %2354 = vmatpush.msra.mxu3 %v3771_v45 }
 0x32b   :  { %v1607_v49 = vadd.f32 1e-05, %v1606_v11 }
 0x32c   :  { %2355 = vmatpush.msra.mxu3 %v3771_v45 }
 0x32d   :  { %3207 = vrsqrt.f32 %v1607_v49  ;;  %vm1614_vm1 = vweird.f32 %v1607_v49 }
 0x32e   :  { %2356 = vmatpush.msra.mxu3 %v1898_v19 }
 0x330   :  { %2357 = vmatpush.msra.mxu3 %v3844_v54 }
 0x333   :  { %v3208_v52 = vpop.eup %3207 }
 0x334   :  { %v1609_v30 = vmul.f32 %v3208_v52, %v1607_v49  ;;  %vm1615_vm0 = vweird.f32 %v3208_v52 }
 0x335   :  { %vm1616_vm2 = vmor %vm1614_vm1, %vm1615_vm0 }
 0x336   :  { %v1610_v4 = vmul.f32 %v3208_v52, %v1609_v30 }
 0x338   :  { %v1611_v6 = vmul.f32 0.5, %v1610_v4 }
 0x33a   :  { %v1612_v12 = vsub.f32 1.5, %v1611_v6 }
 0x33c   :  { %v1613_v28 = vmul.f32 %v3208_v52, %v1612_v12 }
 0x33e   :  { %v1617_v14 = vsel %vm1616_vm2, %v3208_v52, %v1613_v28 }
 0x33f   :  { %v1618_v15 = vmul.f32 %v3180_v13, %v1617_v14 }
 0x341   :  { %v1619_v16 = vmul.f32 %v1618_v15, %v1589_v3  ;;  %v3795_v20 = vperm.slane %v1618_v15, 0 }
 0x343   :  { %v1620_v18 = vsub.f32 %v3181_v7, %v1619_v16  ;;  %v1625_v26 = vmul.f32 %v3795_v20, %v3749_v38  ;;  %v1627_v29 = vmul.f32 %v3795_v20, %v3759_v48  ;;  %v1738_v38 = vld [vmem:[#allocation2 + $0x910] sm:$0xff]  ;;  %v3832_v48 = vld [vmem:[%s4717_s6 + $0x80] sm:$0xff]  ;;  %v1624_v30 = vmul.f32 %v3795_v20, %v3751_v40 }
 0x344   :  { %2256 = vmatpush.msra.mxu2 %v1738_v38  ;;  %v1626_v4 = vmul.f32 %v3795_v20, %v3753_v41  ;;  %v3080_v16 = vld [vmem:[%s4717_s6 + $0x110] sm:$0x3]  ;;  %v1930_v20 = vld [vmem:[#allocation2 + $0x2a8] sm:$0xff]  ;;  %2317 = vmatpush.msrb.mxu1 %v3832_v48 }
 0x345   :  { %v3800_v22 = vperm.slane %v1620_v18, 0  ;;  %v3084_v7 = vld [vmem:[%s4717_s6 + $0x130] sm:$0x3]  ;;  %408 = vst [vmem:[#allocation2 + $0x5a0] sm:$0x3] %v3080_v16  ;;  %2376 = vmatpush.msra.mxu0 %v1930_v20  ;;  %v4292_v20 = vld [vmem:[%s4717_s6 + $0x88] sm:$0xff] }
 0x346   :  { %2257 = vmatpush.msra.mxu2 %v3050_v23  ;;  %v3092_v18 = vld [vmem:[%s4717_s6 + $0x170] sm:$0x3]  ;;  %449 = vst [vmem:[#allocation2 + $0xfd0] sm:$0x3] %v3084_v7  ;;  %v3069_v16 = vld [vmem:[%s4717_s6 + $0xb8] sm:$0x3] }
 0x347   :  { %v1632_v35 = vadd.f32 %v3800_v22, %v1625_v26  ;;  %v1634_v36 = vadd.f32 %v3800_v22, %v1627_v29  ;;  %v1631_v6 = vadd.f32 %v3800_v22, %v1624_v30  ;;  %v1633_v12 = vadd.f32 %v3800_v22, %v1626_v4  ;;  %531 = vst [vmem:[#allocation2 + $0x638] sm:$0x3] %v3092_v18  ;;  %v3982_v29 = vld [vmem:[%s4717_s6 + $0x100] sm:$0xff]  ;;  %v3061_v30 = vld [vmem:[%s4717_s6 + $0x78] sm:$0x3] }
 0x348   :  { %2322 = vmatpush.msrb.mxu2 %v3771_v45  ;;  %2377 = vmatpush.msra.mxu0 %v3851_v55  ;;  %v3096_v55 = vld [vmem:[%s4717_s6 + $0x190] sm:$0x3]  ;;  %204 = vst [vmem:[#allocation2 + $0xe80] sm:$0x3] %v3061_v30  ;;  %v3073_v7 = vld [vmem:[%s4717_s6 + $0xd8] sm:$0x3] }
 0x349   :  { %v1636_v50 = vmax.f32 %v1632_v35, 0.0  ;;  %v1638_v51 = vmax.f32 %v1634_v36, 0.0  ;;  %v3917_v40 = vmax.f32 %v1631_v6, 0.0  ;;  %v3919_v41 = vmax.f32 %v1633_v12, 0.0  ;;  %572 = vst [vmem:[#allocation2 + $0x548] sm:$0x3] %v3096_v55 }
 0x34a   :  { %2323 = vmatpush.msrb.mxu2 %v3771_v45  ;;  %286 = vst [vmem:[#allocation2 + $0x4c8] sm:$0x3] %v3069_v16 }
 0x34b   :  { %v1674_v56 = vrot.slane %v1638_v51, 7  ;;  %v1677_v57 = vrot.slane %v1636_v50, 1  ;;  %v1680_v58 = vrot.slane %v1636_v50, 2  ;;  %v1681_v59 = vrot.slane %v1638_v51, 1  ;;  %327 = vst [vmem:[#allocation2 + $0xf90] sm:$0x3] %v3073_v7 }
 0x34c   :  { %2324 = vmatpush.msrb.mxu2 %v3771_v45  ;;  %v1684_v61 = vrot.slane %v1636_v50, 3  ;;  %v1685_v2 = vrot.slane %v1638_v51, 2  ;;  %v1688_v60 = vrot.slane %v1636_v50, 4  ;;  %v1689_v44 = vrot.slane %v1638_v51, 3 }
 0x34d   :  { %v3862_v0 = vsel %vm1642_vm3, %v1674_v56, %v1636_v50  ;;  %v3865_v1 = vsel %vm1642_vm3, %v1638_v51, %v1677_v57  ;;  %v3870_v5 = vsel %vm1642_vm3, %v1681_v59, %v1680_v58  ;;  %v1692_v43 = vrot.slane %v1636_v50, 5  ;;  %v3100_v56 = vld [vmem:[%s4717_s6 + $0x1b0] sm:$0x3]  ;;  %v1962_v59 = vld [vmem:[#allocation2 + $0x5a0] sm:$0xff] }
 0x34e   :  { %2325 = vmatpush.msrb.mxu2 %v3771_v45  ;;  %v3875_v62 = vsel %vm1642_vm3, %v1685_v2, %v1684_v61  ;;  %v1693_v63 = vrot.slane %v1638_v51, 4  ;;  %v1696_v3 = vrot.slane %v1636_v50, 6  ;;  %v1697_v47 = vrot.slane %v1638_v51, 5  ;;  %v3104_v57 = vld [vmem:[%s4717_s6 + $0x1d0] sm:$0x3]  ;;  %v2026_v2 = vld [vmem:[#allocation2 + $0xf80] sm:$0xff] }
 0x34f   :  { %v3880_v8 = vsel %vm1642_vm3, %v1689_v44, %v1688_v60  ;;  %v1700_v9 = vrot.slane %v1636_v50, 7  ;;  %v1701_v10 = vrot.slane %v1638_v51, 6  ;;  %v1641_v28 = vrot.slane %v3919_v41, 7  ;;  %v3108_v58 = vld [vmem:[%s4717_s6 + $0x1f0] sm:$0x3]  ;;  %v2058_v60 = vld [vmem:[#allocation2 + $0x638] sm:$0xff] }
 0x350   :  { %2326 = vmatpush.msrb.mxu2 %v3771_v45  ;;  %v3885_v11 = vsel %vm1642_vm3, %v1693_v63, %v1692_v43  ;;  %v3888_v49 = vsel %vm1642_vm3, %v1697_v47, %v1696_v3  ;;  %v1645_v13 = vrot.slane %v3917_v40, 1  ;;  %v1648_v14 = vrot.slane %v3917_v40, 2  ;;  %613 = vst [vmem:[#allocation2 + $0x5f0] sm:$0x3] %v3100_v56  ;;  %v1994_v61 = vld [vmem:[#allocation2 + $0xfd0] sm:$0xff]  ;;  %v4098_v44 = vld [vmem:[%s4717_s6 + $0x180] sm:$0xff] }
 0x351   :  { %v3893_v52 = vsel %vm1642_vm3, %v1701_v10, %v1700_v9  ;;  %v1649_v15 = vrot.slane %v3919_v41, 1  ;;  %v1652_v21 = vrot.slane %v3917_v40, 3  ;;  %v1653_v22 = vrot.slane %v3919_v41, 2  ;;  %654 = vst [vmem:[#allocation2 + $0x260] sm:$0x3] %v3104_v57  ;;  %v4105_v43 = vld [vmem:[%s4717_s6 + $0x1a0] sm:$0xff] }
 0x352   :  { %2327 = vmatpush.msrb.mxu2 %v3771_v45  ;;  %v3959_v23 = vsel %vm1642_vm3, %v1641_v28, %v3917_v40  ;;  %v3963_v24 = vsel %vm1642_vm3, %v3919_v41, %v1645_v13  ;;  %v1656_v34 = vrot.slane %v3917_v40, 4  ;;  %v1657_v35 = vrot.slane %v3919_v41, 3  ;;  %695 = vst [vmem:[#allocation2 + $0xe38] sm:$0x3] %v3108_v58  ;;  %v4112_v63 = vld [vmem:[%s4717_s6 + $0x1c0] sm:$0xff]  ;;  %v2090_v4 = vld [vmem:[#allocation2 + $0x548] sm:$0xff] }
 0x353   :  { %v3968_v25 = vsel %vm1642_vm3, %v1649_v15, %v1648_v14  ;;  %v3971_v26 = vsel %vm1642_vm3, %v1653_v22, %v1652_v21  ;;  %2238 = vmatmul.f32.vlgmr.msra.gmra.mxu1 %v3959_v23  ;;  %2258 = vmatmul.f32.vlgmr.msra.gmra.mxu2 %v3963_v24  ;;  %v1660_v36 = vrot.slane %v3917_v40, 5  ;;  %v1661_v38 = vrot.slane %v3919_v41, 4  ;;  %v4119_v3 = vld [vmem:[%s4717_s6 + $0x1e0] sm:$0xff]  ;;  %v77_v47 = vld [vmem:[%s4717_s6 + $0x18] sm:$0x3]  ;;  %v4201_v28 = vld [vmem:[%s4717_s6 + $0x28] sm:$0xff] }
 0x354   :  { %2328 = vmatpush.msrb.mxu2 %v3771_v45  ;;  %2278 = vmatmul.f32.vlgmr.msrb.gmra.mxu3 %v3968_v25  ;;  %v1664_v39 = vrot.slane %v3917_v40, 6  ;;  %v1665_v42 = vrot.slane %v3919_v41, 5  ;;  %v1668_v46 = vrot.slane %v3917_v40, 7  ;;  %v1669_v48 = vrot.slane %v3919_v41, 6  ;;  %v3053_v9 = vld [vmem:[%s4717_s6 + $0x38] sm:$0x3] }
 0x355   :  { %2298 = vmatmul.f32.vlgmr.msrb.gmra.mxu0 %v3971_v26  ;;  %2382 = vmatpush.msra.mxu1 %v3771_v45  ;;  %v4024_v50 = vsel %vm1642_vm3, %v1657_v35, %v1656_v34  ;;  %v4027_v51 = vsel %vm1642_vm3, %v1661_v38, %v1660_v36  ;;  %v3057_v10 = vld [vmem:[%s4717_s6 + $0x58] sm:$0x3]  ;;  %81 = vst [vmem:[#allocation2 + $0x818] sm:$0x3] %v77_v47  ;;  %v4194_v41 = vld [vmem:[%s4717_s6 + $0x8] sm:$0xff]  ;;  %v1803_v19 = vld [vmem:[#allocation2 + $0xe80] sm:$0xff] }
 0x356   :  { %2329 = vmatpush.msrb.mxu2 %v3771_v45  ;;  %2422 = vmatpush.msrb.mxu3 %v3771_v45  ;;  %v4035_v54 = vsel %vm1642_vm3, %v1669_v48, %v1668_v46  ;;  %122 = vst [vmem:[#allocation2 + $0xbd0] sm:$0x3] %v3053_v9  ;;  %v4208_v13 = vld [vmem:[%s4717_s6 + $0x48] sm:$0xff]  ;;  %v3065_v15 = vld [vmem:[%s4717_s6 + $0x98] sm:$0x3] }
 0x357   :  { %2442 = vmatpush.msrb.mxu0 %v3771_v45  ;;  %2383 = vmatpush.msra.mxu1 %v3771_v45  ;;  %v2122_v6 = vld [vmem:[#allocation2 + $0x5f0] sm:$0xff]  ;;  %163 = vst [vmem:[#allocation2 + $0xd30] sm:$0x3] %v3057_v10  ;;  %v4215_v14 = vld [vmem:[%s4717_s6 + $0x68] sm:$0xff]  ;;  %v3101_v46 = vld [vmem:[%s4717_s6 + $0x1b8] sm:$0x3] }
 0x358   :  { %2330 = vmatpush.msrb.mxu2 %v3771_v45  ;;  %2423 = vmatpush.msrb.mxu3 %v3771_v45  ;;  %v2154_v12 = vld [vmem:[#allocation2 + $0x260] sm:$0xff]  ;;  %245 = vst [vmem:[#allocation2 + $0x8c8] sm:$0x3] %v3065_v15  ;;  %v4299_v21 = vld [vmem:[%s4717_s6 + $0xa8] sm:$0xff]  ;;  %v3105_v48 = vld [vmem:[%s4717_s6 + $0x1d8] sm:$0x3] }
 0x359   :  { %2443 = vmatpush.msrb.mxu0 %v3771_v45  ;;  %2384 = vmatpush.msra.mxu1 %v3771_v45  ;;  %v2186_v40 = vld [vmem:[#allocation2 + $0xe38] sm:$0xff]  ;;  %v4306_v22 = vld [vmem:[%s4717_s6 + $0xc8] sm:$0xff]  ;;  %614 = vst [vmem:[#allocation2 + $0x7a0] sm:$0x3] %v3101_v46 }
 0x35a   :  { %2331 = vmatpush.msrb.mxu2 %v3771_v45  ;;  %2424 = vmatpush.msrb.mxu3 %v3771_v45  ;;  %v4388_v35 = vld [vmem:[%s4717_s6 + $0x108] sm:$0xff]  ;;  %655 = vst [vmem:[#allocation2 + $0x3a8] sm:$0x3] %v3105_v48 }
 0x35b   :  { %2444 = vmatpush.msrb.mxu0 %v3771_v45  ;;  %2385 = vmatpush.msra.mxu1 %v3771_v45  ;;  %v4395_v36 = vld [vmem:[%s4717_s6 + $0x128] sm:$0xff] }
 0x35c   :  { %2332 = vmatpush.msrb.mxu2 %v3771_v45  ;;  %2425 = vmatpush.msrb.mxu3 %v3771_v45  ;;  %v1707_v37 = vld [vmem:[#allocation2 + $0x818] sm:$0xff]  ;;  %v4402_v38 = vld [vmem:[%s4717_s6 + $0x148] sm:$0xff] }
 0x35d   :  { %2445 = vmatpush.msrb.mxu0 %v3771_v45  ;;  %2318 = vmatmul.f32.vlgmr.msrb.gmra.mxu1 %v4024_v50  ;;  %v4484_v56 = vld [vmem:[%s4717_s6 + $0x188] sm:$0xff] }
 0x35e   :  { %2333 = vmatpush.msrb.mxu2 %v3771_v45  ;;  %2378 = vmatmul.f32.vlgmr.msra.gmra.mxu0 %v4035_v54  ;;  %v1771_v18 = vld [vmem:[#allocation2 + $0xd30] sm:$0xff]  ;;  %v4491_v57 = vld [vmem:[%s4717_s6 + $0x1a8] sm:$0xff] }
 0x35f   :  { %2386 = vmatpush.msra.mxu1 %v3771_v45  ;;  %2426 = vmatpush.msrb.mxu3 %v3771_v45  ;;  %v4498_v58 = vld [vmem:[%s4717_s6 + $0x1c8] sm:$0xff] }
 0x360   :  { %2334 = vmatpush.msrb.mxu2 %v3771_v45  ;;  %2446 = vmatpush.msrb.mxu0 %v3771_v45 }
 0x361   :  { %2387 = vmatpush.msra.mxu1 %v3771_v45  ;;  %2427 = vmatpush.msrb.mxu3 %v3771_v45 }
 0x362   :  { %2335 = vmatpush.msrb.mxu2 %v3771_v45  ;;  %2447 = vmatpush.msrb.mxu0 %v3771_v45 }
 0x363   :  { %2388 = vmatpush.msra.mxu1 %v3771_v45  ;;  %2428 = vmatpush.msrb.mxu3 %v3771_v45 }
 0x364   :  { %2336 = vmatpush.msrb.mxu2 %v1866_v17  ;;  %2448 = vmatpush.msrb.mxu0 %v3771_v45  ;;  %v1739_v17 = vld [vmem:[#allocation2 + $0xbd0] sm:$0xff] }
 0x365   :  { %2389 = vmatpush.msra.mxu1 %v3771_v45  ;;  %2429 = vmatpush.msrb.mxu3 %v3771_v45 }
 0x366   :  { %2337 = vmatpush.msrb.mxu2 %v3838_v53  ;;  %v4032_v53 = vsel %vm1642_vm3, %v1665_v42, %v1664_v39  ;;  %2449 = vmatpush.msrb.mxu0 %v3771_v45  ;;  %v4409_v39 = vld [vmem:[%s4717_s6 + $0x168] sm:$0xff]  ;;  %v3097_v42 = vld [vmem:[%s4717_s6 + $0x198] sm:$0x3] }
 0x367   :  { %2338 = vmatmul.f32.vlgmr.msrb.gmra.mxu2 %v4027_v51  ;;  %2358 = vmatmul.f32.vlgmr.msra.gmra.mxu3 %v4032_v53  ;;  %573 = vst [vmem:[#allocation2 + $0x1e8] sm:$0x3] %v3097_v42 }
 0x368   :  { %2402 = vmatpush.msra.mxu2 %v3771_v45  ;;  %2390 = vmatpush.msra.mxu1 %v3771_v45 }
 0x369   :  { %2430 = vmatpush.msrb.mxu3 %v3771_v45  ;;  %2450 = vmatpush.msrb.mxu0 %v3771_v45 }
 0x36a   :  { %2403 = vmatpush.msra.mxu2 %v3771_v45  ;;  %2391 = vmatpush.msra.mxu1 %v3771_v45 }
 0x36b   :  { %2431 = vmatpush.msrb.mxu3 %v3771_v45  ;;  %2451 = vmatpush.msrb.mxu0 %v3771_v45 }
 0x36c   :  { %2404 = vmatpush.msra.mxu2 %v3771_v45  ;;  %2392 = vmatpush.msra.mxu1 %v3771_v45 }
 0x36d   :  { %2432 = vmatpush.msrb.mxu3 %v3771_v45  ;;  %2452 = vmatpush.msrb.mxu0 %v3771_v45 }
 0x36e   :  { %2405 = vmatpush.msra.mxu2 %v3771_v45  ;;  %2393 = vmatpush.msra.mxu1 %v3771_v45 }
 0x36f   :  { %2433 = vmatpush.msrb.mxu3 %v3771_v45  ;;  %2453 = vmatpush.msrb.mxu0 %v3771_v45 }
 0x370   :  { %2406 = vmatpush.msra.mxu2 %v3771_v45  ;;  %2394 = vmatpush.msra.mxu1 %v3771_v45 }
 0x371   :  { %2434 = vmatpush.msrb.mxu3 %v3771_v45  ;;  %2454 = vmatpush.msrb.mxu0 %v3771_v45 }
 0x372   :  { %2407 = vmatpush.msra.mxu2 %v3771_v45  ;;  %2395 = vmatpush.msra.mxu1 %v3771_v45 }
 0x373   :  { %2435 = vmatpush.msrb.mxu3 %v3771_v45  ;;  %2455 = vmatpush.msrb.mxu0 %v3771_v45 }
 0x374   :  { %2408 = vmatpush.msra.mxu2 %v3771_v45  ;;  %2396 = vmatpush.msra.mxu1 %v1962_v59 }
 0x375   :  { %2436 = vmatpush.msrb.mxu3 %v2026_v2  ;;  %2456 = vmatpush.msrb.mxu0 %v2058_v60 }
 0x376   :  { %2409 = vmatpush.msra.mxu2 %v3771_v45  ;;  %2397 = vmatpush.msra.mxu1 %v3982_v29  ;;  %v3093_v29 = vld [vmem:[%s4717_s6 + $0x178] sm:$0x3] }
 0x377   :  { %2437 = vmatpush.msrb.mxu3 %v3996_v32  ;;  %2457 = vmatpush.msrb.mxu0 %v4003_v33  ;;  %v1867_v32 = vld [vmem:[#allocation2 + $0x4c8] sm:$0xff]  ;;  %v1899_v33 = vld [vmem:[#allocation2 + $0xf90] sm:$0xff]  ;;  %532 = vst [vmem:[#allocation2 + $0x870] sm:$0x3] %v3093_v29 }
 0x378   :  { %2410 = vmatpush.msra.mxu2 %v3771_v45  ;;  %2398 = vmatmul.f32.vlgmr.msra.gmra.mxu1 %v3862_v0 }
 0x379   :  { %2438 = vmatmul.f32.vlgmr.msrb.gmra.mxu3 %v3870_v5  ;;  %2458 = vmatmul.f32.vlgmr.msrb.gmra.mxu0 %v3875_v62 }
 0x37a   :  { %2411 = vmatpush.msra.mxu2 %v3771_v45  ;;  %2462 = vmatpush.msrb.mxu1 %v3771_v45 }
 0x37b   :  { %2502 = vmatpush.msra.mxu3 %v3771_v45  ;;  %2522 = vmatpush.msra.mxu0 %v3771_v45 }
 0x37c   :  { %2412 = vmatpush.msra.mxu2 %v3771_v45  ;;  %2463 = vmatpush.msrb.mxu1 %v3771_v45 }
 0x37d   :  { %2503 = vmatpush.msra.mxu3 %v3771_v45  ;;  %2523 = vmatpush.msra.mxu0 %v3771_v45 }
 0x37e   :  { %2413 = vmatpush.msra.mxu2 %v3771_v45  ;;  %2464 = vmatpush.msrb.mxu1 %v3771_v45  ;;  %v2059_v55 = vld [vmem:[#allocation2 + $0x870] sm:$0xff] }
 0x37f   :  { %2504 = vmatpush.msra.mxu3 %v3771_v45  ;;  %2524 = vmatpush.msra.mxu0 %v3771_v45 }
 0x380   :  { %2414 = vmatpush.msra.mxu2 %v3771_v45  ;;  %2465 = vmatpush.msrb.mxu1 %v3771_v45 }
 0x381   :  { %2505 = vmatpush.msra.mxu3 %v3771_v45  ;;  %2525 = vmatpush.msra.mxu0 %v3771_v45 }
 0x382   :  { %2415 = vmatpush.msra.mxu2 %v3771_v45  ;;  %2466 = vmatpush.msrb.mxu1 %v3771_v45 }
 0x383   :  { %2506 = vmatpush.msra.mxu3 %v3771_v45  ;;  %2526 = vmatpush.msra.mxu0 %v3771_v45 }
 0x384   :  { %2416 = vmatpush.msra.mxu2 %v1994_v61  ;;  %2467 = vmatpush.msrb.mxu1 %v3771_v45  ;;  %v2216_v61 = vld [vmem:[%s4718_s7] sm:$0x3] }
 0x385   :  { %2507 = vmatpush.msra.mxu3 %v3771_v45  ;;  %2527 = vmatpush.msra.mxu0 %v3771_v45  ;;  %v2218_v2 = vperm.slane %v2216_v61, 0 }
 0x386   :  { %2417 = vmatpush.msra.mxu2 %v3989_v31  ;;  %2468 = vmatpush.msrb.mxu1 %v3771_v45  ;;  %v1835_v31 = vld [vmem:[#allocation2 + $0x8c8] sm:$0xff] }
 0x387   :  { %2418 = vmatmul.f32.vlgmr.msra.gmra.mxu2 %v3865_v1  ;;  %2508 = vmatpush.msra.mxu3 %v3771_v45 }
 0x388   :  { %2482 = vmatpush.msrb.mxu2 %v3771_v45  ;;  %2528 = vmatpush.msra.mxu0 %v3771_v45 }
 0x389   :  { %2469 = vmatpush.msrb.mxu1 %v3771_v45  ;;  %2509 = vmatpush.msra.mxu3 %v3771_v45 }
 0x38a   :  { %2483 = vmatpush.msrb.mxu2 %v3771_v45  ;;  %2529 = vmatpush.msra.mxu0 %v3771_v45 }
 0x38b   :  { %2470 = vmatpush.msrb.mxu1 %v3771_v45  ;;  %2510 = vmatpush.msra.mxu3 %v3771_v45 }
 0x38c   :  { %2484 = vmatpush.msrb.mxu2 %v3771_v45  ;;  %2530 = vmatpush.msra.mxu0 %v3771_v45 }
 0x38d   :  { %2471 = vmatpush.msrb.mxu1 %v3771_v45  ;;  %2511 = vmatpush.msra.mxu3 %v3771_v45 }
 0x38e   :  { %2485 = vmatpush.msrb.mxu2 %v3771_v45  ;;  %2531 = vmatpush.msra.mxu0 %v3771_v45 }
 0x38f   :  { %2472 = vmatpush.msrb.mxu1 %v3771_v45  ;;  %2512 = vmatpush.msra.mxu3 %v3771_v45 }
 0x390   :  { %2486 = vmatpush.msrb.mxu2 %v3771_v45  ;;  %2532 = vmatpush.msra.mxu0 %v3771_v45 }
 0x391   :  { %2473 = vmatpush.msrb.mxu1 %v3771_v45  ;;  %2513 = vmatpush.msra.mxu3 %v3771_v45 }
 0x392   :  { %2487 = vmatpush.msrb.mxu2 %v3771_v45  ;;  %2533 = vmatpush.msra.mxu0 %v3771_v45 }
 0x393   :  { %2474 = vmatpush.msrb.mxu1 %v3771_v45  ;;  %2514 = vmatpush.msra.mxu3 %v3771_v45 }
 0x394   :  { %2488 = vmatpush.msrb.mxu2 %v3771_v45  ;;  %2534 = vmatpush.msra.mxu0 %v3771_v45 }
 0x395   :  { %2475 = vmatpush.msrb.mxu1 %v3771_v45  ;;  %2515 = vmatpush.msra.mxu3 %v3771_v45 }
 0x396   :  { %2489 = vmatpush.msrb.mxu2 %v3771_v45  ;;  %2535 = vmatpush.msra.mxu0 %v3771_v45 }
 0x397   :  { %2476 = vmatpush.msrb.mxu1 %v2090_v4  ;;  %2516 = vmatpush.msra.mxu3 %v2154_v12 }
 0x398   :  { %2490 = vmatpush.msrb.mxu2 %v3771_v45  ;;  %2536 = vmatpush.msra.mxu0 %v2186_v40 }
 0x399   :  { %2477 = vmatpush.msrb.mxu1 %v4098_v44  ;;  %2517 = vmatpush.msra.mxu3 %v4112_v63 }
 0x39a   :  { %2491 = vmatpush.msrb.mxu2 %v3771_v45  ;;  %2537 = vmatpush.msra.mxu0 %v4119_v3 }
 0x39b   :  { %2478 = vmatmul.f32.vlgmr.msrb.gmra.mxu1 %v3880_v8  ;;  %2518 = vmatmul.f32.vlgmr.msra.gmra.mxu3 %v3888_v49 }
 0x39c   :  { %2492 = vmatpush.msrb.mxu2 %v3771_v45  ;;  %2538 = vmatmul.f32.vlgmr.msra.gmra.mxu0 %v3893_v52 }
 0x39d   :  { %2542 = vmatpush.msra.mxu1 %v3771_v45  ;;  %2582 = vmatpush.msrb.mxu3 %v3771_v45 }
 0x39e   :  { %2493 = vmatpush.msrb.mxu2 %v3771_v45  ;;  %2602 = vmatpush.msrb.mxu0 %v3771_v45 }
 0x39f   :  { %2543 = vmatpush.msra.mxu1 %v3771_v45  ;;  %2583 = vmatpush.msrb.mxu3 %v3771_v45 }
 0x3a0   :  { %2494 = vmatpush.msrb.mxu2 %v3771_v45  ;;  %2603 = vmatpush.msrb.mxu0 %v3771_v45 }
 0x3a1   :  { %2544 = vmatpush.msra.mxu1 %v3771_v45  ;;  %2584 = vmatpush.msrb.mxu3 %v3771_v45 }
 0x3a2   :  { %2495 = vmatpush.msrb.mxu2 %v3771_v45  ;;  %2604 = vmatpush.msrb.mxu0 %v3771_v45 }
 0x3a3   :  { %2545 = vmatpush.msra.mxu1 %v3771_v45  ;;  %2585 = vmatpush.msrb.mxu3 %v3771_v45 }
 0x3a4   :  { %2496 = vmatpush.msrb.mxu2 %v2122_v6  ;;  %2605 = vmatpush.msrb.mxu0 %v3771_v45 }
 0x3a5   :  { %2546 = vmatpush.msra.mxu1 %v3771_v45  ;;  %2586 = vmatpush.msrb.mxu3 %v3771_v45 }
 0x3a6   :  { %2497 = vmatpush.msrb.mxu2 %v4105_v43  ;;  %2606 = vmatpush.msrb.mxu0 %v3771_v45 }
 0x3a7   :  { %2498 = vmatmul.f32.vlgmr.msrb.gmra.mxu2 %v3885_v11  ;;  %2547 = vmatpush.msra.mxu1 %v3771_v45 }
 0x3a8   :  { %2562 = vmatpush.msra.mxu2 %v3771_v45  ;;  %2587 = vmatpush.msrb.mxu3 %v3771_v45 }
 0x3a9   :  { %2607 = vmatpush.msrb.mxu0 %v3771_v45  ;;  %2548 = vmatpush.msra.mxu1 %v3771_v45 }
 0x3aa   :  { %2563 = vmatpush.msra.mxu2 %v3771_v45  ;;  %2588 = vmatpush.msrb.mxu3 %v3771_v45 }
 0x3ab   :  { %2608 = vmatpush.msrb.mxu0 %v3771_v45  ;;  %2549 = vmatpush.msra.mxu1 %v3771_v45 }
 0x3ac   :  { %2564 = vmatpush.msra.mxu2 %v3771_v45  ;;  %2589 = vmatpush.msrb.mxu3 %v3771_v45 }
 0x3ad   :  { %2609 = vmatpush.msrb.mxu0 %v3771_v45  ;;  %2550 = vmatpush.msra.mxu1 %v3771_v45 }
 0x3ae   :  { %2565 = vmatpush.msra.mxu2 %v3771_v45  ;;  %2590 = vmatpush.msrb.mxu3 %v3771_v45 }
 0x3af   :  { %2610 = vmatpush.msrb.mxu0 %v3771_v45  ;;  %2551 = vmatpush.msra.mxu1 %v3771_v45 }
 0x3b0   :  { %2566 = vmatpush.msra.mxu2 %v3771_v45  ;;  %2591 = vmatpush.msrb.mxu3 %v3771_v45 }
 0x3b1   :  { %2611 = vmatpush.msrb.mxu0 %v3771_v45  ;;  %2552 = vmatpush.msra.mxu1 %v3771_v45 }
 0x3b2   :  { %2567 = vmatpush.msra.mxu2 %v3771_v45  ;;  %2592 = vmatpush.msrb.mxu3 %v3771_v45 }
 0x3b3   :  { %2612 = vmatpush.msrb.mxu0 %v3771_v45  ;;  %2553 = vmatpush.msra.mxu1 %v3771_v45 }
 0x3b4   :  { %2568 = vmatpush.msra.mxu2 %v3771_v45  ;;  %2593 = vmatpush.msrb.mxu3 %v4270_v27 }
 0x3b5   :  { %2613 = vmatpush.msrb.mxu0 %v4270_v27  ;;  %2554 = vmatpush.msra.mxu1 %v4270_v27 }
 0x3b6   :  { %2569 = vmatpush.msra.mxu2 %v3771_v45  ;;  %2594 = vmatpush.msrb.mxu3 %v4270_v27 }
 0x3b7   :  { %2614 = vmatpush.msrb.mxu0 %v4270_v27  ;;  %2555 = vmatpush.msra.mxu1 %v4270_v27 }
 0x3b8   :  { %2570 = vmatpush.msra.mxu2 %v3771_v45  ;;  %2595 = vmatpush.msrb.mxu3 %v4270_v27 }
 0x3b9   :  { %2615 = vmatpush.msrb.mxu0 %v4270_v27  ;;  %2556 = vmatpush.msra.mxu1 %v1707_v37 }
 0x3ba   :  { %2571 = vmatpush.msra.mxu2 %v3771_v45  ;;  %2596 = vmatpush.msrb.mxu3 %v1771_v18 }
 0x3bb   :  { %2616 = vmatpush.msrb.mxu0 %v1803_v19  ;;  %2557 = vmatpush.msra.mxu1 %v4194_v41 }
 0x3bc   :  { %2572 = vmatpush.msra.mxu2 %v3771_v45  ;;  %2597 = vmatpush.msrb.mxu3 %v4208_v13 }
 0x3bd   :  { %2617 = vmatpush.msrb.mxu0 %v4215_v14  ;;  %2558 = vmatmul.f32.vlgmr.msra.gmra.mxu1 %v3959_v23  ;;  %v4313_v23 = vld [vmem:[%s4717_s6 + $0xe8] sm:$0xff] }
 0x3be   :  { %2573 = vmatpush.msra.mxu2 %v3771_v45  ;;  %v3077_v45 = vld [vmem:[%s4717_s6 + $0xf8] sm:$0x3]  ;;  %2598 = vmatmul.f32.vlgmr.msrb.gmra.mxu3 %v3968_v25 }
 0x3bf   :  { %368 = vst [vmem:[#allocation2 + $0xf78] sm:$0x3] %v3077_v45  ;;  %2618 = vmatmul.f32.vlgmr.msrb.gmra.mxu0 %v3971_v26  ;;  %2622 = vmatpush.msrb.mxu1 %v4270_v27  ;;  %v3085_v25 = vld [vmem:[%s4717_s6 + $0x138] sm:$0x3] }
 0x3c0   :  { %2574 = vmatpush.msra.mxu2 %v4270_v27  ;;  %2662 = vmatpush.msra.mxu3 %v4270_v27  ;;  %v3089_v26 = vld [vmem:[%s4717_s6 + $0x158] sm:$0x3]  ;;  %450 = vst [vmem:[#allocation2 + $0x8a8] sm:$0x3] %v3085_v25 }
 0x3c1   :  { %2682 = vmatpush.msra.mxu0 %v4270_v27  ;;  %2623 = vmatpush.msrb.mxu1 %v4270_v27  ;;  %491 = vst [vmem:[#allocation2 + $0xf50] sm:$0x3] %v3089_v26 }
 0x3c2   :  { %2575 = vmatpush.msra.mxu2 %v4270_v27  ;;  %2663 = vmatpush.msra.mxu3 %v4270_v27 }
 0x3c3   :  { %2683 = vmatpush.msra.mxu0 %v4270_v27  ;;  %2624 = vmatpush.msrb.mxu1 %v4270_v27 }
 0x3c4   :  { %2576 = vmatpush.msra.mxu2 %v1739_v17  ;;  %2664 = vmatpush.msra.mxu3 %v4270_v27  ;;  %v2219_v17 = vperm.slane %v2216_v61, 1 }
 0x3c5   :  { %2684 = vmatpush.msra.mxu0 %v4270_v27  ;;  %2625 = vmatpush.msrb.mxu1 %v4270_v27 }
 0x3c6   :  { %2577 = vmatpush.msra.mxu2 %v4201_v28  ;;  %2665 = vmatpush.msra.mxu3 %v4270_v27  ;;  %v1931_v34 = vld [vmem:[#allocation2 + $0xf78] sm:$0xff] }
 0x3c7   :  { %2578 = vmatmul.f32.vlgmr.msra.gmra.mxu2 %v3963_v24  ;;  %2685 = vmatpush.msra.mxu0 %v4270_v27  ;;  %v3081_v24 = vld [vmem:[%s4717_s6 + $0x118] sm:$0x3] }
 0x3c8   :  { %2642 = vmatpush.msrb.mxu2 %v4270_v27  ;;  %2626 = vmatpush.msrb.mxu1 %v4270_v27  ;;  %409 = vst [vmem:[#allocation2 + $0xc60] sm:$0x3] %v3081_v24 }
 0x3c9   :  { %2666 = vmatpush.msra.mxu3 %v4270_v27  ;;  %2686 = vmatpush.msra.mxu0 %v4270_v27 }
 0x3ca   :  { %2643 = vmatpush.msrb.mxu2 %v4270_v27  ;;  %2627 = vmatpush.msrb.mxu1 %v4270_v27 }
 0x3cb   :  { %2667 = vmatpush.msra.mxu3 %v4270_v27  ;;  %2687 = vmatpush.msra.mxu0 %v4270_v27 }
 0x3cc   :  { %2644 = vmatpush.msrb.mxu2 %v4270_v27  ;;  %2628 = vmatpush.msrb.mxu1 %v4270_v27 }
 0x3cd   :  { %2668 = vmatpush.msra.mxu3 %v4270_v27  ;;  %2688 = vmatpush.msra.mxu0 %v4270_v27 }
 0x3ce   :  { %2645 = vmatpush.msrb.mxu2 %v4270_v27  ;;  %2629 = vmatpush.msrb.mxu1 %v4270_v27 }
 0x3cf   :  { %2669 = vmatpush.msra.mxu3 %v4270_v27  ;;  %2689 = vmatpush.msra.mxu0 %v4270_v27 }
 0x3d0   :  { %2646 = vmatpush.msrb.mxu2 %v4270_v27  ;;  %2630 = vmatpush.msrb.mxu1 %v4270_v27  ;;  %v2239_v60 = vpop.f32.mrf.mxu1 }
 0x3d1   :  { %2670 = vmatpush.msra.mxu3 %v4270_v27  ;;  %2690 = vmatpush.msra.mxu0 %v4270_v27  ;;  %v2240_v43 = vadd.f32 %v2239_v60, %v2218_v2 }
 0x3d2   :  { %2647 = vmatpush.msrb.mxu2 %v4270_v27  ;;  %2631 = vmatpush.msrb.mxu1 %v4270_v27  ;;  %v2299_v9 = vpop.f32.mrf.mxu0 }
 0x3d3   :  { %2671 = vmatpush.msra.mxu3 %v4270_v27  ;;  %2691 = vmatpush.msra.mxu0 %v4270_v27 }
 0x3d4   :  { %2648 = vmatpush.msrb.mxu2 %v4270_v27  ;;  %2632 = vmatpush.msrb.mxu1 %v4270_v27 }
 0x3d5   :  { %2672 = vmatpush.msra.mxu3 %v4270_v27  ;;  %2692 = vmatpush.msra.mxu0 %v4270_v27 }
 0x3d6   :  { %2649 = vmatpush.msrb.mxu2 %v4270_v27  ;;  %2633 = vmatpush.msrb.mxu1 %v4270_v27  ;;  %v2259_v44 = vpop.f32.mrf.mxu2 }
 0x3d7   :  { %2673 = vmatpush.msra.mxu3 %v4270_v27  ;;  %2693 = vmatpush.msra.mxu0 %v4270_v27  ;;  %v2260_v63 = vadd.f32 %v2259_v44, %v2240_v43  ;;  %v2279_v3 = vpop.f32.mrf.mxu3 }
 0x3d8   :  { %2650 = vmatpush.msrb.mxu2 %v4270_v27  ;;  %2634 = vmatpush.msrb.mxu1 %v4270_v27 }
 0x3d9   :  { %2674 = vmatpush.msra.mxu3 %v4270_v27  ;;  %2694 = vmatpush.msra.mxu0 %v4270_v27  ;;  %v2280_v47 = vadd.f32 %v2279_v3, %v2260_v63 }
 0x3da   :  { %2651 = vmatpush.msrb.mxu2 %v4270_v27  ;;  %2635 = vmatpush.msrb.mxu1 %v4270_v27 }
 0x3db   :  { %2675 = vmatpush.msra.mxu3 %v4270_v27  ;;  %2695 = vmatpush.msra.mxu0 %v4270_v27  ;;  %v2300_v10 = vadd.f32 %v2299_v9, %v2280_v47 }
 0x3dc   :  { %2652 = vmatpush.msrb.mxu2 %v4270_v27  ;;  %2636 = vmatpush.msrb.mxu1 %v1835_v31 }
 0x3dd   :  { %2676 = vmatpush.msra.mxu3 %v1899_v33  ;;  %2696 = vmatpush.msra.mxu0 %v1931_v34 }
 0x3de   :  { %2653 = vmatpush.msrb.mxu2 %v4270_v27  ;;  %2637 = vmatpush.msrb.mxu1 %v4292_v20 }
 0x3df   :  { %2677 = vmatpush.msra.mxu3 %v4306_v22  ;;  %2697 = vmatpush.msra.mxu0 %v4313_v23 }
 0x3e0   :  { %2654 = vmatpush.msrb.mxu2 %v4270_v27  ;;  %2638 = vmatmul.f32.vlgmr.msrb.gmra.mxu1 %v4024_v50  ;;  %v3109_v50 = vld [vmem:[%s4717_s6 + $0x1f8] sm:$0x3] }
 0x3e1   :  { %2678 = vmatmul.f32.vlgmr.msra.gmra.mxu3 %v4032_v53  ;;  %2698 = vmatmul.f32.vlgmr.msra.gmra.mxu0 %v4035_v54  ;;  %v1995_v53 = vld [vmem:[#allocation2 + $0x8a8] sm:$0xff]  ;;  %v2027_v54 = vld [vmem:[#allocation2 + $0xf50] sm:$0xff]  ;;  %696 = vst [vmem:[#allocation2 + $0x390] sm:$0x3] %v3109_v50 }
 0x3e2   :  { %2655 = vmatpush.msrb.mxu2 %v4270_v27  ;;  %2702 = vmatpush.msra.mxu1 %v4270_v27 }
 0x3e3   :  { %2742 = vmatpush.msrb.mxu3 %v4270_v27  ;;  %2762 = vmatpush.msrb.mxu0 %v4270_v27 }
 0x3e4   :  { %2656 = vmatpush.msrb.mxu2 %v1867_v32  ;;  %2703 = vmatpush.msra.mxu1 %v4270_v27 }
 0x3e5   :  { %2743 = vmatpush.msrb.mxu3 %v4270_v27  ;;  %2763 = vmatpush.msrb.mxu0 %v4270_v27 }
 0x3e6   :  { %2657 = vmatpush.msrb.mxu2 %v4299_v21  ;;  %2704 = vmatpush.msra.mxu1 %v4270_v27 }
 0x3e7   :  { %2658 = vmatmul.f32.vlgmr.msrb.gmra.mxu2 %v4027_v51  ;;  %2744 = vmatpush.msrb.mxu3 %v4270_v27  ;;  %v1963_v51 = vld [vmem:[#allocation2 + $0xc60] sm:$0xff] }
 0x3e8   :  { %2722 = vmatpush.msra.mxu2 %v4270_v27  ;;  %2764 = vmatpush.msrb.mxu0 %v4270_v27  ;;  %v2187_v59 = vld [vmem:[#allocation2 + $0x390] sm:$0xff] }
 0x3e9   :  { %2705 = vmatpush.msra.mxu1 %v4270_v27  ;;  %2745 = vmatpush.msrb.mxu3 %v4270_v27 }
 0x3ea   :  { %2723 = vmatpush.msra.mxu2 %v4270_v27  ;;  %2765 = vmatpush.msrb.mxu0 %v4270_v27 }
 0x3eb   :  { %2706 = vmatpush.msra.mxu1 %v4270_v27  ;;  %2746 = vmatpush.msrb.mxu3 %v4270_v27 }
 0x3ec   :  { %2724 = vmatpush.msra.mxu2 %v4270_v27  ;;  %2766 = vmatpush.msrb.mxu0 %v4270_v27 }
 0x3ed   :  { %2707 = vmatpush.msra.mxu1 %v4270_v27  ;;  %2747 = vmatpush.msrb.mxu3 %v4270_v27 }
 0x3ee   :  { %2725 = vmatpush.msra.mxu2 %v4270_v27  ;;  %2767 = vmatpush.msrb.mxu0 %v4270_v27 }
 0x3ef   :  { %2708 = vmatpush.msra.mxu1 %v4270_v27  ;;  %2748 = vmatpush.msrb.mxu3 %v4270_v27 }
 0x3f0   :  { %2726 = vmatpush.msra.mxu2 %v4270_v27  ;;  %2768 = vmatpush.msrb.mxu0 %v4270_v27 }
 0x3f1   :  { %2709 = vmatpush.msra.mxu1 %v4270_v27  ;;  %2749 = vmatpush.msrb.mxu3 %v4270_v27 }
 0x3f2   :  { %2727 = vmatpush.msra.mxu2 %v4270_v27  ;;  %2769 = vmatpush.msrb.mxu0 %v4270_v27 }
 0x3f3   :  { %2710 = vmatpush.msra.mxu1 %v4270_v27  ;;  %2750 = vmatpush.msrb.mxu3 %v4270_v27 }
 0x3f4   :  { %2728 = vmatpush.msra.mxu2 %v4270_v27  ;;  %2770 = vmatpush.msrb.mxu0 %v4270_v27 }
 0x3f5   :  { %2711 = vmatpush.msra.mxu1 %v4270_v27  ;;  %2751 = vmatpush.msrb.mxu3 %v4270_v27 }
 0x3f6   :  { %2729 = vmatpush.msra.mxu2 %v4270_v27  ;;  %2771 = vmatpush.msrb.mxu0 %v4270_v27 }
 0x3f7   :  { %2712 = vmatpush.msra.mxu1 %v4270_v27  ;;  %2752 = vmatpush.msrb.mxu3 %v4270_v27 }
 0x3f8   :  { %2730 = vmatpush.msra.mxu2 %v4270_v27  ;;  %2772 = vmatpush.msrb.mxu0 %v4270_v27 }
 0x3f9   :  { %2713 = vmatpush.msra.mxu1 %v4270_v27  ;;  %2753 = vmatpush.msrb.mxu3 %v4270_v27 }
 0x3fa   :  { %2731 = vmatpush.msra.mxu2 %v4270_v27  ;;  %2773 = vmatpush.msrb.mxu0 %v4270_v27 }
 0x3fb   :  { %2714 = vmatpush.msra.mxu1 %v4270_v27  ;;  %2754 = vmatpush.msrb.mxu3 %v4270_v27 }
 0x3fc   :  { %2732 = vmatpush.msra.mxu2 %v4270_v27  ;;  %2774 = vmatpush.msrb.mxu0 %v4270_v27 }
 0x3fd   :  { %2715 = vmatpush.msra.mxu1 %v4270_v27  ;;  %2755 = vmatpush.msrb.mxu3 %v4270_v27 }
 0x3fe   :  { %2733 = vmatpush.msra.mxu2 %v4270_v27  ;;  %2775 = vmatpush.msrb.mxu0 %v4270_v27 }
 0x3ff   :  { %2716 = vmatpush.msra.mxu1 %v1963_v51  ;;  %2756 = vmatpush.msrb.mxu3 %v2027_v54 }
 0x400   :  { %2734 = vmatpush.msra.mxu2 %v4270_v27  ;;  %2776 = vmatpush.msrb.mxu0 %v2059_v55 }
 0x401   :  { %2717 = vmatpush.msra.mxu1 %v4388_v35  ;;  %2757 = vmatpush.msrb.mxu3 %v4402_v38 }
 0x402   :  { %2735 = vmatpush.msra.mxu2 %v4270_v27  ;;  %2777 = vmatpush.msrb.mxu0 %v4409_v39 }
 0x403   :  { %2718 = vmatmul.f32.vlgmr.msra.gmra.mxu1 %v3862_v0  ;;  %2758 = vmatmul.f32.vlgmr.msrb.gmra.mxu3 %v3870_v5  ;;  %v4505_v0 = vld [vmem:[%s4717_s6 + $0x1e8] sm:$0xff]  ;;  %v2123_v5 = vld [vmem:[#allocation2 + $0x7a0] sm:$0xff] }
 0x404   :  { %2736 = vmatpush.msra.mxu2 %v1995_v53  ;;  %2778 = vmatmul.f32.vlgmr.msrb.gmra.mxu0 %v3875_v62  ;;  %v2155_v62 = vld [vmem:[#allocation2 + $0x3a8] sm:$0xff] }
 0x405   :  { %2782 = vmatpush.msrb.mxu1 %v4270_v27  ;;  %2822 = vmatpush.msra.mxu3 %v4270_v27 }
 0x406   :  { %2737 = vmatpush.msra.mxu2 %v4395_v36  ;;  %2842 = vmatpush.msra.mxu0 %v4270_v27 }
 0x407   :  { %2738 = vmatmul.f32.vlgmr.msra.gmra.mxu2 %v3865_v1  ;;  %2783 = vmatpush.msrb.mxu1 %v4270_v27  ;;  %v2091_v1 = vld [vmem:[#allocation2 + $0x1e8] sm:$0xff] }
 0x408   :  { %2802 = vmatpush.msrb.mxu2 %v4270_v27  ;;  %2823 = vmatpush.msra.mxu3 %v4270_v27 }
 0x409   :  { %2843 = vmatpush.msra.mxu0 %v4270_v27  ;;  %2784 = vmatpush.msrb.mxu1 %v4270_v27 }
 0x40a   :  { %2803 = vmatpush.msrb.mxu2 %v4270_v27  ;;  %2824 = vmatpush.msra.mxu3 %v4270_v27 }
 0x40b   :  { %2844 = vmatpush.msra.mxu0 %v4270_v27  ;;  %2785 = vmatpush.msrb.mxu1 %v4270_v27 }
 0x40c   :  { %2804 = vmatpush.msrb.mxu2 %v4270_v27  ;;  %2825 = vmatpush.msra.mxu3 %v4270_v27 }
 0x40d   :  { %2845 = vmatpush.msra.mxu0 %v4270_v27  ;;  %2786 = vmatpush.msrb.mxu1 %v4270_v27 }
 0x40e   :  { %2805 = vmatpush.msrb.mxu2 %v4270_v27  ;;  %2826 = vmatpush.msra.mxu3 %v4270_v27 }
 0x40f   :  { %2846 = vmatpush.msra.mxu0 %v4270_v27  ;;  %2787 = vmatpush.msrb.mxu1 %v4270_v27 }
 0x410   :  { %2806 = vmatpush.msrb.mxu2 %v4270_v27  ;;  %2827 = vmatpush.msra.mxu3 %v4270_v27 }
 0x411   :  { %2847 = vmatpush.msra.mxu0 %v4270_v27  ;;  %2788 = vmatpush.msrb.mxu1 %v4270_v27 }
 0x412   :  { %2807 = vmatpush.msrb.mxu2 %v4270_v27  ;;  %2828 = vmatpush.msra.mxu3 %v4270_v27 }
 0x413   :  { %2848 = vmatpush.msra.mxu0 %v4270_v27  ;;  %2789 = vmatpush.msrb.mxu1 %v4270_v27 }
 0x414   :  { %2808 = vmatpush.msrb.mxu2 %v4270_v27  ;;  %2829 = vmatpush.msra.mxu3 %v4270_v27 }
 0x415   :  { %2849 = vmatpush.msra.mxu0 %v4270_v27  ;;  %2790 = vmatpush.msrb.mxu1 %v4270_v27 }
 0x416   :  { %2809 = vmatpush.msrb.mxu2 %v4270_v27  ;;  %2830 = vmatpush.msra.mxu3 %v4270_v27 }
 0x417   :  { %2850 = vmatpush.msra.mxu0 %v4270_v27  ;;  %2791 = vmatpush.msrb.mxu1 %v4270_v27 }
 0x418   :  { %2810 = vmatpush.msrb.mxu2 %v4270_v27  ;;  %2831 = vmatpush.msra.mxu3 %v4270_v27 }
 0x419   :  { %2851 = vmatpush.msra.mxu0 %v4270_v27  ;;  %2792 = vmatpush.msrb.mxu1 %v4270_v27 }
 0x41a   :  { %2811 = vmatpush.msrb.mxu2 %v4270_v27  ;;  %2832 = vmatpush.msra.mxu3 %v4270_v27 }
 0x41b   :  { %2852 = vmatpush.msra.mxu0 %v4270_v27  ;;  %2793 = vmatpush.msrb.mxu1 %v4270_v27 }
 0x41c   :  { %2812 = vmatpush.msrb.mxu2 %v4270_v27  ;;  %2833 = vmatpush.msra.mxu3 %v4270_v27 }
 0x41d   :  { %2853 = vmatpush.msra.mxu0 %v4270_v27  ;;  %2794 = vmatpush.msrb.mxu1 %v4270_v27 }
 0x41e   :  { %2813 = vmatpush.msrb.mxu2 %v4270_v27  ;;  %2834 = vmatpush.msra.mxu3 %v4270_v27 }
 0x41f   :  { %2854 = vmatpush.msra.mxu0 %v4270_v27  ;;  %2795 = vmatpush.msrb.mxu1 %v4270_v27 }
 0x420   :  { %2814 = vmatpush.msrb.mxu2 %v4270_v27  ;;  %2835 = vmatpush.msra.mxu3 %v4270_v27 }
 0x421   :  { %2855 = vmatpush.msra.mxu0 %v4270_v27  ;;  %2796 = vmatpush.msrb.mxu1 %v2091_v1 }
 0x422   :  { %2815 = vmatpush.msrb.mxu2 %v4270_v27  ;;  %2836 = vmatpush.msra.mxu3 %v2155_v62 }
 0x423   :  { %2856 = vmatpush.msra.mxu0 %v2187_v59  ;;  %2797 = vmatpush.msrb.mxu1 %v4484_v56 }
 0x424   :  { %2816 = vmatpush.msrb.mxu2 %v2123_v5  ;;  %2837 = vmatpush.msra.mxu3 %v4498_v58 }
 0x425   :  { %2857 = vmatpush.msra.mxu0 %v4505_v0  ;;  %2798 = vmatmul.f32.vlgmr.msrb.gmra.mxu1 %v3880_v8  ;;  %v2319_v8 = vpop.f32.mrf.mxu1 }
 0x426   :  { %2817 = vmatpush.msrb.mxu2 %v4491_v57  ;;  %2838 = vmatmul.f32.vlgmr.msra.gmra.mxu3 %v3888_v49  ;;  %v2320_v30 = vadd.f32 %v2319_v8, %v2300_v10  ;;  %v2359_v49 = vpop.f32.mrf.mxu3 }
 0x427   :  { %2818 = vmatmul.f32.vlgmr.msrb.gmra.mxu2 %v3885_v11  ;;  %2858 = vmatmul.f32.vlgmr.msra.gmra.mxu0 %v3893_v52  ;;  %v2339_v11 = vpop.f32.mrf.mxu2  ;;  %v2379_v52 = vpop.f32.mrf.mxu0 }
 0x428   :  { %v2340_v4 = vadd.f32 %v2339_v11, %v2320_v30 }
 0x42a   :  { %v2360_v6 = vadd.f32 %v2359_v49, %v2340_v4 }
 0x42c   :  { %v2380_v40 = vadd.f32 %v2379_v52, %v2360_v6 }
 0x42d   :  { %v2399_v12 = vpop.f32.mrf.mxu1 }
 0x42e   :  { %v2400_v28 = vadd.f32 %v2399_v12, %v2380_v40  ;;  %v2439_v14 = vpop.f32.mrf.mxu3 }
 0x42f   :  { %v2419_v41 = vpop.f32.mrf.mxu2  ;;  %v2459_v27 = vpop.f32.mrf.mxu0 }
 0x430   :  { %v2420_v13 = vadd.f32 %v2419_v41, %v2400_v28 }
 0x432   :  { %v2440_v16 = vadd.f32 %v2439_v14, %v2420_v13  ;;  %v2972_v13 = vld [vmem:[%s4721_s10 + $0x78] sm:$0xff] }
 0x433   :  { %v2988_v14 = vld [vmem:[%s4721_s10 + $0xf8] sm:$0xff]  ;;  %2993 = vmatpush.msra.mxu1 %v2972_v13 }
 0x434   :  { %v2460_v45 = vadd.f32 %v2459_v27, %v2440_v16  ;;  %3013 = vmatpush.msra.mxu2 %v2988_v14  ;;  %v2987_v27 = vld [vmem:[%s4721_s10 + $0xf0] sm:$0xff] }
 0x435   :  { %v2479_v15 = vpop.f32.mrf.mxu1 }
 0x436   :  { %v2480_v37 = vadd.f32 %v2479_v15, %v2460_v45  ;;  %v2519_v18 = vpop.f32.mrf.mxu3  ;;  %3014 = vmatpush.msra.mxu2 %v2987_v27 }
 0x437   :  { %v2499_v7 = vpop.f32.mrf.mxu2  ;;  %v2539_v23 = vpop.f32.mrf.mxu0 }
 0x438   :  { %v2500_v20 = vadd.f32 %v2499_v7, %v2480_v37  ;;  %v2971_v7 = vld [vmem:[%s4721_s10 + $0x70] sm:$0xff] }
 0x439   :  { %2994 = vmatpush.msra.mxu1 %v2971_v7 }
 0x43a   :  { %v2520_v24 = vadd.f32 %v2519_v18, %v2500_v20  ;;  %v2970_v18 = vld [vmem:[%s4721_s10 + $0x68] sm:$0xff] }
 0x43b   :  { %2995 = vmatpush.msra.mxu1 %v2970_v18 }
 0x43c   :  { %v4572_v29 = vadd.f32 %v2539_v23, %v2520_v24  ;;  %v2985_v23 = vld [vmem:[%s4721_s10 + $0xe0] sm:$0xff] }
 0x43d   :  { %v2559_v19 = vpop.f32.mrf.mxu1 }
 0x43e   :  { %v2560_v22 = vadd.f32 %v2559_v19, %v2219_v17  ;;  %v2864_v34 = vsel %vm958_vm6, %v4572_v29, 0.0  ;;  %v2880_v35 = vmul.f32 %v4572_v29, %v4572_v29  ;;  %v2986_v19 = vld [vmem:[%s4721_s10 + $0xe8] sm:$0xff] }
 0x43f   :  { %v2619_v32 = vpop.f32.mrf.mxu0  ;;  %v2865_v42 = vrot.slane %v2864_v34, 4  ;;  %3015 = vmatpush.msra.mxu2 %v2986_v19 }
 0x440   :  { %v2882_v46 = vsel %vm958_vm6, %v2880_v35, 0.0  ;;  %v2967_v35 = vld [vmem:[%s4721_s10 + $0x50] sm:$0xff] }
 0x441   :  { %v2599_v26 = vpop.f32.mrf.mxu3  ;;  %v2866_v50 = vadd.f32 %v2865_v42, %v2864_v34  ;;  %v2883_v51 = vrot.slane %v2882_v46, 4  ;;  %3016 = vmatpush.msra.mxu2 %v2985_v23 }
 0x443   :  { %v2867_v55 = vrot.slane %v2866_v50, 2  ;;  %v2884_v56 = vadd.f32 %v2883_v51, %v2882_v46  ;;  %v2966_v46 = vld [vmem:[%s4721_s10 + $0x48] sm:$0xff] }
 0x445   :  { %v2868_v62 = vadd.f32 %v2867_v55, %v2866_v50  ;;  %v2885_v59 = vrot.slane %v2884_v56, 2 }
 0x447   :  { %v2869_v2 = vrot.slane %v2868_v62, 1  ;;  %v2886_v60 = vadd.f32 %v2885_v59, %v2884_v56 }
 0x449   :  { %v2870_v63 = vadd.f32 %v2869_v2, %v2868_v62  ;;  %v2887_v3 = vrot.slane %v2886_v60, 1  ;;  %v2979_v62 = vld [vmem:[%s4721_s10 + $0xb0] sm:$0xff]  ;;  %v2978_v2 = vld [vmem:[%s4721_s10 + $0xa8] sm:$0xff] }
 0x44a   :  { %v2579_v21 = vpop.f32.mrf.mxu2 }
 0x44b   :  { %v2580_v25 = vadd.f32 %v2579_v21, %v2560_v22  ;;  %v4579_v30 = vmul.f32 0.5, %v2870_v63  ;;  %v2888_v11 = vadd.f32 %v2887_v3, %v2886_v60  ;;  %v2969_v22 = vld [vmem:[%s4721_s10 + $0x60] sm:$0xff]  ;;  %v2960_v3 = vld [vmem:[%s4721_s10 + $0x18] sm:$0xff] }
 0x44c   :  { %2996 = vmatpush.msra.mxu1 %v2969_v22  ;;  %v2961_v60 = vld [vmem:[%s4721_s10 + $0x20] sm:$0xff] }
 0x44d   :  { %v2600_v31 = vadd.f32 %v2599_v26, %v2580_v25  ;;  %v2896_v12 = vmul.f32 0.5, %v2888_v11  ;;  %v2898_v40 = vmul.f32 %v4579_v30, %v4579_v30  ;;  %v2977_v63 = vld [vmem:[%s4721_s10 + $0xa0] sm:$0xff]  ;;  %v2975_v11 = vld [vmem:[%s4721_s10 + $0x90] sm:$0xff] }
 0x44f   :  { %v2620_v36 = vadd.f32 %v2619_v32, %v2600_v31  ;;  %v2900_v45 = vsub.f32 %v2896_v12, %v2898_v40  ;;  %v2968_v31 = vld [vmem:[%s4721_s10 + $0x58] sm:$0xff]  ;;  %v2973_v12 = vld [vmem:[%s4721_s10 + $0x80] sm:$0xff] }
 0x450   :  { %v2984_v32 = vld [vmem:[%s4721_s10 + $0xd8] sm:$0xff]  ;;  %2997 = vmatpush.msra.mxu1 %v2968_v31 }
 0x451   :  { %v2902_v24 = vmax.f32 %v2900_v45, 0.0  ;;  %3017 = vmatpush.msra.mxu2 %v2984_v32 }
 0x452   :  { %2998 = vmatpush.msra.mxu1 %v2967_v35 }
 0x454   :  { %2999 = vmatpush.msra.mxu1 %v2966_v46 }
 0x45d   :  { %v2639_v33 = vpop.f32.mrf.mxu1 }
 0x45e   :  { %v2640_v39 = vadd.f32 %v2639_v33, %v2620_v36  ;;  %v2699_v57 = vpop.f32.mrf.mxu0  ;;  %v2983_v36 = vld [vmem:[%s4721_s10 + $0xd0] sm:$0xff] }
 0x45f   :  { %3018 = vmatpush.msra.mxu2 %v2983_v36 }
 0x464   :  { %v2679_v53 = vpop.f32.mrf.mxu3 }
 0x46a   :  { %v2659_v38 = vpop.f32.mrf.mxu2 }
 0x46b   :  { %v2660_v48 = vadd.f32 %v2659_v38, %v2640_v39  ;;  %v4626_v38 = vadd.f32 1e-05, %v2902_v24 }
 0x46d   :  { %v2680_v54 = vadd.f32 %v2679_v53, %v2660_v48  ;;  %v2982_v48 = vld [vmem:[%s4721_s10 + $0xc8] sm:$0xff]  ;;  %v2965_v53 = vld [vmem:[%s4721_s10 + $0x40] sm:$0xff]  ;;  %3209 = vrsqrt.f32 %v4626_v38  ;;  %vm2912_vm9 = vweird.f32 %v4626_v38 }
 0x46e   :  { %3019 = vmatpush.msra.mxu2 %v2982_v48  ;;  %3000 = vmatpush.msra.mxu1 %v2965_v53 }
 0x46f   :  { %v2700_v0 = vadd.f32 %v2699_v57, %v2680_v54  ;;  %v2981_v54 = vld [vmem:[%s4721_s10 + $0xc0] sm:$0xff]  ;;  %v2964_v57 = vld [vmem:[%s4721_s10 + $0x38] sm:$0xff] }
 0x470   :  { %3020 = vmatpush.msra.mxu2 %v2981_v54  ;;  %3001 = vmatpush.msra.mxu1 %v2964_v57 }
 0x480   :  { %v2719_v58 = vpop.f32.mrf.mxu1 }
 0x481   :  { %v2720_v5 = vadd.f32 %v2719_v58, %v2700_v0  ;;  %v2779_v47 = vpop.f32.mrf.mxu0  ;;  %v2980_v58 = vld [vmem:[%s4721_s10 + $0xb8] sm:$0xff] }
 0x482   :  { %3021 = vmatpush.msra.mxu2 %v2980_v58 }
 0x484   :  { %3022 = vmatpush.msra.mxu2 %v2979_v62 }
 0x486   :  { %v2759_v44 = vpop.f32.mrf.mxu3  ;;  %3023 = vmatpush.msra.mxu2 %v2978_v2 }
 0x488   :  { %3024 = vmatpush.msra.mxu2 %v2977_v63 }
 0x48a   :  { %v2739_v1 = vpop.f32.mrf.mxu2 }
 0x48b   :  { %v2740_v61 = vadd.f32 %v2739_v1, %v2720_v5  ;;  %v2963_v5 = vld [vmem:[%s4721_s10 + $0x30] sm:$0xff] }
 0x48c   :  { %3002 = vmatpush.msra.mxu1 %v2963_v5 }
 0x48d   :  { %v2760_v43 = vadd.f32 %v2759_v44, %v2740_v61  ;;  %v2962_v61 = vld [vmem:[%s4721_s10 + $0x28] sm:$0xff]  ;;  %v3210_v44 = vpop.eup %3209 }
 0x48e   :  { %3003 = vmatpush.msra.mxu1 %v2962_v61  ;;  %vm2913_vm5 = vweird.f32 %v3210_v44 }
 0x48f   :  { %v2780_v10 = vadd.f32 %v2779_v47, %v2760_v43  ;;  %v2976_v47 = vld [vmem:[%s4721_s10 + $0x98] sm:$0xff]  ;;  %vm2914_vm11 = vmor %vm2912_vm9, %vm2913_vm5 }
 0x490   :  { %3004 = vmatpush.msra.mxu1 %v2961_v60  ;;  %3025 = vmatpush.msra.mxu2 %v2976_v47 }
 0x492   :  { %3005 = vmatpush.msra.mxu1 %v2960_v3  ;;  %3026 = vmatpush.msra.mxu2 %v2975_v11 }
 0x4a2   :  { %v2799_v9 = vpop.f32.mrf.mxu1 }
 0x4a3   :  { %v2800_v8 = vadd.f32 %v2799_v9, %v2780_v10  ;;  %v2907_v10 = vmul.f32 %v3210_v44, %v4626_v38 }
 0x4a4   :  { %v2859_v41 = vpop.f32.mrf.mxu0 }
 0x4a9   :  { %v2839_v6 = vpop.f32.mrf.mxu3 }
 0x4aa   :  { %v2819_v4 = vpop.f32.mrf.mxu2 }
 0x4ab   :  { %v2820_v49 = vadd.f32 %v2819_v4, %v2800_v8  ;;  %v2959_v8 = vld [vmem:[%s4721_s10 + $0x10] sm:$0xff]  ;;  %v2958_v4 = vld [vmem:[%s4721_s10 + $0x8] sm:$0xff] }
 0x4ac   :  { %3006 = vmatpush.msra.mxu1 %v2959_v8 }
 0x4ad   :  { %v2840_v52 = vadd.f32 %v2839_v6, %v2820_v49  ;;  %v2974_v49 = vld [vmem:[%s4721_s10 + $0x88] sm:$0xff]  ;;  %v2908_v6 = vmul.f32 %v3210_v44, %v2907_v10 }
 0x4ae   :  { %3007 = vmatpush.msra.mxu1 %v2958_v4  ;;  %3027 = vmatpush.msra.mxu2 %v2974_v49 }
 0x4af   :  { %v4583_v28 = vadd.f32 %v2859_v41, %v2840_v52  ;;  %v2957_v52 = vld [vmem:[%s4721_s10] sm:$0xff]  ;;  %v2909_v41 = vmul.f32 0.5, %v2908_v6 }
 0x4b0   :  { %3008 = vmatpush.msra.mxu1 %v2957_v52  ;;  %3028 = vmatpush.msra.mxu2 %v2973_v12 }
 0x4b1   :  { %v2871_v15 = vsel %vm958_vm6, %v4583_v28, 0.0  ;;  %v2881_v16 = vmul.f32 %v4583_v28, %v4583_v28 }
 0x4b2   :  { %v2872_v37 = vrot.slane %v2871_v15, 4 }
 0x4b3   :  { %v2889_v17 = vsel %vm958_vm6, %v2881_v16, 0.0 }
 0x4b4   :  { %v2873_v20 = vadd.f32 %v2872_v37, %v2871_v15  ;;  %v2890_v21 = vrot.slane %v2889_v17, 4  ;;  %v2910_v15 = vsub.f32 1.5, %v2909_v41 }
 0x4b6   :  { %v2874_v25 = vrot.slane %v2873_v20, 2  ;;  %v2891_v26 = vadd.f32 %v2890_v21, %v2889_v17  ;;  %v2911_v27 = vmul.f32 %v3210_v44, %v2910_v15  ;;  %v2862_v17 = vld [vmem:[%s4719_s8] sm:$0x3] }
 0x4b8   :  { %v2875_v33 = vadd.f32 %v2874_v25, %v2873_v20  ;;  %v2892_v34 = vrot.slane %v2891_v26, 2  ;;  %v2915_v19 = vsel %vm2914_vm11, %v3210_v44, %v2911_v27 }
 0x4ba   :  { %v2876_v39 = vrot.slane %v2875_v33, 1  ;;  %v2893_v42 = vadd.f32 %v2892_v34, %v2891_v26  ;;  %v2863_v26 = vld [vmem:[%s4720_s9] sm:$0x3]  ;;  %s3243_s9 = smov [#allocation3]  }
 0x4bb   :  { %s3039_s0 = sshll.u32 %s3243_s9, 4  ;;  %s3040_s0 = int_to_ptr.vmem [resolvable:$true] %s3039_s0 }
 0x4bc   :  { %v2877_v50 = vadd.f32 %v2876_v39, %v2875_v33  ;;  %v2894_v51 = vrot.slane %v2893_v42, 1 }
 0x4be   :  { %v4641_v55 = vmul.f32 0.5, %v2877_v50  ;;  %v2895_v56 = vadd.f32 %v2894_v51, %v2893_v42  ;;  %v3200_v50 = vld [vmem:[%s4722_s11] ss:$0 sm:$0xff] }
 0x4c0   :  { %v2897_v0 = vmul.f32 0.5, %v2895_v56  ;;  %v2899_v1 = vmul.f32 %v4641_v55, %v4641_v55 }
 0x4c2   :  { %v2901_v59 = vsub.f32 %v2897_v0, %v2899_v1 }
 0x4c4   :  { %v2903_v43 = vmax.f32 %v2901_v59, 0.0 }
 0x4c6   :  { %v2905_v9 = vadd.f32 1e-05, %v2903_v43 }
 0x4c8   :  { %3211 = vrsqrt.f32 %v2905_v9  ;;  %vm2922_vm6 = vweird.f32 %v2905_v9 }
 0x4ce   :  { %v3212_v40 = vpop.eup %3211 }
 0x4cf   :  { %v2917_v13 = vmul.f32 %v3212_v40, %v2905_v9  ;;  %vm2923_vm4 = vweird.f32 %v3212_v40 }
 0x4d0   :  { %vm2924_vm8 = vmor %vm2922_vm6, %vm2923_vm4 }
 0x4d1   :  { %v2918_v14 = vmul.f32 %v3212_v40, %v2917_v13 }
 0x4d3   :  { %v2919_v16 = vmul.f32 0.5, %v2918_v14 }
 0x4d5   :  { %v2920_v7 = vsub.f32 1.5, %v2919_v16 }
 0x4d7   :  { %v2921_v45 = vmul.f32 %v3212_v40, %v2920_v7 }
 0x4d9   :  { %v2925_v37 = vsel %vm2924_vm8, %v3212_v40, %v2921_v45 }
 0x4da   :  { %v2928_v18 = vrot.slane %v2925_v37, 7 }
 0x4dc   :  { %v2930_v20 = vsel %vm2929_vm10, %v2915_v19, %v2928_v18 }
 0x4dd   :  { %v2932_v21 = vmul.f32 %v2930_v20, %v2862_v17 }
 0x4df   :  { %v2935_v22 = vperm.slane %v2932_v21, 1  ;;  %v2934_v23 = vperm.slane %v2932_v21, 0 }
 0x4e1   :  { %v2939_v24 = vmul.f32 %v2935_v22, %v4641_v55  ;;  %v2938_v31 = vmul.f32 %v2934_v23, %v4579_v30  ;;  %v2947_v34 = vmul.f32 %v2935_v22, %v4583_v28  ;;  %v2946_v35 = vmul.f32 %v2934_v23, %v4572_v29 }
 0x4e3   :  { %v2942_v25 = vrot.slane %v2939_v24, 7 }
 0x4e5   :  { %v2943_v32 = vsel %vm2929_vm10, %v2938_v31, %v2942_v25 }
 0x4e6   :  { %v2945_v33 = vsub.f32 %v2863_v26, %v2943_v32 }
 0x4e8   :  { %v2949_v36 = vperm.slane %v2945_v33, 0  ;;  %v2950_v38 = vperm.slane %v2945_v33, 1 }
 0x4ea   :  { %v2953_v39 = vadd.f32 %v2949_v36, %v2946_v35  ;;  %v2954_v42 = vadd.f32 %v2950_v38, %v2947_v34 }
 0x4ec   :  { %v2955_v46 = vmax.f32 %v2953_v39, 0.0  ;;  %v2956_v48 = vmax.f32 %v2954_v42, 0.0 }
 0x4ee   :  { %3009 = vmatmul.f32.vlgmr.msra.gmra.mxu1 %v2955_v46  ;;  %3029 = vmatmul.f32.vlgmr.msra.gmra.mxu2 %v2956_v48 }
 0x56b   :  { %v3010_v51 = vpop.f32.mrf.mxu1 }
 0x56c   :  { %v3011_v29 = vadd.f32 %v3200_v50, %v3010_v51 }
 0x571   :  { %v3030_v30 = vpop.f32.mrf.mxu2 }
 0x572   :  { %v3031_v28 = vadd.f32 %v3030_v30, %v3011_v29 }
 0x574   :  { %3033 = vst [vmem:[#allocation3] sm:$0x3] %v3031_v28 }
 0x575   :  { %3044 = dma.vmem_to_hbm [thread:$0]  %s3040_s0, 32, %s3042_s16, [#allocation4]  }
 0x576   :  { %3239 = dma.done.wait [#allocation4], 32  }
 0x577   :  { %3240 = vsyncadd [#allocation4], 4294967264 }
 0x578   :  { %3049 = vsyncpa [#allocation4], 1 }

</bundles_post_ra>
